<compile_context>
chip_gen: v7x
topology: tpu7x:2x2x1
jax: 0.10.0
libtpu: 0.0.40
codegen_flags: <defaults>
</compile_context>

<pallas_src>
import functools

import jax
import jax.numpy as jnp
from jax.experimental import pallas as pl
from jax.experimental.pallas import tpu as pltpu


# ----------------------------------------------------------------------------
# Fused kernel: one batch sample = preprocess + 3 conv layers + both heads,
# everything resident in VMEM.
# ----------------------------------------------------------------------------
def _fused_kernel(x_ref, mean_ref, istd_ref,
                  w1_ref, b1_ref, w2_ref, b2_ref,
                  wh_ref, bh_ref, wct_ref, bc_ref, wrt_ref, br_ref,
                  heat_ref, reg_ref,
                  pad_in, pad_a, pad_b,
                  *, H, W, head_ch):

    def conv3x3_relu(src_ref, w_ref, b_ref):
        # src_ref: (H+2, W+2, Cin) zero-padded scratch; w_ref: (3, 3, Cin, Cout)
        cout = w_ref.shape[-1]
        acc = jnp.zeros((H, W, cout), jnp.float32)
        for kh in range(3):
            for kw in range(3):
                acc = acc + jax.lax.dot_general(
                    src_ref[kh:kh + H, kw:kw + W, :], w_ref[kh, kw],
                    dimension_numbers=(((2,), (0,)), ((), ())),
                    preferred_element_type=jnp.float32)
        return jnp.maximum(acc + b_ref[...], 0.0)

    # ---- preprocess: (x - mean) * (1/std), written into a zero-halo scratch ----
    pad_in[...] = jnp.zeros_like(pad_in)
    pad_in[1:H + 1, 1:W + 1, :] = (x_ref[0] - mean_ref[...]) * istd_ref[...]

    # ---- backbone conv1 ----
    f1 = conv3x3_relu(pad_in, w1_ref, b1_ref)            # (H, W, bb_ch)
    pad_a[...] = jnp.zeros_like(pad_a)
    pad_a[1:H + 1, 1:W + 1, :] = f1

    # ---- backbone conv2 ----
    f2 = conv3x3_relu(pad_a, w2_ref, b2_ref)             # (H, W, bb_ch)
    pad_b[...] = jnp.zeros_like(pad_b)
    pad_b[1:H + 1, 1:W + 1, :] = f2

    # ---- fused cls/reg 3x3 head conv (Cout = 2 * head_ch) ----
    h = conv3x3_relu(pad_b, wh_ref, bh_ref)              # (H, W, 2*head_ch)

    # channels-first, pixels-on-lanes view: (2*head_ch, H*W) with H*W = 256
    # lanes -> epilogue matmuls and output stores are lane-dense.
    h2t = jnp.transpose(h.reshape(H * W, 2 * head_ch))   # (2*head_ch, H*W)

    # class heatmap head: 1x1 conv == matmul, sigmoid clamped to [1e-4, 1-1e-4]
    cls_logit = jnp.dot(wct_ref[...], h2t[:head_ch, :],
                        preferred_element_type=jnp.float32) + bc_ref[...]
    heat_ref[0] = jnp.clip(jax.nn.sigmoid(cls_logit), 1e-4, 1.0 - 1e-4)

    # regression head: 1x1 conv == matmul
    reg_ref[0] = jnp.dot(wrt_ref[...], h2t[head_ch:, :],
                         preferred_element_type=jnp.float32) + br_ref[...]


# ----------------------------------------------------------------------------
# Parameter construction (deterministic), same structure as before.
# ----------------------------------------------------------------------------
def init_params(key, in_ch=3, backbone_ch=8, head_ch=16, num_classes=3,
                reg_ch=8):
    ks = jax.random.split(key, 10)

    def conv_w(k, kk, cin, cout, scale=0.1):
        return scale * jax.random.normal(k, (kk, kk, cin, cout), jnp.float32)

    params = {
        # preprocess (ImageNet-like normalization constants)
        "mean": jnp.array([0.485, 0.456, 0.406], jnp.float32),
        "std": jnp.array([0.229, 0.224, 0.225], jnp.float32),
        # backbone
        "bb1_w": conv_w(ks[0], 3, in_ch, backbone_ch),
        "bb1_b": jnp.zeros((backbone_ch,), jnp.float32),
        "bb2_w": conv_w(ks[1], 3, backbone_ch, backbone_ch),
        "bb2_b": jnp.zeros((backbone_ch,), jnp.float32),
        # class (heatmap) head
        "cls1_w": conv_w(ks[2], 3, backbone_ch, head_ch),
        "cls1_b": jnp.zeros((head_ch,), jnp.float32),
        "cls2_w": conv_w(ks[3], 1, head_ch, num_classes),
        "cls2_b": jnp.full((num_classes,), -2.19, jnp.float32),  # SMOKE bias init
        # regression head
        "reg1_w": conv_w(ks[4], 3, backbone_ch, head_ch),
        "reg1_b": jnp.zeros((head_ch,), jnp.float32),
        "reg2_w": conv_w(ks[5], 1, head_ch, reg_ch),
        "reg2_b": jnp.zeros((reg_ch,), jnp.float32),
    }
    return params


# ----------------------------------------------------------------------------
# Forward pass (eval mode).
# ----------------------------------------------------------------------------
def keypoint_detector_forward(params, images_nchw, target=None):
    """Eval-mode forward. images_nchw: (N, C, H, W) float32.

    Returns (cls_heatmap, regression), both NCHW.
    """
    f32 = jnp.float32
    x = jnp.transpose(images_nchw.astype(f32), (0, 2, 3, 1))  # NCHW -> NHWC
    N, H, W, Cin = x.shape

    bb_ch = params["bb1_w"].shape[-1]
    head_ch = params["cls1_w"].shape[-1]
    num_cls = params["cls2_w"].shape[-1]
    reg_ch = params["reg2_w"].shape[-1]
    Hp, Wp = H + 2, W + 2
    HW = H * W

    # ---- pack / pre-transform the (tiny) parameters once in the wrapper ----
    mean = params["mean"].reshape(1, 1, Cin).astype(f32)
    istd = (1.0 / params["std"]).reshape(1, 1, Cin).astype(f32)   # multiply, not divide
    w1 = params["bb1_w"].astype(f32)
    b1 = params["bb1_b"].reshape(1, 1, bb_ch).astype(f32)
    w2 = params["bb2_w"].astype(f32)
    b2 = params["bb2_b"].reshape(1, 1, bb_ch).astype(f32)
    # concatenate cls/reg 3x3 head convs -> single bb_ch -> 2*head_ch conv
    wh = jnp.concatenate([params["cls1_w"], params["reg1_w"]], axis=-1).astype(f32)
    bh = jnp.concatenate([params["cls1_b"], params["reg1_b"]]
                         ).reshape(1, 1, 2 * head_ch).astype(f32)
    # 1x1 head convs as pre-transposed matmul weights (C_out, head_ch)
    wct = params["cls2_w"].reshape(head_ch, num_cls).T.astype(f32)   # (num_cls, head_ch)
    bc = params["cls2_b"].reshape(num_cls, 1).astype(f32)
    wrt = params["reg2_w"].reshape(head_ch, reg_ch).T.astype(f32)    # (reg_ch, head_ch)
    br = params["reg2_b"].reshape(reg_ch, 1).astype(f32)

    kernel = functools.partial(_fused_kernel, H=H, W=W, head_ch=head_ch)

    def full_spec(shape):
        return pl.BlockSpec(shape, lambda n: (0,) * len(shape))

    grid_spec = pltpu.PrefetchScalarGridSpec(
        num_scalar_prefetch=0,
        grid=(N,),
        in_specs=[
            pl.BlockSpec((1, H, W, Cin), lambda n: (n, 0, 0, 0)),  # image
            full_spec((1, 1, Cin)),                 # mean
            full_spec((1, 1, Cin)),                 # 1/std
            full_spec((3, 3, Cin, bb_ch)),          # bb1 w
            full_spec((1, 1, bb_ch)),               # bb1 b
            full_spec((3, 3, bb_ch, bb_ch)),        # bb2 w
            full_spec((1, 1, bb_ch)),               # bb2 b
            full_spec((3, 3, bb_ch, 2 * head_ch)),  # fused head conv w
            full_spec((1, 1, 2 * head_ch)),         # fused head conv b
            full_spec((num_cls, head_ch)),          # cls 1x1 w (transposed)
            full_spec((num_cls, 1)),                # cls 1x1 b
            full_spec((reg_ch, head_ch)),           # reg 1x1 w (transposed)
            full_spec((reg_ch, 1)),                 # reg 1x1 b
        ],
        out_specs=[
            pl.BlockSpec((1, num_cls, HW), lambda n: (n, 0, 0)),
            pl.BlockSpec((1, reg_ch, HW), lambda n: (n, 0, 0)),
        ],
        scratch_shapes=[
            pltpu.VMEM((Hp, Wp, Cin), f32),    # padded preprocessed input
            pltpu.VMEM((Hp, Wp, bb_ch), f32),  # padded bb1 output
            pltpu.VMEM((Hp, Wp, bb_ch), f32),  # padded bb2 output
        ],
    )

    heat, reg = pl.pallas_call(
        kernel,
        out_shape=(jax.ShapeDtypeStruct((N, num_cls, HW), f32),
                   jax.ShapeDtypeStruct((N, reg_ch, HW), f32)),
        grid_spec=grid_spec,
        compiler_params=pltpu.CompilerParams(
            dimension_semantics=("parallel",)),
    )(x, mean, istd, w1, b1, w2, b2, wh, bh, wct, bc, wrt, br)

    # (N, C, H*W) row-major is exactly NCHW flattened -> free reshape.
    heatmap_nchw = heat.reshape(N, num_cls, H, W)
    regression_nchw = reg.reshape(N, reg_ch, H, W)
    return heatmap_nchw, regression_nchw


if __name__ == "__main__":
    key = jax.random.PRNGKey(0)
    k_img, k_par = jax.random.split(key)

    # Small shapes: batch=2, 3 input channels, 16x16 spatial.
    images = jax.random.uniform(k_img, (2, 3, 16, 16), jnp.float32)
    params = init_params(k_par)

    heatmap, regression = keypoint_detector_forward(params, images, target=None)
    jax.block_until_ready((heatmap, regression))

    assert heatmap.shape == (2, 3, 16, 16)
    assert regression.shape == (2, 8, 16, 16)
    assert bool(jnp.all(heatmap >= 1e-4)) and bool(jnp.all(heatmap <= 1 - 1e-4))
    assert bool(jnp.all(jnp.isfinite(regression)))

    print("KERNEL_OK")
</pallas_src>

<mosaic_0001>
module attributes {stable_mosaic.version = 11 : i64} {
  func.func @_fused_kernel(%arg0: i32, %arg1: memref<1x16x16x3xf32, #tpu.memory_space<vmem>>, %arg2: memref<1x1x3xf32, #tpu.memory_space<vmem>>, %arg3: memref<1x1x3xf32, #tpu.memory_space<vmem>>, %arg4: memref<3x3x3x8xf32, #tpu.memory_space<vmem>>, %arg5: memref<1x1x8xf32, #tpu.memory_space<vmem>>, %arg6: memref<3x3x8x8xf32, #tpu.memory_space<vmem>>, %arg7: memref<1x1x8xf32, #tpu.memory_space<vmem>>, %arg8: memref<3x3x8x32xf32, #tpu.memory_space<vmem>>, %arg9: memref<1x1x32xf32, #tpu.memory_space<vmem>>, %arg10: memref<3x16xf32, #tpu.memory_space<vmem>>, %arg11: memref<3x1xf32, #tpu.memory_space<vmem>>, %arg12: memref<8x16xf32, #tpu.memory_space<vmem>>, %arg13: memref<8x1xf32, #tpu.memory_space<vmem>>, %arg14: memref<1x3x256xf32, #tpu.memory_space<vmem>>, %arg15: memref<1x8x256xf32, #tpu.memory_space<vmem>>, %arg16: memref<18x18x3xf32, #tpu.memory_space<vmem>>, %arg17: memref<18x18x8xf32, #tpu.memory_space<vmem>>, %arg18: memref<18x18x8xf32, #tpu.memory_space<vmem>>) attributes {dimension_semantics = [#tpu.dimension_semantics<parallel>], iteration_bounds = array<i64: 2>, scalar_prefetch = 0 : i64, scratch_operands = 3 : i64, tpu.core_type = #tpu.core_type<tc>, window_params = [{transform_indices = @transform_0, window_bounds = array<i64: 1, 16, 16, 3>}, {pipeline_mode = #tpu.pipeline_mode<synchronous>, transform_indices = @transform_1, window_bounds = array<i64: 1, 1, 3>}, {pipeline_mode = #tpu.pipeline_mode<synchronous>, transform_indices = @transform_2, window_bounds = array<i64: 1, 1, 3>}, {pipeline_mode = #tpu.pipeline_mode<synchronous>, transform_indices = @transform_3, window_bounds = array<i64: 3, 3, 3, 8>}, {pipeline_mode = #tpu.pipeline_mode<synchronous>, transform_indices = @transform_4, window_bounds = array<i64: 1, 1, 8>}, {pipeline_mode = #tpu.pipeline_mode<synchronous>, transform_indices = @transform_5, window_bounds = array<i64: 3, 3, 8, 8>}, {pipeline_mode = #tpu.pipeline_mode<synchronous>, transform_indices = @transform_6, window_bounds = array<i64: 1, 1, 8>}, {pipeline_mode = #tpu.pipeline_mode<synchronous>, transform_indices = @transform_7, window_bounds = array<i64: 3, 3, 8, 32>}, {pipeline_mode = #tpu.pipeline_mode<synchronous>, transform_indices = @transform_8, window_bounds = array<i64: 1, 1, 32>}, {pipeline_mode = #tpu.pipeline_mode<synchronous>, transform_indices = @transform_9, window_bounds = array<i64: 3, 16>}, {pipeline_mode = #tpu.pipeline_mode<synchronous>, transform_indices = @transform_10, window_bounds = array<i64: 3, 1>}, {pipeline_mode = #tpu.pipeline_mode<synchronous>, transform_indices = @transform_11, window_bounds = array<i64: 8, 16>}, {pipeline_mode = #tpu.pipeline_mode<synchronous>, transform_indices = @transform_12, window_bounds = array<i64: 8, 1>}, {transform_indices = @transform_13, window_bounds = array<i64: 1, 3, 256>}, {transform_indices = @transform_14, window_bounds = array<i64: 1, 8, 256>}]} {
    %cst = arith.constant 0.000000e+00 : f32
    %0 = vector.broadcast %cst : f32 to vector<18x18x3xf32>
    %c0 = arith.constant 0 : index
    %c0_0 = arith.constant 0 : index
    %c0_1 = arith.constant 0 : index
    %1 = vector.load %arg16[%c0, %c0_0, %c0_1] : memref<18x18x3xf32, #tpu.memory_space<vmem>>, vector<18x18x3xf32>
    tpu.vector_store %arg16[%c0, %c0_0, %c0_1], %0 {strides = array<i32>} : memref<18x18x3xf32, #tpu.memory_space<vmem>>, vector<18x18x3xf32>,
    %c0_2 = arith.constant 0 : index
    %c0_3 = arith.constant 0 : index
    %c0_4 = arith.constant 0 : index
    %c0_5 = arith.constant 0 : index
    %2 = vector.load %arg1[%c0_2, %c0_3, %c0_4, %c0_5] : memref<1x16x16x3xf32, #tpu.memory_space<vmem>>, vector<1x16x16x3xf32>
    %3 = vector.shape_cast %2 : vector<1x16x16x3xf32> to vector<16x16x3xf32>
    %c0_6 = arith.constant 0 : index
    %c0_7 = arith.constant 0 : index
    %c0_8 = arith.constant 0 : index
    %4 = vector.load %arg2[%c0_6, %c0_7, %c0_8] : memref<1x1x3xf32, #tpu.memory_space<vmem>>, vector<1x1x3xf32>
    %5 = vector.broadcast %4 : vector<1x1x3xf32> to vector<16x16x3xf32>
    %6 = arith.subf %3, %5 : vector<16x16x3xf32>
    %c0_9 = arith.constant 0 : index
    %c0_10 = arith.constant 0 : index
    %c0_11 = arith.constant 0 : index
    %7 = vector.load %arg3[%c0_9, %c0_10, %c0_11] : memref<1x1x3xf32, #tpu.memory_space<vmem>>, vector<1x1x3xf32>
    %8 = vector.broadcast %7 : vector<1x1x3xf32> to vector<16x16x3xf32>
    %9 = arith.mulf %6, %8 : vector<16x16x3xf32>
    %c1 = arith.constant 1 : index
    %c1_12 = arith.constant 1 : index
    %c0_13 = arith.constant 0 : index
    %10 = vector.load %arg16[%c1, %c1_12, %c0_13] : memref<18x18x3xf32, #tpu.memory_space<vmem>>, vector<16x16x3xf32>
    tpu.vector_store %arg16[%c1, %c1_12, %c0_13], %9 {strides = array<i32>} : memref<18x18x3xf32, #tpu.memory_space<vmem>>, vector<16x16x3xf32>,
    %cst_14 = arith.constant 0.000000e+00 : f32
    %11 = vector.broadcast %cst_14 : f32 to vector<16x16x8xf32>
    %c0_15 = arith.constant 0 : index
    %c0_16 = arith.constant 0 : index
    %c0_17 = arith.constant 0 : index
    %12 = vector.load %arg16[%c0_15, %c0_16, %c0_17] : memref<18x18x3xf32, #tpu.memory_space<vmem>>, vector<16x16x3xf32>
    %c0_18 = arith.constant 0 : index
    %c0_19 = arith.constant 0 : index
    %c0_20 = arith.constant 0 : index
    %c0_21 = arith.constant 0 : index
    %13 = vector.load %arg4[%c0_18, %c0_19, %c0_20, %c0_21] : memref<3x3x3x8xf32, #tpu.memory_space<vmem>>, vector<1x1x3x8xf32>
    %14 = vector.shape_cast %13 : vector<1x1x3x8xf32> to vector<3x8xf32>
    %cst_22 = arith.constant dense<0.000000e+00> : vector<16x16x8xf32>
    %15 = tpu.matmul %12, %14, %cst_22 {dimension_numbers = #tpu.dot_dimension_numbers<[2], [0], [0, 1], [1], [0, 0, 0, 1, 1, 1], [], []>} : vector<16x16x3xf32>, vector<3x8xf32>, vector<16x16x8xf32> -> vector<16x16x8xf32>
    %16 = arith.addf %11, %15 : vector<16x16x8xf32>
    %c0_23 = arith.constant 0 : index
    %c1_24 = arith.constant 1 : index
    %c0_25 = arith.constant 0 : index
    %17 = vector.load %arg16[%c0_23, %c1_24, %c0_25] : memref<18x18x3xf32, #tpu.memory_space<vmem>>, vector<16x16x3xf32>
    %c0_26 = arith.constant 0 : index
    %c1_27 = arith.constant 1 : index
    %c0_28 = arith.constant 0 : index
    %c0_29 = arith.constant 0 : index
    %18 = vector.load %arg4[%c0_26, %c1_27, %c0_28, %c0_29] : memref<3x3x3x8xf32, #tpu.memory_space<vmem>>, vector<1x1x3x8xf32>
    %19 = vector.shape_cast %18 : vector<1x1x3x8xf32> to vector<3x8xf32>
    %cst_30 = arith.constant dense<0.000000e+00> : vector<16x16x8xf32>
    %20 = tpu.matmul %17, %19, %cst_30 {dimension_numbers = #tpu.dot_dimension_numbers<[2], [0], [0, 1], [1], [0, 0, 0, 1, 1, 1], [], []>} : vector<16x16x3xf32>, vector<3x8xf32>, vector<16x16x8xf32> -> vector<16x16x8xf32>
    %21 = arith.addf %16, %20 : vector<16x16x8xf32>
    %c0_31 = arith.constant 0 : index
    %c2 = arith.constant 2 : index
    %c0_32 = arith.constant 0 : index
    %22 = vector.load %arg16[%c0_31, %c2, %c0_32] : memref<18x18x3xf32, #tpu.memory_space<vmem>>, vector<16x16x3xf32>
    %c0_33 = arith.constant 0 : index
    %c2_34 = arith.constant 2 : index
    %c0_35 = arith.constant 0 : index
    %c0_36 = arith.constant 0 : index
    %23 = vector.load %arg4[%c0_33, %c2_34, %c0_35, %c0_36] : memref<3x3x3x8xf32, #tpu.memory_space<vmem>>, vector<1x1x3x8xf32>
    %24 = vector.shape_cast %23 : vector<1x1x3x8xf32> to vector<3x8xf32>
    %cst_37 = arith.constant dense<0.000000e+00> : vector<16x16x8xf32>
    %25 = tpu.matmul %22, %24, %cst_37 {dimension_numbers = #tpu.dot_dimension_numbers<[2], [0], [0, 1], [1], [0, 0, 0, 1, 1, 1], [], []>} : vector<16x16x3xf32>, vector<3x8xf32>, vector<16x16x8xf32> -> vector<16x16x8xf32>
    %26 = arith.addf %21, %25 : vector<16x16x8xf32>
    %c1_38 = arith.constant 1 : index
    %c0_39 = arith.constant 0 : index
    %c0_40 = arith.constant 0 : index
    %27 = vector.load %arg16[%c1_38, %c0_39, %c0_40] : memref<18x18x3xf32, #tpu.memory_space<vmem>>, vector<16x16x3xf32>
    %c1_41 = arith.constant 1 : index
    %c0_42 = arith.constant 0 : index
    %c0_43 = arith.constant 0 : index
    %c0_44 = arith.constant 0 : index
    %28 = vector.load %arg4[%c1_41, %c0_42, %c0_43, %c0_44] : memref<3x3x3x8xf32, #tpu.memory_space<vmem>>, vector<1x1x3x8xf32>
    %29 = vector.shape_cast %28 : vector<1x1x3x8xf32> to vector<3x8xf32>
    %cst_45 = arith.constant dense<0.000000e+00> : vector<16x16x8xf32>
    %30 = tpu.matmul %27, %29, %cst_45 {dimension_numbers = #tpu.dot_dimension_numbers<[2], [0], [0, 1], [1], [0, 0, 0, 1, 1, 1], [], []>} : vector<16x16x3xf32>, vector<3x8xf32>, vector<16x16x8xf32> -> vector<16x16x8xf32>
    %31 = arith.addf %26, %30 : vector<16x16x8xf32>
    %c1_46 = arith.constant 1 : index
    %c1_47 = arith.constant 1 : index
    %c0_48 = arith.constant 0 : index
    %32 = vector.load %arg16[%c1_46, %c1_47, %c0_48] : memref<18x18x3xf32, #tpu.memory_space<vmem>>, vector<16x16x3xf32>
    %c1_49 = arith.constant 1 : index
    %c1_50 = arith.constant 1 : index
    %c0_51 = arith.constant 0 : index
    %c0_52 = arith.constant 0 : index
    %33 = vector.load %arg4[%c1_49, %c1_50, %c0_51, %c0_52] : memref<3x3x3x8xf32, #tpu.memory_space<vmem>>, vector<1x1x3x8xf32>
    %34 = vector.shape_cast %33 : vector<1x1x3x8xf32> to vector<3x8xf32>
    %cst_53 = arith.constant dense<0.000000e+00> : vector<16x16x8xf32>
    %35 = tpu.matmul %32, %34, %cst_53 {dimension_numbers = #tpu.dot_dimension_numbers<[2], [0], [0, 1], [1], [0, 0, 0, 1, 1, 1], [], []>} : vector<16x16x3xf32>, vector<3x8xf32>, vector<16x16x8xf32> -> vector<16x16x8xf32>
    %36 = arith.addf %31, %35 : vector<16x16x8xf32>
    %c1_54 = arith.constant 1 : index
    %c2_55 = arith.constant 2 : index
    %c0_56 = arith.constant 0 : index
    %37 = vector.load %arg16[%c1_54, %c2_55, %c0_56] : memref<18x18x3xf32, #tpu.memory_space<vmem>>, vector<16x16x3xf32>
    %c1_57 = arith.constant 1 : index
    %c2_58 = arith.constant 2 : index
    %c0_59 = arith.constant 0 : index
    %c0_60 = arith.constant 0 : index
    %38 = vector.load %arg4[%c1_57, %c2_58, %c0_59, %c0_60] : memref<3x3x3x8xf32, #tpu.memory_space<vmem>>, vector<1x1x3x8xf32>
    %39 = vector.shape_cast %38 : vector<1x1x3x8xf32> to vector<3x8xf32>
    %cst_61 = arith.constant dense<0.000000e+00> : vector<16x16x8xf32>
    %40 = tpu.matmul %37, %39, %cst_61 {dimension_numbers = #tpu.dot_dimension_numbers<[2], [0], [0, 1], [1], [0, 0, 0, 1, 1, 1], [], []>} : vector<16x16x3xf32>, vector<3x8xf32>, vector<16x16x8xf32> -> vector<16x16x8xf32>
    %41 = arith.addf %36, %40 : vector<16x16x8xf32>
    %c2_62 = arith.constant 2 : index
    %c0_63 = arith.constant 0 : index
    %c0_64 = arith.constant 0 : index
    %42 = vector.load %arg16[%c2_62, %c0_63, %c0_64] : memref<18x18x3xf32, #tpu.memory_space<vmem>>, vector<16x16x3xf32>
    %c2_65 = arith.constant 2 : index
    %c0_66 = arith.constant 0 : index
    %c0_67 = arith.constant 0 : index
    %c0_68 = arith.constant 0 : index
    %43 = vector.load %arg4[%c2_65, %c0_66, %c0_67, %c0_68] : memref<3x3x3x8xf32, #tpu.memory_space<vmem>>, vector<1x1x3x8xf32>
    %44 = vector.shape_cast %43 : vector<1x1x3x8xf32> to vector<3x8xf32>
    %cst_69 = arith.constant dense<0.000000e+00> : vector<16x16x8xf32>
    %45 = tpu.matmul %42, %44, %cst_69 {dimension_numbers = #tpu.dot_dimension_numbers<[2], [0], [0, 1], [1], [0, 0, 0, 1, 1, 1], [], []>} : vector<16x16x3xf32>, vector<3x8xf32>, vector<16x16x8xf32> -> vector<16x16x8xf32>
    %46 = arith.addf %41, %45 : vector<16x16x8xf32>
    %c2_70 = arith.constant 2 : index
    %c1_71 = arith.constant 1 : index
    %c0_72 = arith.constant 0 : index
    %47 = vector.load %arg16[%c2_70, %c1_71, %c0_72] : memref<18x18x3xf32, #tpu.memory_space<vmem>>, vector<16x16x3xf32>
    %c2_73 = arith.constant 2 : index
    %c1_74 = arith.constant 1 : index
    %c0_75 = arith.constant 0 : index
    %c0_76 = arith.constant 0 : index
    %48 = vector.load %arg4[%c2_73, %c1_74, %c0_75, %c0_76] : memref<3x3x3x8xf32, #tpu.memory_space<vmem>>, vector<1x1x3x8xf32>
    %49 = vector.shape_cast %48 : vector<1x1x3x8xf32> to vector<3x8xf32>
    %cst_77 = arith.constant dense<0.000000e+00> : vector<16x16x8xf32>
    %50 = tpu.matmul %47, %49, %cst_77 {dimension_numbers = #tpu.dot_dimension_numbers<[2], [0], [0, 1], [1], [0, 0, 0, 1, 1, 1], [], []>} : vector<16x16x3xf32>, vector<3x8xf32>, vector<16x16x8xf32> -> vector<16x16x8xf32>
    %51 = arith.addf %46, %50 : vector<16x16x8xf32>
    %c2_78 = arith.constant 2 : index
    %c2_79 = arith.constant 2 : index
    %c0_80 = arith.constant 0 : index
    %52 = vector.load %arg16[%c2_78, %c2_79, %c0_80] : memref<18x18x3xf32, #tpu.memory_space<vmem>>, vector<16x16x3xf32>
    %c2_81 = arith.constant 2 : index
    %c2_82 = arith.constant 2 : index
    %c0_83 = arith.constant 0 : index
    %c0_84 = arith.constant 0 : index
    %53 = vector.load %arg4[%c2_81, %c2_82, %c0_83, %c0_84] : memref<3x3x3x8xf32, #tpu.memory_space<vmem>>, vector<1x1x3x8xf32>
    %54 = vector.shape_cast %53 : vector<1x1x3x8xf32> to vector<3x8xf32>
    %cst_85 = arith.constant dense<0.000000e+00> : vector<16x16x8xf32>
    %55 = tpu.matmul %52, %54, %cst_85 {dimension_numbers = #tpu.dot_dimension_numbers<[2], [0], [0, 1], [1], [0, 0, 0, 1, 1, 1], [], []>} : vector<16x16x3xf32>, vector<3x8xf32>, vector<16x16x8xf32> -> vector<16x16x8xf32>
    %56 = arith.addf %51, %55 : vector<16x16x8xf32>
    %c0_86 = arith.constant 0 : index
    %c0_87 = arith.constant 0 : index
    %c0_88 = arith.constant 0 : index
    %57 = vector.load %arg5[%c0_86, %c0_87, %c0_88] : memref<1x1x8xf32, #tpu.memory_space<vmem>>, vector<1x1x8xf32>
    %58 = vector.broadcast %57 : vector<1x1x8xf32> to vector<16x16x8xf32>
    %59 = arith.addf %56, %58 : vector<16x16x8xf32>
    %cst_89 = arith.constant 0.000000e+00 : f32
    %60 = vector.broadcast %cst_89 : f32 to vector<16x16x8xf32>
    %61 = arith.maximumf %59, %60 : vector<16x16x8xf32>
    %cst_90 = arith.constant 0.000000e+00 : f32
    %62 = vector.broadcast %cst_90 : f32 to vector<18x18x8xf32>
    %c0_91 = arith.constant 0 : index
    %c0_92 = arith.constant 0 : index
    %c0_93 = arith.constant 0 : index
    %63 = vector.load %arg17[%c0_91, %c0_92, %c0_93] : memref<18x18x8xf32, #tpu.memory_space<vmem>>, vector<18x18x8xf32>
    tpu.vector_store %arg17[%c0_91, %c0_92, %c0_93], %62 {strides = array<i32>} : memref<18x18x8xf32, #tpu.memory_space<vmem>>, vector<18x18x8xf32>,
    %c1_94 = arith.constant 1 : index
    %c1_95 = arith.constant 1 : index
    %c0_96 = arith.constant 0 : index
    %64 = vector.load %arg17[%c1_94, %c1_95, %c0_96] : memref<18x18x8xf32, #tpu.memory_space<vmem>>, vector<16x16x8xf32>
    tpu.vector_store %arg17[%c1_94, %c1_95, %c0_96], %61 {strides = array<i32>} : memref<18x18x8xf32, #tpu.memory_space<vmem>>, vector<16x16x8xf32>,
    %cst_97 = arith.constant 0.000000e+00 : f32
    %65 = vector.broadcast %cst_97 : f32 to vector<16x16x8xf32>
    %c0_98 = arith.constant 0 : index
    %c0_99 = arith.constant 0 : index
    %c0_100 = arith.constant 0 : index
    %66 = vector.load %arg17[%c0_98, %c0_99, %c0_100] : memref<18x18x8xf32, #tpu.memory_space<vmem>>, vector<16x16x8xf32>
    %c0_101 = arith.constant 0 : index
    %c0_102 = arith.constant 0 : index
    %c0_103 = arith.constant 0 : index
    %c0_104 = arith.constant 0 : index
    %67 = vector.load %arg6[%c0_101, %c0_102, %c0_103, %c0_104] : memref<3x3x8x8xf32, #tpu.memory_space<vmem>>, vector<1x1x8x8xf32>
    %68 = vector.shape_cast %67 : vector<1x1x8x8xf32> to vector<8x8xf32>
    %cst_105 = arith.constant dense<0.000000e+00> : vector<16x16x8xf32>
    %69 = tpu.matmul %66, %68, %cst_105 {dimension_numbers = #tpu.dot_dimension_numbers<[2], [0], [0, 1], [1], [0, 0, 0, 1, 1, 1], [], []>} : vector<16x16x8xf32>, vector<8x8xf32>, vector<16x16x8xf32> -> vector<16x16x8xf32>
    %70 = arith.addf %65, %69 : vector<16x16x8xf32>
    %c0_106 = arith.constant 0 : index
    %c1_107 = arith.constant 1 : index
    %c0_108 = arith.constant 0 : index
    %71 = vector.load %arg17[%c0_106, %c1_107, %c0_108] : memref<18x18x8xf32, #tpu.memory_space<vmem>>, vector<16x16x8xf32>
    %c0_109 = arith.constant 0 : index
    %c1_110 = arith.constant 1 : index
    %c0_111 = arith.constant 0 : index
    %c0_112 = arith.constant 0 : index
    %72 = vector.load %arg6[%c0_109, %c1_110, %c0_111, %c0_112] : memref<3x3x8x8xf32, #tpu.memory_space<vmem>>, vector<1x1x8x8xf32>
    %73 = vector.shape_cast %72 : vector<1x1x8x8xf32> to vector<8x8xf32>
    %cst_113 = arith.constant dense<0.000000e+00> : vector<16x16x8xf32>
    %74 = tpu.matmul %71, %73, %cst_113 {dimension_numbers = #tpu.dot_dimension_numbers<[2], [0], [0, 1], [1], [0, 0, 0, 1, 1, 1], [], []>} : vector<16x16x8xf32>, vector<8x8xf32>, vector<16x16x8xf32> -> vector<16x16x8xf32>
    %75 = arith.addf %70, %74 : vector<16x16x8xf32>
    %c0_114 = arith.constant 0 : index
    %c2_115 = arith.constant 2 : index
    %c0_116 = arith.constant 0 : index
    %76 = vector.load %arg17[%c0_114, %c2_115, %c0_116] : memref<18x18x8xf32, #tpu.memory_space<vmem>>, vector<16x16x8xf32>
    %c0_117 = arith.constant 0 : index
    %c2_118 = arith.constant 2 : index
    %c0_119 = arith.constant 0 : index
    %c0_120 = arith.constant 0 : index
    %77 = vector.load %arg6[%c0_117, %c2_118, %c0_119, %c0_120] : memref<3x3x8x8xf32, #tpu.memory_space<vmem>>, vector<1x1x8x8xf32>
    %78 = vector.shape_cast %77 : vector<1x1x8x8xf32> to vector<8x8xf32>
    %cst_121 = arith.constant dense<0.000000e+00> : vector<16x16x8xf32>
    %79 = tpu.matmul %76, %78, %cst_121 {dimension_numbers = #tpu.dot_dimension_numbers<[2], [0], [0, 1], [1], [0, 0, 0, 1, 1, 1], [], []>} : vector<16x16x8xf32>, vector<8x8xf32>, vector<16x16x8xf32> -> vector<16x16x8xf32>
    %80 = arith.addf %75, %79 : vector<16x16x8xf32>
    %c1_122 = arith.constant 1 : index
    %c0_123 = arith.constant 0 : index
    %c0_124 = arith.constant 0 : index
    %81 = vector.load %arg17[%c1_122, %c0_123, %c0_124] : memref<18x18x8xf32, #tpu.memory_space<vmem>>, vector<16x16x8xf32>
    %c1_125 = arith.constant 1 : index
    %c0_126 = arith.constant 0 : index
    %c0_127 = arith.constant 0 : index
    %c0_128 = arith.constant 0 : index
    %82 = vector.load %arg6[%c1_125, %c0_126, %c0_127, %c0_128] : memref<3x3x8x8xf32, #tpu.memory_space<vmem>>, vector<1x1x8x8xf32>
    %83 = vector.shape_cast %82 : vector<1x1x8x8xf32> to vector<8x8xf32>
    %cst_129 = arith.constant dense<0.000000e+00> : vector<16x16x8xf32>
    %84 = tpu.matmul %81, %83, %cst_129 {dimension_numbers = #tpu.dot_dimension_numbers<[2], [0], [0, 1], [1], [0, 0, 0, 1, 1, 1], [], []>} : vector<16x16x8xf32>, vector<8x8xf32>, vector<16x16x8xf32> -> vector<16x16x8xf32>
    %85 = arith.addf %80, %84 : vector<16x16x8xf32>
    %c1_130 = arith.constant 1 : index
    %c1_131 = arith.constant 1 : index
    %c0_132 = arith.constant 0 : index
    %86 = vector.load %arg17[%c1_130, %c1_131, %c0_132] : memref<18x18x8xf32, #tpu.memory_space<vmem>>, vector<16x16x8xf32>
    %c1_133 = arith.constant 1 : index
    %c1_134 = arith.constant 1 : index
    %c0_135 = arith.constant 0 : index
    %c0_136 = arith.constant 0 : index
    %87 = vector.load %arg6[%c1_133, %c1_134, %c0_135, %c0_136] : memref<3x3x8x8xf32, #tpu.memory_space<vmem>>, vector<1x1x8x8xf32>
    %88 = vector.shape_cast %87 : vector<1x1x8x8xf32> to vector<8x8xf32>
    %cst_137 = arith.constant dense<0.000000e+00> : vector<16x16x8xf32>
    %89 = tpu.matmul %86, %88, %cst_137 {dimension_numbers = #tpu.dot_dimension_numbers<[2], [0], [0, 1], [1], [0, 0, 0, 1, 1, 1], [], []>} : vector<16x16x8xf32>, vector<8x8xf32>, vector<16x16x8xf32> -> vector<16x16x8xf32>
    %90 = arith.addf %85, %89 : vector<16x16x8xf32>
    %c1_138 = arith.constant 1 : index
    %c2_139 = arith.constant 2 : index
    %c0_140 = arith.constant 0 : index
    %91 = vector.load %arg17[%c1_138, %c2_139, %c0_140] : memref<18x18x8xf32, #tpu.memory_space<vmem>>, vector<16x16x8xf32>
    %c1_141 = arith.constant 1 : index
    %c2_142 = arith.constant 2 : index
    %c0_143 = arith.constant 0 : index
    %c0_144 = arith.constant 0 : index
    %92 = vector.load %arg6[%c1_141, %c2_142, %c0_143, %c0_144] : memref<3x3x8x8xf32, #tpu.memory_space<vmem>>, vector<1x1x8x8xf32>
    %93 = vector.shape_cast %92 : vector<1x1x8x8xf32> to vector<8x8xf32>
    %cst_145 = arith.constant dense<0.000000e+00> : vector<16x16x8xf32>
    %94 = tpu.matmul %91, %93, %cst_145 {dimension_numbers = #tpu.dot_dimension_numbers<[2], [0], [0, 1], [1], [0, 0, 0, 1, 1, 1], [], []>} : vector<16x16x8xf32>, vector<8x8xf32>, vector<16x16x8xf32> -> vector<16x16x8xf32>
    %95 = arith.addf %90, %94 : vector<16x16x8xf32>
    %c2_146 = arith.constant 2 : index
    %c0_147 = arith.constant 0 : index
    %c0_148 = arith.constant 0 : index
    %96 = vector.load %arg17[%c2_146, %c0_147, %c0_148] : memref<18x18x8xf32, #tpu.memory_space<vmem>>, vector<16x16x8xf32>
    %c2_149 = arith.constant 2 : index
    %c0_150 = arith.constant 0 : index
    %c0_151 = arith.constant 0 : index
    %c0_152 = arith.constant 0 : index
    %97 = vector.load %arg6[%c2_149, %c0_150, %c0_151, %c0_152] : memref<3x3x8x8xf32, #tpu.memory_space<vmem>>, vector<1x1x8x8xf32>
    %98 = vector.shape_cast %97 : vector<1x1x8x8xf32> to vector<8x8xf32>
    %cst_153 = arith.constant dense<0.000000e+00> : vector<16x16x8xf32>
    %99 = tpu.matmul %96, %98, %cst_153 {dimension_numbers = #tpu.dot_dimension_numbers<[2], [0], [0, 1], [1], [0, 0, 0, 1, 1, 1], [], []>} : vector<16x16x8xf32>, vector<8x8xf32>, vector<16x16x8xf32> -> vector<16x16x8xf32>
    %100 = arith.addf %95, %99 : vector<16x16x8xf32>
    %c2_154 = arith.constant 2 : index
    %c1_155 = arith.constant 1 : index
    %c0_156 = arith.constant 0 : index
    %101 = vector.load %arg17[%c2_154, %c1_155, %c0_156] : memref<18x18x8xf32, #tpu.memory_space<vmem>>, vector<16x16x8xf32>
    %c2_157 = arith.constant 2 : index
    %c1_158 = arith.constant 1 : index
    %c0_159 = arith.constant 0 : index
    %c0_160 = arith.constant 0 : index
    %102 = vector.load %arg6[%c2_157, %c1_158, %c0_159, %c0_160] : memref<3x3x8x8xf32, #tpu.memory_space<vmem>>, vector<1x1x8x8xf32>
    %103 = vector.shape_cast %102 : vector<1x1x8x8xf32> to vector<8x8xf32>
    %cst_161 = arith.constant dense<0.000000e+00> : vector<16x16x8xf32>
    %104 = tpu.matmul %101, %103, %cst_161 {dimension_numbers = #tpu.dot_dimension_numbers<[2], [0], [0, 1], [1], [0, 0, 0, 1, 1, 1], [], []>} : vector<16x16x8xf32>, vector<8x8xf32>, vector<16x16x8xf32> -> vector<16x16x8xf32>
    %105 = arith.addf %100, %104 : vector<16x16x8xf32>
    %c2_162 = arith.constant 2 : index
    %c2_163 = arith.constant 2 : index
    %c0_164 = arith.constant 0 : index
    %106 = vector.load %arg17[%c2_162, %c2_163, %c0_164] : memref<18x18x8xf32, #tpu.memory_space<vmem>>, vector<16x16x8xf32>
    %c2_165 = arith.constant 2 : index
    %c2_166 = arith.constant 2 : index
    %c0_167 = arith.constant 0 : index
    %c0_168 = arith.constant 0 : index
    %107 = vector.load %arg6[%c2_165, %c2_166, %c0_167, %c0_168] : memref<3x3x8x8xf32, #tpu.memory_space<vmem>>, vector<1x1x8x8xf32>
    %108 = vector.shape_cast %107 : vector<1x1x8x8xf32> to vector<8x8xf32>
    %cst_169 = arith.constant dense<0.000000e+00> : vector<16x16x8xf32>
    %109 = tpu.matmul %106, %108, %cst_169 {dimension_numbers = #tpu.dot_dimension_numbers<[2], [0], [0, 1], [1], [0, 0, 0, 1, 1, 1], [], []>} : vector<16x16x8xf32>, vector<8x8xf32>, vector<16x16x8xf32> -> vector<16x16x8xf32>
    %110 = arith.addf %105, %109 : vector<16x16x8xf32>
    %c0_170 = arith.constant 0 : index
    %c0_171 = arith.constant 0 : index
    %c0_172 = arith.constant 0 : index
    %111 = vector.load %arg7[%c0_170, %c0_171, %c0_172] : memref<1x1x8xf32, #tpu.memory_space<vmem>>, vector<1x1x8xf32>
    %112 = vector.broadcast %111 : vector<1x1x8xf32> to vector<16x16x8xf32>
    %113 = arith.addf %110, %112 : vector<16x16x8xf32>
    %cst_173 = arith.constant 0.000000e+00 : f32
    %114 = vector.broadcast %cst_173 : f32 to vector<16x16x8xf32>
    %115 = arith.maximumf %113, %114 : vector<16x16x8xf32>
    %cst_174 = arith.constant 0.000000e+00 : f32
    %116 = vector.broadcast %cst_174 : f32 to vector<18x18x8xf32>
    %c0_175 = arith.constant 0 : index
    %c0_176 = arith.constant 0 : index
    %c0_177 = arith.constant 0 : index
    %117 = vector.load %arg18[%c0_175, %c0_176, %c0_177] : memref<18x18x8xf32, #tpu.memory_space<vmem>>, vector<18x18x8xf32>
    tpu.vector_store %arg18[%c0_175, %c0_176, %c0_177], %116 {strides = array<i32>} : memref<18x18x8xf32, #tpu.memory_space<vmem>>, vector<18x18x8xf32>,
    %c1_178 = arith.constant 1 : index
    %c1_179 = arith.constant 1 : index
    %c0_180 = arith.constant 0 : index
    %118 = vector.load %arg18[%c1_178, %c1_179, %c0_180] : memref<18x18x8xf32, #tpu.memory_space<vmem>>, vector<16x16x8xf32>
    tpu.vector_store %arg18[%c1_178, %c1_179, %c0_180], %115 {strides = array<i32>} : memref<18x18x8xf32, #tpu.memory_space<vmem>>, vector<16x16x8xf32>,
    %cst_181 = arith.constant 0.000000e+00 : f32
    %119 = vector.broadcast %cst_181 : f32 to vector<16x16x32xf32>
    %c0_182 = arith.constant 0 : index
    %c0_183 = arith.constant 0 : index
    %c0_184 = arith.constant 0 : index
    %120 = vector.load %arg18[%c0_182, %c0_183, %c0_184] : memref<18x18x8xf32, #tpu.memory_space<vmem>>, vector<16x16x8xf32>
    %c0_185 = arith.constant 0 : index
    %c0_186 = arith.constant 0 : index
    %c0_187 = arith.constant 0 : index
    %c0_188 = arith.constant 0 : index
    %121 = vector.load %arg8[%c0_185, %c0_186, %c0_187, %c0_188] : memref<3x3x8x32xf32, #tpu.memory_space<vmem>>, vector<1x1x8x32xf32>
    %122 = vector.shape_cast %121 : vector<1x1x8x32xf32> to vector<8x32xf32>
    %cst_189 = arith.constant dense<0.000000e+00> : vector<16x16x32xf32>
    %123 = tpu.matmul %120, %122, %cst_189 {dimension_numbers = #tpu.dot_dimension_numbers<[2], [0], [0, 1], [1], [0, 0, 0, 1, 1, 1], [], []>} : vector<16x16x8xf32>, vector<8x32xf32>, vector<16x16x32xf32> -> vector<16x16x32xf32>
    %124 = arith.addf %119, %123 : vector<16x16x32xf32>
    %c0_190 = arith.constant 0 : index
    %c1_191 = arith.constant 1 : index
    %c0_192 = arith.constant 0 : index
    %125 = vector.load %arg18[%c0_190, %c1_191, %c0_192] : memref<18x18x8xf32, #tpu.memory_space<vmem>>, vector<16x16x8xf32>
    %c0_193 = arith.constant 0 : index
    %c1_194 = arith.constant 1 : index
    %c0_195 = arith.constant 0 : index
    %c0_196 = arith.constant 0 : index
    %126 = vector.load %arg8[%c0_193, %c1_194, %c0_195, %c0_196] : memref<3x3x8x32xf32, #tpu.memory_space<vmem>>, vector<1x1x8x32xf32>
    %127 = vector.shape_cast %126 : vector<1x1x8x32xf32> to vector<8x32xf32>
    %cst_197 = arith.constant dense<0.000000e+00> : vector<16x16x32xf32>
    %128 = tpu.matmul %125, %127, %cst_197 {dimension_numbers = #tpu.dot_dimension_numbers<[2], [0], [0, 1], [1], [0, 0, 0, 1, 1, 1], [], []>} : vector<16x16x8xf32>, vector<8x32xf32>, vector<16x16x32xf32> -> vector<16x16x32xf32>
    %129 = arith.addf %124, %128 : vector<16x16x32xf32>
    %c0_198 = arith.constant 0 : index
    %c2_199 = arith.constant 2 : index
    %c0_200 = arith.constant 0 : index
    %130 = vector.load %arg18[%c0_198, %c2_199, %c0_200] : memref<18x18x8xf32, #tpu.memory_space<vmem>>, vector<16x16x8xf32>
    %c0_201 = arith.constant 0 : index
    %c2_202 = arith.constant 2 : index
    %c0_203 = arith.constant 0 : index
    %c0_204 = arith.constant 0 : index
    %131 = vector.load %arg8[%c0_201, %c2_202, %c0_203, %c0_204] : memref<3x3x8x32xf32, #tpu.memory_space<vmem>>, vector<1x1x8x32xf32>
    %132 = vector.shape_cast %131 : vector<1x1x8x32xf32> to vector<8x32xf32>
    %cst_205 = arith.constant dense<0.000000e+00> : vector<16x16x32xf32>
    %133 = tpu.matmul %130, %132, %cst_205 {dimension_numbers = #tpu.dot_dimension_numbers<[2], [0], [0, 1], [1], [0, 0, 0, 1, 1, 1], [], []>} : vector<16x16x8xf32>, vector<8x32xf32>, vector<16x16x32xf32> -> vector<16x16x32xf32>
    %134 = arith.addf %129, %133 : vector<16x16x32xf32>
    %c1_206 = arith.constant 1 : index
    %c0_207 = arith.constant 0 : index
    %c0_208 = arith.constant 0 : index
    %135 = vector.load %arg18[%c1_206, %c0_207, %c0_208] : memref<18x18x8xf32, #tpu.memory_space<vmem>>, vector<16x16x8xf32>
    %c1_209 = arith.constant 1 : index
    %c0_210 = arith.constant 0 : index
    %c0_211 = arith.constant 0 : index
    %c0_212 = arith.constant 0 : index
    %136 = vector.load %arg8[%c1_209, %c0_210, %c0_211, %c0_212] : memref<3x3x8x32xf32, #tpu.memory_space<vmem>>, vector<1x1x8x32xf32>
    %137 = vector.shape_cast %136 : vector<1x1x8x32xf32> to vector<8x32xf32>
    %cst_213 = arith.constant dense<0.000000e+00> : vector<16x16x32xf32>
    %138 = tpu.matmul %135, %137, %cst_213 {dimension_numbers = #tpu.dot_dimension_numbers<[2], [0], [0, 1], [1], [0, 0, 0, 1, 1, 1], [], []>} : vector<16x16x8xf32>, vector<8x32xf32>, vector<16x16x32xf32> -> vector<16x16x32xf32>
    %139 = arith.addf %134, %138 : vector<16x16x32xf32>
    %c1_214 = arith.constant 1 : index
    %c1_215 = arith.constant 1 : index
    %c0_216 = arith.constant 0 : index
    %140 = vector.load %arg18[%c1_214, %c1_215, %c0_216] : memref<18x18x8xf32, #tpu.memory_space<vmem>>, vector<16x16x8xf32>
    %c1_217 = arith.constant 1 : index
    %c1_218 = arith.constant 1 : index
    %c0_219 = arith.constant 0 : index
    %c0_220 = arith.constant 0 : index
    %141 = vector.load %arg8[%c1_217, %c1_218, %c0_219, %c0_220] : memref<3x3x8x32xf32, #tpu.memory_space<vmem>>, vector<1x1x8x32xf32>
    %142 = vector.shape_cast %141 : vector<1x1x8x32xf32> to vector<8x32xf32>
    %cst_221 = arith.constant dense<0.000000e+00> : vector<16x16x32xf32>
    %143 = tpu.matmul %140, %142, %cst_221 {dimension_numbers = #tpu.dot_dimension_numbers<[2], [0], [0, 1], [1], [0, 0, 0, 1, 1, 1], [], []>} : vector<16x16x8xf32>, vector<8x32xf32>, vector<16x16x32xf32> -> vector<16x16x32xf32>
    %144 = arith.addf %139, %143 : vector<16x16x32xf32>
    %c1_222 = arith.constant 1 : index
    %c2_223 = arith.constant 2 : index
    %c0_224 = arith.constant 0 : index
    %145 = vector.load %arg18[%c1_222, %c2_223, %c0_224] : memref<18x18x8xf32, #tpu.memory_space<vmem>>, vector<16x16x8xf32>
    %c1_225 = arith.constant 1 : index
    %c2_226 = arith.constant 2 : index
    %c0_227 = arith.constant 0 : index
    %c0_228 = arith.constant 0 : index
    %146 = vector.load %arg8[%c1_225, %c2_226, %c0_227, %c0_228] : memref<3x3x8x32xf32, #tpu.memory_space<vmem>>, vector<1x1x8x32xf32>
    %147 = vector.shape_cast %146 : vector<1x1x8x32xf32> to vector<8x32xf32>
    %cst_229 = arith.constant dense<0.000000e+00> : vector<16x16x32xf32>
    %148 = tpu.matmul %145, %147, %cst_229 {dimension_numbers = #tpu.dot_dimension_numbers<[2], [0], [0, 1], [1], [0, 0, 0, 1, 1, 1], [], []>} : vector<16x16x8xf32>, vector<8x32xf32>, vector<16x16x32xf32> -> vector<16x16x32xf32>
    %149 = arith.addf %144, %148 : vector<16x16x32xf32>
    %c2_230 = arith.constant 2 : index
    %c0_231 = arith.constant 0 : index
    %c0_232 = arith.constant 0 : index
    %150 = vector.load %arg18[%c2_230, %c0_231, %c0_232] : memref<18x18x8xf32, #tpu.memory_space<vmem>>, vector<16x16x8xf32>
    %c2_233 = arith.constant 2 : index
    %c0_234 = arith.constant 0 : index
    %c0_235 = arith.constant 0 : index
    %c0_236 = arith.constant 0 : index
    %151 = vector.load %arg8[%c2_233, %c0_234, %c0_235, %c0_236] : memref<3x3x8x32xf32, #tpu.memory_space<vmem>>, vector<1x1x8x32xf32>
    %152 = vector.shape_cast %151 : vector<1x1x8x32xf32> to vector<8x32xf32>
    %cst_237 = arith.constant dense<0.000000e+00> : vector<16x16x32xf32>
    %153 = tpu.matmul %150, %152, %cst_237 {dimension_numbers = #tpu.dot_dimension_numbers<[2], [0], [0, 1], [1], [0, 0, 0, 1, 1, 1], [], []>} : vector<16x16x8xf32>, vector<8x32xf32>, vector<16x16x32xf32> -> vector<16x16x32xf32>
    %154 = arith.addf %149, %153 : vector<16x16x32xf32>
    %c2_238 = arith.constant 2 : index
    %c1_239 = arith.constant 1 : index
    %c0_240 = arith.constant 0 : index
    %155 = vector.load %arg18[%c2_238, %c1_239, %c0_240] : memref<18x18x8xf32, #tpu.memory_space<vmem>>, vector<16x16x8xf32>
    %c2_241 = arith.constant 2 : index
    %c1_242 = arith.constant 1 : index
    %c0_243 = arith.constant 0 : index
    %c0_244 = arith.constant 0 : index
    %156 = vector.load %arg8[%c2_241, %c1_242, %c0_243, %c0_244] : memref<3x3x8x32xf32, #tpu.memory_space<vmem>>, vector<1x1x8x32xf32>
    %157 = vector.shape_cast %156 : vector<1x1x8x32xf32> to vector<8x32xf32>
    %cst_245 = arith.constant dense<0.000000e+00> : vector<16x16x32xf32>
    %158 = tpu.matmul %155, %157, %cst_245 {dimension_numbers = #tpu.dot_dimension_numbers<[2], [0], [0, 1], [1], [0, 0, 0, 1, 1, 1], [], []>} : vector<16x16x8xf32>, vector<8x32xf32>, vector<16x16x32xf32> -> vector<16x16x32xf32>
    %159 = arith.addf %154, %158 : vector<16x16x32xf32>
    %c2_246 = arith.constant 2 : index
    %c2_247 = arith.constant 2 : index
    %c0_248 = arith.constant 0 : index
    %160 = vector.load %arg18[%c2_246, %c2_247, %c0_248] : memref<18x18x8xf32, #tpu.memory_space<vmem>>, vector<16x16x8xf32>
    %c2_249 = arith.constant 2 : index
    %c2_250 = arith.constant 2 : index
    %c0_251 = arith.constant 0 : index
    %c0_252 = arith.constant 0 : index
    %161 = vector.load %arg8[%c2_249, %c2_250, %c0_251, %c0_252] : memref<3x3x8x32xf32, #tpu.memory_space<vmem>>, vector<1x1x8x32xf32>
    %162 = vector.shape_cast %161 : vector<1x1x8x32xf32> to vector<8x32xf32>
    %cst_253 = arith.constant dense<0.000000e+00> : vector<16x16x32xf32>
    %163 = tpu.matmul %160, %162, %cst_253 {dimension_numbers = #tpu.dot_dimension_numbers<[2], [0], [0, 1], [1], [0, 0, 0, 1, 1, 1], [], []>} : vector<16x16x8xf32>, vector<8x32xf32>, vector<16x16x32xf32> -> vector<16x16x32xf32>
    %164 = arith.addf %159, %163 : vector<16x16x32xf32>
    %c0_254 = arith.constant 0 : index
    %c0_255 = arith.constant 0 : index
    %c0_256 = arith.constant 0 : index
    %165 = vector.load %arg9[%c0_254, %c0_255, %c0_256] : memref<1x1x32xf32, #tpu.memory_space<vmem>>, vector<1x1x32xf32>
    %166 = vector.broadcast %165 : vector<1x1x32xf32> to vector<16x16x32xf32>
    %167 = arith.addf %164, %166 : vector<16x16x32xf32>
    %cst_257 = arith.constant 0.000000e+00 : f32
    %168 = vector.broadcast %cst_257 : f32 to vector<16x16x32xf32>
    %169 = arith.maximumf %167, %168 : vector<16x16x32xf32>
    %170 = vector.shape_cast %169 : vector<16x16x32xf32> to vector<256x32xf32>
    %171 = tpu.transpose %170, [1, 0] : vector<256x32xf32> -> vector<32x256xf32>
    %c0_258 = arith.constant 0 : index
    %c0_259 = arith.constant 0 : index
    %172 = vector.load %arg10[%c0_258, %c0_259] : memref<3x16xf32, #tpu.memory_space<vmem>>, vector<3x16xf32>
    %173 = vector.extract_strided_slice %171 {offsets = [0, 0], sizes = [16, 256], strides = [1, 1]} : vector<32x256xf32> to vector<16x256xf32>
    %cst_260 = arith.constant dense<0.000000e+00> : vector<3x256xf32>
    %174 = tpu.matmul %172, %173, %cst_260 {dimension_numbers = #tpu.dot_dimension_numbers<[1], [0], [0], [1], [0, 0, 1, 1], [], []>} : vector<3x16xf32>, vector<16x256xf32>, vector<3x256xf32> -> vector<3x256xf32>
    %c0_261 = arith.constant 0 : index
    %c0_262 = arith.constant 0 : index
    %175 = vector.load %arg11[%c0_261, %c0_262] : memref<3x1xf32, #tpu.memory_space<vmem>>, vector<3x1xf32>
    %176 = vector.broadcast %175 : vector<3x1xf32> to vector<3x256xf32>
    %177 = arith.addf %174, %176 : vector<3x256xf32>
    %178 = arith.negf %177 : vector<3x256xf32>
    %179 = math.exp %178 : vector<3x256xf32>
    %cst_263 = arith.constant 1.000000e+00 : f32
    %180 = vector.broadcast %cst_263 : f32 to vector<3x256xf32>
    %181 = arith.addf %180, %179 : vector<3x256xf32>
    %182 = arith.divf %180, %181 : vector<3x256xf32>
    %cst_264 = arith.constant 9.99999974E-5 : f32
    %cst_265 = arith.constant 0.999899983 : f32
    %183 = vector.broadcast %cst_264 : f32 to vector<3x256xf32>
    %184 = arith.maximumf %183, %182 : vector<3x256xf32>
    %185 = vector.broadcast %cst_265 : f32 to vector<3x256xf32>
    %186 = arith.minimumf %185, %184 : vector<3x256xf32>
    %c0_266 = arith.constant 0 : index
    %c0_267 = arith.constant 0 : index
    %c0_268 = arith.constant 0 : index
    %187 = vector.load %arg14[%c0_266, %c0_267, %c0_268] : memref<1x3x256xf32, #tpu.memory_space<vmem>>, vector<1x3x256xf32>
    %188 = vector.shape_cast %187 : vector<1x3x256xf32> to vector<3x256xf32>
    %189 = vector.shape_cast %186 : vector<3x256xf32> to vector<1x3x256xf32>
    tpu.vector_store %arg14[%c0_266, %c0_267, %c0_268], %189 {strides = array<i32>} : memref<1x3x256xf32, #tpu.memory_space<vmem>>, vector<1x3x256xf32>,
    %c0_269 = arith.constant 0 : index
    %c0_270 = arith.constant 0 : index
    %190 = vector.load %arg12[%c0_269, %c0_270] : memref<8x16xf32, #tpu.memory_space<vmem>>, vector<8x16xf32>
    %191 = vector.extract_strided_slice %171 {offsets = [16, 0], sizes = [16, 256], strides = [1, 1]} : vector<32x256xf32> to vector<16x256xf32>
    %cst_271 = arith.constant dense<0.000000e+00> : vector<8x256xf32>
    %192 = tpu.matmul %190, %191, %cst_271 {dimension_numbers = #tpu.dot_dimension_numbers<[1], [0], [0], [1], [0, 0, 1, 1], [], []>} : vector<8x16xf32>, vector<16x256xf32>, vector<8x256xf32> -> vector<8x256xf32>
    %c0_272 = arith.constant 0 : index
    %c0_273 = arith.constant 0 : index
    %193 = vector.load %arg13[%c0_272, %c0_273] : memref<8x1xf32, #tpu.memory_space<vmem>>, vector<8x1xf32>
    %194 = vector.broadcast %193 : vector<8x1xf32> to vector<8x256xf32>
    %195 = arith.addf %192, %194 : vector<8x256xf32>
    %c0_274 = arith.constant 0 : index
    %c0_275 = arith.constant 0 : index
    %c0_276 = arith.constant 0 : index
    %196 = vector.load %arg15[%c0_274, %c0_275, %c0_276] : memref<1x8x256xf32, #tpu.memory_space<vmem>>, vector<1x8x256xf32>
    %197 = vector.shape_cast %196 : vector<1x8x256xf32> to vector<8x256xf32>
    %198 = vector.shape_cast %195 : vector<8x256xf32> to vector<1x8x256xf32>
    tpu.vector_store %arg15[%c0_274, %c0_275, %c0_276], %198 {strides = array<i32>} : memref<1x8x256xf32, #tpu.memory_space<vmem>>, vector<1x8x256xf32>,
    return
  }
  func.func @transform_0(%arg0: i32) -> (i32, i32, i32, i32) {
    %c0_i32 = arith.constant 0 : i32
    %c0_i32_0 = arith.constant 0 : i32
    %c0_i32_1 = arith.constant 0 : i32
    %c0_i32_2 = arith.constant 0 : i32
    return %arg0, %c0_i32, %c0_i32_0, %c0_i32_1 : i32, i32, i32, i32
  }
  func.func @transform_1(%arg0: i32) -> (i32, i32, i32) {
    %c0_i32 = arith.constant 0 : i32
    %c0_i32_0 = arith.constant 0 : i32
    %c0_i32_1 = arith.constant 0 : i32
    %c0_i32_2 = arith.constant 0 : i32
    return %c0_i32, %c0_i32_0, %c0_i32_1 : i32, i32, i32
  }
  func.func @transform_2(%arg0: i32) -> (i32, i32, i32) {
    %c0_i32 = arith.constant 0 : i32
    %c0_i32_0 = arith.constant 0 : i32
    %c0_i32_1 = arith.constant 0 : i32
    %c0_i32_2 = arith.constant 0 : i32
    return %c0_i32, %c0_i32_0, %c0_i32_1 : i32, i32, i32
  }
  func.func @transform_3(%arg0: i32) -> (i32, i32, i32, i32) {
    %c0_i32 = arith.constant 0 : i32
    %c0_i32_0 = arith.constant 0 : i32
    %c0_i32_1 = arith.constant 0 : i32
    %c0_i32_2 = arith.constant 0 : i32
    %c0_i32_3 = arith.constant 0 : i32
    return %c0_i32, %c0_i32_0, %c0_i32_1, %c0_i32_2 : i32, i32, i32, i32
  }
  func.func @transform_4(%arg0: i32) -> (i32, i32, i32) {
    %c0_i32 = arith.constant 0 : i32
    %c0_i32_0 = arith.constant 0 : i32
    %c0_i32_1 = arith.constant 0 : i32
    %c0_i32_2 = arith.constant 0 : i32
    return %c0_i32, %c0_i32_0, %c0_i32_1 : i32, i32, i32
  }
  func.func @transform_5(%arg0: i32) -> (i32, i32, i32, i32) {
    %c0_i32 = arith.constant 0 : i32
    %c0_i32_0 = arith.constant 0 : i32
    %c0_i32_1 = arith.constant 0 : i32
    %c0_i32_2 = arith.constant 0 : i32
    %c0_i32_3 = arith.constant 0 : i32
    return %c0_i32, %c0_i32_0, %c0_i32_1, %c0_i32_2 : i32, i32, i32, i32
  }
  func.func @transform_6(%arg0: i32) -> (i32, i32, i32) {
    %c0_i32 = arith.constant 0 : i32
    %c0_i32_0 = arith.constant 0 : i32
    %c0_i32_1 = arith.constant 0 : i32
    %c0_i32_2 = arith.constant 0 : i32
    return %c0_i32, %c0_i32_0, %c0_i32_1 : i32, i32, i32
  }
  func.func @transform_7(%arg0: i32) -> (i32, i32, i32, i32) {
    %c0_i32 = arith.constant 0 : i32
    %c0_i32_0 = arith.constant 0 : i32
    %c0_i32_1 = arith.constant 0 : i32
    %c0_i32_2 = arith.constant 0 : i32
    %c0_i32_3 = arith.constant 0 : i32
    return %c0_i32, %c0_i32_0, %c0_i32_1, %c0_i32_2 : i32, i32, i32, i32
  }
  func.func @transform_8(%arg0: i32) -> (i32, i32, i32) {
    %c0_i32 = arith.constant 0 : i32
    %c0_i32_0 = arith.constant 0 : i32
    %c0_i32_1 = arith.constant 0 : i32
    %c0_i32_2 = arith.constant 0 : i32
    return %c0_i32, %c0_i32_0, %c0_i32_1 : i32, i32, i32
  }
  func.func @transform_9(%arg0: i32) -> (i32, i32) {
    %c0_i32 = arith.constant 0 : i32
    %c0_i32_0 = arith.constant 0 : i32
    %c0_i32_1 = arith.constant 0 : i32
    return %c0_i32, %c0_i32_0 : i32, i32
  }
  func.func @transform_10(%arg0: i32) -> (i32, i32) {
    %c0_i32 = arith.constant 0 : i32
    %c0_i32_0 = arith.constant 0 : i32
    %c0_i32_1 = arith.constant 0 : i32
    return %c0_i32, %c0_i32_0 : i32, i32
  }
  func.func @transform_11(%arg0: i32) -> (i32, i32) {
    %c0_i32 = arith.constant 0 : i32
    %c0_i32_0 = arith.constant 0 : i32
    %c0_i32_1 = arith.constant 0 : i32
    return %c0_i32, %c0_i32_0 : i32, i32
  }
  func.func @transform_12(%arg0: i32) -> (i32, i32) {
    %c0_i32 = arith.constant 0 : i32
    %c0_i32_0 = arith.constant 0 : i32
    %c0_i32_1 = arith.constant 0 : i32
    return %c0_i32, %c0_i32_0 : i32, i32
  }
  func.func @transform_13(%arg0: i32) -> (i32, i32, i32) {
    %c0_i32 = arith.constant 0 : i32
    %c0_i32_0 = arith.constant 0 : i32
    %c0_i32_1 = arith.constant 0 : i32
    return %arg0, %c0_i32, %c0_i32_0 : i32, i32, i32
  }
  func.func @transform_14(%arg0: i32) -> (i32, i32, i32) {
    %c0_i32 = arith.constant 0 : i32
    %c0_i32_0 = arith.constant 0 : i32
    %c0_i32_1 = arith.constant 0 : i32
    return %arg0, %c0_i32, %c0_i32_0 : i32, i32, i32
  }
}

</mosaic_0001>

<bundles_post_ra>
// kernel: tpu_custom_call.1
= control target key start
LH: loop header
LB: loop body
LE: loop exit
PB: predicated region body
PF: predicated region fallthrough
CT: control target
= control target key end

     0   :  { %s19662_s0 = inlined_call_operand.vmem [shape: f32[2,16,16,3], index: 0, kind: input, shape index: {}]   ;;  %s19663_s1 = inlined_call_operand.vmem [shape: f32[1,1,3], index: 1, kind: input, shape index: {}]   ;;  %s19664_s2 = inlined_call_operand.vmem [shape: f32[1,1,3], index: 2, kind: input, shape index: {}]   ;;  %s19665_s3 = inlined_call_operand.vmem [shape: f32[3,3,3,8], index: 3, kind: input, shape index: {}]   ;;  %s19666_s4 = inlined_call_operand.vmem [shape: f32[1,1,8], index: 4, kind: input, shape index: {}]   ;;  %s19667_s5 = inlined_call_operand.vmem [shape: f32[3,3,8,8], index: 5, kind: input, shape index: {}]   ;;  %s19668_s6 = inlined_call_operand.vmem [shape: f32[1,1,8], index: 6, kind: input, shape index: {}]   ;;  %s19669_s7 = inlined_call_operand.vmem [shape: f32[3,3,8,32], index: 7, kind: input, shape index: {}]   ;;  %s19670_s8 = inlined_call_operand.vmem [shape: f32[1,1,32], index: 8, kind: input, shape index: {}]   ;;  %s19671_s9 = inlined_call_operand.vmem [shape: f32[3,16], index: 9, kind: input, shape index: {}]   ;;  %s19672_s10 = inlined_call_operand.vmem [shape: f32[3,1], index: 10, kind: input, shape index: {}]   ;;  %s19673_s11 = inlined_call_operand.vmem [shape: f32[8,16], index: 11, kind: input, shape index: {}]   ;;  %s19674_s12 = inlined_call_operand.vmem [shape: f32[8,1], index: 12, kind: input, shape index: {}]   ;;  %s19675_s13 = inlined_call_operand.vmem [shape: f32[2,3,256], index: 13, kind: output, shape index: {0}]   ;;  %s19676_s14 = inlined_call_operand.hbm [shape: f32[2,8,256], index: 14, kind: output, shape index: {1}]  }
   0x1   :  { %19825 = sst [smem:[#allocation45_spill]] %s19662_s0 }
   0x2   :  { %19826 = sst [smem:[#allocation46_spill]] %s19663_s1 }
   0x3   :  { %19827 = sst [smem:[#allocation47_spill]] %s19664_s2 }
   0x4   :  { %20 = vsyncpa [#allocation6], 0 }
   0x5   :  { %22 = vsyncpa [#allocation6 + $0x1], 0  ;;  %s16304_s29 = smov 0   ;;  %s16306_s30 = smov 0  }
   0x6   :  { %s16308_s15 = smov 0   ;;  %s16310_s16 = smov 0  }
   0x7 LB: > { %19828 = sst [smem:[#allocation8_spill]] %s16219_s15  ;;  %s16325_s17 = sadd.s32 4294967295, %s16223_s16   ;;  %s16223_s16 = sphi %s16310_s16, %s20061_s16   ;;  %s16219_s15 = sphi %s16308_s15, %s20058_s15   ;;  %s16215_s30 = sphi %s16306_s30, %s20060_s30   ;;  %s16211_s29 = sphi %s16304_s29, %s20059_s29  }
   0x8   : > { %s11869_s18 = sadd.s32 4294967294, %s16223_s16   ;;  %s16329_s19 = sadd.s32 1, %s16223_s16  }
   0x9   : > { %s339_s20 = sadd.s32 1, %s16219_s15  ;;  %s336_s21 = ssub.s32 %s16223_s16, %s16329_s19 }
   0xa   : > { %p349_p0 = scmp.ne.s32.totalorder %s16219_s15, %s16215_s30  ;;  %p337_p1 = scmp.eq.s32.totalorder %s336_s21, 0 }
   0xb   : > { %p350_p2 = scmp.eq.s32.totalorder %s16325_s17, 1  ;;  %p355_p3 = scmp.ne.s32.totalorder %s16215_s30, %s16211_s29 }
   0xc   : > { %p356_p4 = scmp.eq.s32.totalorder %s11869_s18, 1  ;;  %p11872_p7 = scmp.ge.s32.totalorder %s16223_s16, 1 }
   0xd   : > { %s16340_s22 = scalar_select %p337_p1, %s16219_s15, %s339_s20  }
   0xe   : > { %p16342_p5 = por %p350_p2, %p349_p0  ;;  %p16346_p6 = por %p356_p4, %p355_p3 }
   0xf   : > { %19829 = sst [smem:[#allocation9_spill]] %s16340_s22  ;;  %p418_p8 = scmp.lt.s32.totalorder %s16223_s16, 3 }
  0x11   : > { %p419_p9 = pnand %p11872_p7, %p418_p8 }
  0x13   : > { %422 = sbr.rel (%p419_p9) target bundleno = 2455 (0x997), region = 72 }
  0x1a   : > { %v11880_v0 = vld [vmem:[%s19665_s3 + $0x4] sm:$0x7]  ;;  %vm841_vm0 = vcmask 1042432   ;;  %vm479_vm1 = vcmask 23552   ;;  %vm482_vm2 = vcmask 17408   ;;  %v19678_v1 = vmov 0.0  }
  0x1b   : > { %13815 = vmatprep.subr.msk.mxu1 %vm841_vm0, %v11880_v0  ;;  %480 = vst.msk [vmem:[#allocation2] sm:$0xff] %vm479_vm1, %v19678_v1  ;;  %481 = vst.msk [vmem:[#allocation2 + $0x8] sm:$0xff] %vm479_vm1, %v19678_v1  ;;  %v12015_v2 = vld [vmem:[%s19665_s3 + $0x10] sm:$0x7]  ;;  %p469_p10 = scmp.lt.s32.totalorder %s16325_s17, 1  ;;  %s19832_s1 = sld [smem:[#allocation46_spill]] }
  0x1c   : > { %484 = vst.msk [vmem:[#allocation2 + $0x18] sm:$0xff] %vm479_vm1, %v19678_v1  ;;  %485 = vst.msk [vmem:[#allocation2 + $0x20] sm:$0xff] %vm479_vm1, %v19678_v1  ;;  %13816 = vmatpush3.msk.msra.mxu1 %vm841_vm0, %v11880_v0  ;;  %14015 = vmatprep.subr.msk.mxu0 %vm841_vm0, %v12015_v2  ;;  %v16473_v3 = vld [vmem:[%s19665_s3 + $0x14] sm:$0x7]  ;;  %v710_v4 = vld [vmem:[%s19665_s3] sm:$0x7] }
  0x1d   : > { %487 = vst.msk [vmem:[#allocation2 + $0x30] sm:$0xff] %vm479_vm1, %v19678_v1  ;;  %488 = vst.msk [vmem:[#allocation2 + $0x38] sm:$0xff] %vm479_vm1, %v19678_v1  ;;  %14016 = vmatpush3.msk.msra.mxu0 %vm841_vm0, %v12015_v2  ;;  %s16480_s26 = scalar_select %p469_p10, %s16325_s17, 1  ;;  %13865 = vmatprep.subr.msk.mxu1 %vm841_vm0, %v710_v4  ;;  %vm4196_vm3 = vcmask 64512   ;;  %vm4199_vm4 = vcmask 58368   ;;  %vm11359_vm5 = vcmask 130048  }
  0x1e   : > { %490 = vst.msk [vmem:[#allocation2 + $0x48] sm:$0xff] %vm479_vm1, %v19678_v1  ;;  %491 = vst.msk [vmem:[#allocation2 + $0x50] sm:$0xff] %vm479_vm1, %v19678_v1  ;;  %14065 = vmatprep.subr.msk.mxu0 %vm841_vm0, %v16473_v3  ;;  %s19833_s0 = sld [smem:[#allocation45_spill]]  ;;  %s19834_s2 = sld [smem:[#allocation47_spill]] }
  0x1f   : > { %493 = vst.msk [vmem:[#allocation2 + $0x60] sm:$0xff] %vm479_vm1, %v19678_v1  ;;  %494 = vst.msk [vmem:[#allocation2 + $0x68] sm:$0xff] %vm479_vm1, %v19678_v1  ;;  %s12853_s27 = sshll.u32 %s16480_s26, 8  ;;  %s12854_s20 = sshll.u32 %s16480_s26, 3 }
  0x20   : > { %496 = vst.msk [vmem:[#allocation2 + $0x78] sm:$0xff] %vm479_vm1, %v19678_v1  ;;  %497 = vst.msk [vmem:[#allocation2 + $0x80] sm:$0xff] %vm479_vm1, %v19678_v1  ;;  %s478_s15 = scalar_lea.vmem %s19675_s13, %s12854_s20  ;;  %s466_s22 = sand.u32 1, %s16215_s30  }
  0x21   : > { %499 = vst.msk [vmem:[#allocation2 + $0x90] sm:$0xff] %vm479_vm1, %v19678_v1  ;;  %500 = vst.msk [vmem:[#allocation2 + $0x98] sm:$0xff] %vm479_vm1, %v19678_v1  ;;  %v16489_v5 = vld [vmem:[%s19832_s1] ss:$0 sm:$0xff]  ;;  %s12855_s28 = sshll.u32 %s16325_s17, 8  ;;  %s11768_s20 = scalar_lea.sflag [#allocation6], %s466_s22 }
  0x22   : > { %502 = vst.msk [vmem:[#allocation2 + $0xa8] sm:$0xff] %vm479_vm1, %v19678_v1  ;;  %503 = vst.msk [vmem:[#allocation2 + $0xb0] sm:$0xff] %vm479_vm1, %v19678_v1  ;;  %v711_v10 = vld [vmem:[#allocation2 + $0x1] sm:$0xff] }
  0x23   : > { %505 = vst.msk [vmem:[#allocation2 + $0xc0] sm:$0xff] %vm479_vm1, %v19678_v1  ;;  %506 = vst.msk [vmem:[#allocation2 + $0xc8] sm:$0xff] %vm479_vm1, %v19678_v1  ;;  %13817 = vmatprep.mubr.msk.f32.mxu1 %vm479_vm1, %v711_v10 }
  0x24   : > { %508 = vst.msk [vmem:[#allocation2 + $0xd8] sm:$0xff] %vm479_vm1, %v19678_v1  ;;  %509 = vst.msk [vmem:[#allocation2 + $0xe0] sm:$0xff] %vm479_vm1, %v19678_v1  ;;  %s16494_s21 = scalar_lea.vmem %s19833_s0, %s12853_s27  ;;  %v16499_v6 = vld [vmem:[%s19834_s2] ss:$0 sm:$0xff]  ;;  %s11873_s27 = sshll.u32 %s466_s22, 4 }
  0x25   : > { %511 = vst.msk [vmem:[#allocation2 + $0xf0] sm:$0xff] %vm479_vm1, %v19678_v1  ;;  %512 = vst.msk [vmem:[#allocation2 + $0xf8] sm:$0xff] %vm479_vm1, %v19678_v1  ;;  %v535_v7 = vld [vmem:[%s16494_s21] sm:$0xff]  ;;  %v536_v8 = vld [vmem:[%s16494_s21 + $0x8] sm:$0xff]  ;;  %s468_s18 = scalar_lea.vmem [#allocation5], %s11873_s27  ;;  %s19620_s2 = scalar_lea.hbm %s19676_s14, %s12855_s28 }
  0x26   : > { %514 = vst.msk [vmem:[#allocation2 + $0x108] sm:$0xff] %vm479_vm1, %v19678_v1  ;;  %515 = vst.msk [vmem:[#allocation2 + $0x110] sm:$0xff] %vm479_vm1, %v19678_v1  ;;  %v537_v9 = vld [vmem:[%s16494_s21 + $0x10] sm:$0xff]  ;;  %v574_v12 = vsub.f32 %v535_v7, %v16489_v5  ;;  %v575_v13 = vsub.f32 %v536_v8, %v16489_v5  ;;  %v538_v15 = vld [vmem:[%s16494_s21 + $0x18] sm:$0xff]  ;;  %s11785_s0 = sshll.u32 %s468_s18, 4  ;;  %s19622_s0 = int_to_ptr.vmem [resolvable:$true] %s11785_s0 }
  0x27   : > { %517 = vst.msk [vmem:[#allocation2 + $0x120] sm:$0xff] %vm479_vm1, %v19678_v1  ;;  %518 = vst.msk [vmem:[#allocation2 + $0x128] sm:$0xff] %vm479_vm1, %v19678_v1  ;;  %v576_v14 = vsub.f32 %v537_v9, %v16489_v5  ;;  %v577_v16 = vsub.f32 %v538_v15, %v16489_v5  ;;  %v539_v17 = vld [vmem:[%s16494_s21 + $0x20] sm:$0xff]  ;;  %v540_v18 = vld [vmem:[%s16494_s21 + $0x28] sm:$0xff]  ;;  %s16161_s17 = scalar_lea.vmem %s19622_s0, 256 }
  0x28   : > { %520 = vst.msk [vmem:[#allocation2 + $0x138] sm:$0xff] %vm479_vm1, %v19678_v1  ;;  %521 = vst.msk [vmem:[#allocation2 + $0x140] sm:$0xff] %vm479_vm1, %v19678_v1  ;;  %v541_v19 = vld [vmem:[%s16494_s21 + $0x30] sm:$0xff]  ;;  %v613_v20 = vmul.f32 %v16499_v6, %v574_v12  ;;  %v614_v21 = vmul.f32 %v16499_v6, %v575_v13  ;;  %v578_v23 = vsub.f32 %v539_v17, %v16489_v5  ;;  %v542_v24 = vld [vmem:[%s16494_s21 + $0x38] sm:$0xff]  ;;  %p16162_p11 = scmp.ne.s32.totalorder %s19622_s0, %s16161_s17 }
  0x29   : > { %523 = vst.msk [vmem:[#allocation2 + $0x150] sm:$0xff] %vm479_vm1, %v19678_v1  ;;  %524 = vst.msk [vmem:[#allocation2 + $0x158] sm:$0xff] %vm479_vm1, %v19678_v1  ;;  %v615_v22 = vmul.f32 %v16499_v6, %v576_v14  ;;  %v543_v25 = vld [vmem:[%s16494_s21 + $0x40] sm:$0xff]  ;;  %v544_v26 = vld [vmem:[%s16494_s21 + $0x48] sm:$0xff]  ;;  %v616_v27 = vmul.f32 %v16499_v6, %v577_v16  ;;  %v579_v28 = vsub.f32 %v540_v18, %v16489_v5 }
  0x2a   : > { %526 = vst.msk [vmem:[#allocation2 + $0x168] sm:$0xff] %vm479_vm1, %v19678_v1  ;;  %527 = vst.msk [vmem:[#allocation2 + $0x170] sm:$0xff] %vm479_vm1, %v19678_v1  ;;  %v580_v29 = vsub.f32 %v541_v19, %v16489_v5  ;;  %v581_v30 = vsub.f32 %v542_v24, %v16489_v5  ;;  %v545_v31 = vld [vmem:[%s16494_s21 + $0x50] sm:$0xff]  ;;  %v546_v32 = vld [vmem:[%s16494_s21 + $0x58] sm:$0xff]  ;;  %v617_v34 = vmul.f32 %v16499_v6, %v578_v23  ;;  %p16163_p12 = pnand %p16162_p11, %p16342_p5 }
  0x2b   : > { %529 = vst.msk [vmem:[#allocation2 + $0x180] sm:$0xff] %vm479_vm1, %v19678_v1  ;;  %530 = vst.msk [vmem:[#allocation2 + $0x188] sm:$0xff] %vm479_vm1, %v19678_v1  ;;  %v547_v33 = vld [vmem:[%s16494_s21 + $0x60] sm:$0xff]  ;;  %v582_v35 = vsub.f32 %v543_v25, %v16489_v5  ;;  %v583_v36 = vsub.f32 %v544_v26, %v16489_v5  ;;  %v584_v37 = vsub.f32 %v545_v31, %v16489_v5  ;;  %v548_v38 = vld [vmem:[%s16494_s21 + $0x68] sm:$0xff] }
  0x2c   : > { %532 = vst.msk [vmem:[#allocation2 + $0x198] sm:$0xff] %vm479_vm1, %v19678_v1  ;;  %533 = vst.msk [vmem:[#allocation2 + $0x1a0] sm:$0xff] %vm479_vm1, %v19678_v1  ;;  %v549_v39 = vld [vmem:[%s16494_s21 + $0x70] sm:$0xff]  ;;  %v550_v40 = vld [vmem:[%s16494_s21 + $0x78] sm:$0xff]  ;;  %v618_v41 = vmul.f32 %v16499_v6, %v579_v28  ;;  %v619_v42 = vmul.f32 %v16499_v6, %v580_v29  ;;  %v620_v43 = vmul.f32 %v16499_v6, %v581_v30  ;;  %p16164_p13 = pneg %p16163_p12 }
  0x2d   : > { %483 = vst.msk [vmem:[#allocation2 + $0x10] sm:$0x3] %vm482_vm2, %v19678_v1  ;;  %486 = vst.msk [vmem:[#allocation2 + $0x28] sm:$0x3] %vm482_vm2, %v19678_v1  ;;  %v585_v44 = vsub.f32 %v546_v32, %v16489_v5  ;;  %v551_v45 = vld [vmem:[%s16494_s21 + $0x80] sm:$0xff]  ;;  %v552_v46 = vld [vmem:[%s16494_s21 + $0x88] sm:$0xff]  ;;  %v621_v48 = vmul.f32 %v16499_v6, %v582_v35  ;;  %v622_v49 = vmul.f32 %v16499_v6, %v583_v36 }
  0x2e   : > { %489 = vst.msk [vmem:[#allocation2 + $0x40] sm:$0x3] %vm482_vm2, %v19678_v1  ;;  %492 = vst.msk [vmem:[#allocation2 + $0x58] sm:$0x3] %vm482_vm2, %v19678_v1  ;;  %v553_v47 = vld [vmem:[%s16494_s21 + $0x90] sm:$0xff]  ;;  %v623_v50 = vmul.f32 %v16499_v6, %v584_v37  ;;  %v586_v51 = vsub.f32 %v547_v33, %v16489_v5  ;;  %v554_v52 = vld [vmem:[%s16494_s21 + $0x98] sm:$0xff]  ;;  %v587_v54 = vsub.f32 %v548_v38, %v16489_v5 }
  0x2f   : > { %495 = vst.msk [vmem:[#allocation2 + $0x70] sm:$0x3] %vm482_vm2, %v19678_v1  ;;  %498 = vst.msk [vmem:[#allocation2 + $0x88] sm:$0x3] %vm482_vm2, %v19678_v1  ;;  %v624_v53 = vmul.f32 %v16499_v6, %v585_v44  ;;  %v588_v55 = vsub.f32 %v549_v39, %v16489_v5  ;;  %v589_v56 = vsub.f32 %v550_v40, %v16489_v5  ;;  %v555_v57 = vld [vmem:[%s16494_s21 + $0xa0] sm:$0xff]  ;;  %v556_v62 = vld [vmem:[%s16494_s21 + $0xa8] sm:$0xff] }
  0x30   : > { %501 = vst.msk [vmem:[#allocation2 + $0xa0] sm:$0x3] %vm482_vm2, %v19678_v1  ;;  %504 = vst.msk [vmem:[#allocation2 + $0xb8] sm:$0x3] %vm482_vm2, %v19678_v1  ;;  %v625_v58 = vmul.f32 %v16499_v6, %v586_v51  ;;  %v590_v59 = vsub.f32 %v551_v45, %v16489_v5  ;;  %v591_v60 = vsub.f32 %v552_v46, %v16489_v5  ;;  %v557_v63 = vld [vmem:[%s16494_s21 + $0xb0] sm:$0xff]  ;;  %v558_v0 = vld [vmem:[%s16494_s21 + $0xb8] sm:$0xff] }
  0x31   : > { %507 = vst.msk [vmem:[#allocation2 + $0xd0] sm:$0x3] %vm482_vm2, %v19678_v1  ;;  %510 = vst.msk [vmem:[#allocation2 + $0xe8] sm:$0x3] %vm482_vm2, %v19678_v1  ;;  %v592_v61 = vsub.f32 %v553_v47, %v16489_v5  ;;  %v626_v2 = vmul.f32 %v16499_v6, %v587_v54  ;;  %v628_v7 = vmul.f32 %v16499_v6, %v589_v56  ;;  %v559_v9 = vld [vmem:[%s16494_s21 + $0xc0] sm:$0xff]  ;;  %v560_v10 = vld [vmem:[%s16494_s21 + $0xc8] sm:$0xff] }
  0x32   : > { %513 = vst.msk [vmem:[#allocation2 + $0x100] sm:$0x3] %vm482_vm2, %v19678_v1  ;;  %516 = vst.msk [vmem:[#allocation2 + $0x118] sm:$0x3] %vm482_vm2, %v19678_v1  ;;  %v593_v8 = vsub.f32 %v554_v52, %v16489_v5  ;;  %v630_v12 = vmul.f32 %v16499_v6, %v591_v60  ;;  %v594_v14 = vsub.f32 %v555_v57, %v16489_v5  ;;  %v561_v15 = vld [vmem:[%s16494_s21 + $0xd0] sm:$0xff]  ;;  %v562_v16 = vld [vmem:[%s16494_s21 + $0xd8] sm:$0xff] }
  0x33   : > { %519 = vst.msk [vmem:[#allocation2 + $0x130] sm:$0x3] %vm482_vm2, %v19678_v1  ;;  %522 = vst.msk [vmem:[#allocation2 + $0x148] sm:$0x3] %vm482_vm2, %v19678_v1  ;;  %v631_v13 = vmul.f32 %v16499_v6, %v592_v61  ;;  %v597_v23 = vsub.f32 %v558_v0, %v16489_v5  ;;  %v598_v25 = vsub.f32 %v559_v9, %v16489_v5  ;;  %v564_v28 = vld [vmem:[%s16494_s21 + $0xe8] sm:$0xff]  ;;  %v565_v29 = vld [vmem:[%s16494_s21 + $0xf0] sm:$0xff] }
  0x34   : > { %525 = vst.msk [vmem:[#allocation2 + $0x160] sm:$0x3] %vm482_vm2, %v19678_v1  ;;  %528 = vst.msk [vmem:[#allocation2 + $0x178] sm:$0x3] %vm482_vm2, %v19678_v1  ;;  %v712_v11 = vld [vmem:[#allocation2 + $0x9] sm:$0xff]  ;;  %v633_v24 = vmul.f32 %v16499_v6, %v594_v14  ;;  %v599_v26 = vsub.f32 %v560_v10, %v16489_v5  ;;  %v566_v33 = vld [vmem:[%s16494_s21 + $0xf8] sm:$0xff]  ;;  %v600_v38 = vsub.f32 %v561_v15, %v16489_v5 }
  0x35   : > { %531 = vst.msk [vmem:[#allocation2 + $0x190] sm:$0x3] %vm482_vm2, %v19678_v1  ;;  %534 = vst.msk [vmem:[#allocation2 + $0x1a8] sm:$0x3] %vm482_vm2, %v19678_v1  ;;  %13818 = vmatmul.mubr.msk.f32.vlgmr.msra.gmra.mrb[0].mxu1 %vm479_vm1, %v712_v11  ;;  %v629_v11 = vmul.f32 %v16499_v6, %v590_v59  ;;  %v636_v32 = vmul.f32 %v16499_v6, %v597_v23  ;;  %v637_v36 = vmul.f32 %v16499_v6, %v598_v25  ;;  %v11947_v60 = vld [vmem:[%s19665_s3 + $0x8] sm:$0x7] }
  0x36   : > { %13866 = vmatpush3.msk.msra.mxu1 %vm841_vm0, %v710_v4  ;;  %646 = vst.msk [vmem:[#allocation2 + $0x19] sm:$0xff] %vm479_vm1, %v613_v20  ;;  %647 = vst.msk [vmem:[#allocation2 + $0x21] sm:$0xff] %vm479_vm1, %v614_v21  ;;  %v627_v4 = vmul.f32 %v16499_v6, %v588_v55  ;;  %v632_v20 = vmul.f32 %v16499_v6, %v593_v8  ;;  %v595_v21 = vsub.f32 %v556_v62, %v16489_v5  ;;  %v678_v14 = vld [vmem:[#allocation2] sm:$0xff] }
  0x37   : > { %648 = vst.msk [vmem:[#allocation2 + $0x31] sm:$0xff] %vm479_vm1, %v615_v22  ;;  %649 = vst.msk [vmem:[#allocation2 + $0x39] sm:$0xff] %vm479_vm1, %v616_v27  ;;  %v596_v22 = vsub.f32 %v557_v63, %v16489_v5  ;;  %v563_v27 = vld [vmem:[%s16494_s21 + $0xe0] sm:$0xff]  ;;  %v638_v37 = vmul.f32 %v16499_v6, %v599_v26  ;;  %v605_v44 = vsub.f32 %v566_v33, %v16489_v5  ;;  %13915 = vmatprep.subr.msk.mxu1 %vm841_vm0, %v11947_v60  ;;  %v16852_v26 = vld [vmem:[%s19665_s3 + $0x1c] sm:$0x7]  ;;  %s16226_s21 = smov 112  }
  0x38   : > { %650 = vst.msk [vmem:[#allocation2 + $0x49] sm:$0xff] %vm479_vm1, %v617_v34  ;;  %651 = vst.msk [vmem:[#allocation2 + $0x51] sm:$0xff] %vm479_vm1, %v618_v41  ;;  %v634_v30 = vmul.f32 %v16499_v6, %v595_v21  ;;  %v16615_v34 = vld [vmem:[%s19665_s3 + $0x18] sm:$0x7]  ;;  %v602_v40 = vsub.f32 %v563_v27, %v16489_v5  ;;  %v603_v41 = vsub.f32 %v564_v28, %v16489_v5  ;;  %v16834_v21 = vld [vmem:[%s19665_s3 + $0xc] sm:$0x7] }
  0x39   : > { %652 = vst.msk [vmem:[#allocation2 + $0x61] sm:$0xff] %vm479_vm1, %v619_v42  ;;  %653 = vst.msk [vmem:[#allocation2 + $0x69] sm:$0xff] %vm479_vm1, %v620_v43  ;;  %v635_v31 = vmul.f32 %v16499_v6, %v596_v22  ;;  %v604_v42 = vsub.f32 %v565_v29, %v16489_v5  ;;  %v639_v43 = vmul.f32 %v16499_v6, %v600_v38 }
  0x3a   : > { %654 = vst.msk [vmem:[#allocation2 + $0x79] sm:$0xff] %vm479_vm1, %v621_v48  ;;  %655 = vst.msk [vmem:[#allocation2 + $0x81] sm:$0xff] %vm479_vm1, %v622_v49  ;;  %v641_v46 = vmul.f32 %v16499_v6, %v602_v40  ;;  %v642_v47 = vmul.f32 %v16499_v6, %v603_v41  ;;  %v644_v49 = vmul.f32 %v16499_v6, %v605_v44 }
  0x3b   : > { %656 = vst.msk [vmem:[#allocation2 + $0x91] sm:$0xff] %vm479_vm1, %v623_v50  ;;  %657 = vst.msk [vmem:[#allocation2 + $0x99] sm:$0xff] %vm479_vm1, %v624_v53  ;;  %v643_v48 = vmul.f32 %v16499_v6, %v604_v42 }
  0x3c   : > { %658 = vst.msk [vmem:[#allocation2 + $0xa9] sm:$0xff] %vm479_vm1, %v625_v58  ;;  %659 = vst.msk [vmem:[#allocation2 + $0xb1] sm:$0xff] %vm479_vm1, %v626_v2 }
  0x3d   : > { %v713_v17 = vld [vmem:[#allocation2 + $0x19] sm:$0xff]  ;;  %v714_v18 = vld [vmem:[#allocation2 + $0x21] sm:$0xff]  ;;  %660 = vst.msk [vmem:[#allocation2 + $0xc1] sm:$0xff] %vm479_vm1, %v627_v4  ;;  %661 = vst.msk [vmem:[#allocation2 + $0xc9] sm:$0xff] %vm479_vm1, %v628_v7 }
  0x3e   : > { %v16585_v19 = vld [vmem:[#allocation2 + $0x31] sm:$0xff]  ;;  %13820 = vmatprep.mubr.msk.f32.mxu1 %vm479_vm1, %v713_v17  ;;  %14017 = vmatprep.mubr.msk.f32.mxu0 %vm479_vm1, %v713_v17  ;;  %662 = vst.msk [vmem:[#allocation2 + $0xd9] sm:$0xff] %vm479_vm1, %v629_v11  ;;  %663 = vst.msk [vmem:[#allocation2 + $0xe1] sm:$0xff] %vm479_vm1, %v630_v12  ;;  %v16621_v35 = vld [vmem:[#allocation2 + $0x39] sm:$0xff] }
  0x3f   : > { %19835 = vst [vmem:[#allocation10_spill] sm:$0xff] %v16585_v19  ;;  %664 = vst.msk [vmem:[#allocation2 + $0xf1] sm:$0xff] %vm479_vm1, %v631_v13  ;;  %13821 = vmatmul.mubr.msk.f32.gmra.mrb[2].mxu1 %vm479_vm1, %v714_v18  ;;  %14018 = vmatmul.mubr.msk.f32.vlgmr.msra.gmra.mrb[0].mxu0 %vm479_vm1, %v714_v18  ;;  %v16629_v39 = vld [vmem:[#allocation2 + $0x49] sm:$0xff]  ;;  %v16824_v18 = vld [vmem:[#allocation2 + $0x18] sm:$0xff] }
  0x40   : > { %665 = vst.msk [vmem:[#allocation2 + $0xf9] sm:$0xff] %vm479_vm1, %v632_v20  ;;  %14066 = vmatpush3.msk.msra.mxu0 %vm841_vm0, %v16473_v3  ;;  %13823 = vmatprep.mubr.msk.f32.mxu1 %vm479_vm1, %v16585_v19  ;;  %19836 = vst [vmem:[#allocation11_spill] sm:$0xff] %v16621_v35  ;;  %v601_v3 = vsub.f32 %v562_v16, %v16489_v5  ;;  %v16655_v5 = vld [vmem:[#allocation2 + $0x51] sm:$0xff]  ;;  %v16660_v50 = vld [vmem:[#allocation2 + $0x61] sm:$0xff] }
  0x41   : > { %666 = vst.msk [vmem:[#allocation2 + $0x109] sm:$0xff] %vm479_vm1, %v633_v24  ;;  %14020 = vmatprep.mubr.msk.f32.mxu0 %vm479_vm1, %v16585_v19  ;;  %19837 = vst [vmem:[#allocation12_spill] sm:$0xff] %v16629_v39  ;;  %14115 = vmatprep.subr.msk.mxu0 %vm841_vm0, %v16615_v34  ;;  %v16677_v51 = vld [vmem:[#allocation2 + $0x79] sm:$0xff]  ;;  %v16687_v52 = vld [vmem:[#allocation2 + $0x81] sm:$0xff] }
  0x42   : > { %667 = vst.msk [vmem:[#allocation2 + $0x111] sm:$0xff] %vm479_vm1, %v634_v30  ;;  %668 = vst.msk [vmem:[#allocation2 + $0x121] sm:$0xff] %vm479_vm1, %v635_v31  ;;  %v640_v45 = vmul.f32 %v16499_v6, %v601_v3  ;;  %v16675_v6 = vld [vmem:[#allocation2 + $0x69] sm:$0xff]  ;;  %v16689_v53 = vld [vmem:[#allocation2 + $0x91] sm:$0xff] }
  0x43   : > { %669 = vst.msk [vmem:[#allocation2 + $0x129] sm:$0xff] %vm479_vm1, %v636_v32  ;;  %670 = vst.msk [vmem:[#allocation2 + $0x139] sm:$0xff] %vm479_vm1, %v637_v36  ;;  %13824 = vmatmul.mubr.msk.f32.gmra.mrb[4].mxu1 %vm479_vm1, %v16621_v35  ;;  %14021 = vmatmul.mubr.msk.f32.gmra.mrb[2].mxu0 %vm479_vm1, %v16621_v35  ;;  %v16699_v54 = vld [vmem:[#allocation2 + $0x99] sm:$0xff]  ;;  %v16701_v55 = vld [vmem:[#allocation2 + $0xa9] sm:$0xff] }
  0x44   : > { %671 = vst.msk [vmem:[#allocation2 + $0x141] sm:$0xff] %vm479_vm1, %v638_v37  ;;  %13826 = vmatprep.mubr.msk.f32.mxu1 %vm479_vm1, %v16629_v39  ;;  %14023 = vmatprep.mubr.msk.f32.mxu0 %vm479_vm1, %v16629_v39  ;;  %19838 = vst [vmem:[#allocation13_spill] sm:$0xff] %v16655_v5  ;;  %v16711_v56 = vld [vmem:[#allocation2 + $0xb1] sm:$0xff]  ;;  %v16713_v57 = vld [vmem:[#allocation2 + $0xc1] sm:$0xff] }
  0x45   : > { %672 = vst.msk [vmem:[#allocation2 + $0x151] sm:$0xff] %vm479_vm1, %v639_v43  ;;  %19839 = vst [vmem:[#allocation14_spill] sm:$0xff] %v16660_v50  ;;  %v16723_v58 = vld [vmem:[#allocation2 + $0xc9] sm:$0xff]  ;;  %v16725_v59 = vld [vmem:[#allocation2 + $0xd9] sm:$0xff] }
  0x46   : > { %673 = vst.msk [vmem:[#allocation2 + $0x159] sm:$0xff] %vm479_vm1, %v640_v45  ;;  %674 = vst.msk [vmem:[#allocation2 + $0x169] sm:$0xff] %vm479_vm1, %v641_v46  ;;  %v16738_v61 = vld [vmem:[#allocation2 + $0xe1] sm:$0xff]  ;;  %v16740_v62 = vld [vmem:[#allocation2 + $0xf1] sm:$0xff] }
  0x47   : > { %675 = vst.msk [vmem:[#allocation2 + $0x171] sm:$0xff] %vm479_vm1, %v642_v47  ;;  %676 = vst.msk [vmem:[#allocation2 + $0x181] sm:$0xff] %vm479_vm1, %v643_v48  ;;  %13827 = vmatmul.mubr.msk.f32.gmra.mrb[6].mxu1 %vm479_vm1, %v16655_v5  ;;  %14024 = vmatmul.mubr.msk.f32.gmra.mrb[4].mxu0 %vm479_vm1, %v16655_v5  ;;  %v16751_v63 = vld [vmem:[#allocation2 + $0xf9] sm:$0xff]  ;;  %v679_v16 = vld [vmem:[#allocation2 + $0x8] sm:$0xff] }
  0x48   : > { %677 = vst.msk [vmem:[#allocation2 + $0x189] sm:$0xff] %vm479_vm1, %v644_v49  ;;  %13829 = vmatprep.mubr.msk.f32.mxu1 %vm479_vm1, %v16660_v50  ;;  %14026 = vmatprep.mubr.msk.f32.mxu0 %vm479_vm1, %v16660_v50  ;;  %19840 = vst [vmem:[#allocation15_spill] sm:$0xff] %v16675_v6  ;;  %v16753_v0 = vld [vmem:[#allocation2 + $0x109] sm:$0xff]  ;;  %v16826_v20 = vld [vmem:[#allocation2 + $0x1a] sm:$0xff] }
  0x49   : > { %19841 = vst [vmem:[#allocation16_spill] sm:$0xff] %v16677_v51  ;;  %19842 = vst [vmem:[#allocation17_spill] sm:$0xff] %v16687_v52  ;;  %v16763_v2 = vld [vmem:[#allocation2 + $0x111] sm:$0xff]  ;;  %v16765_v4 = vld [vmem:[#allocation2 + $0x121] sm:$0xff] }
  0x4a   : > { %19843 = vst [vmem:[#allocation18_spill] sm:$0xff] %v16689_v53  ;;  %19844 = vst [vmem:[#allocation19_spill] sm:$0xff] %v16699_v54  ;;  %v16775_v7 = vld [vmem:[#allocation2 + $0x129] sm:$0xff]  ;;  %v16777_v8 = vld [vmem:[#allocation2 + $0x139] sm:$0xff] }
  0x4b   : > { %13830 = vmatmul.mubr.msk.f32.gmra.mrb[8].mxu1 %vm479_vm1, %v16675_v6  ;;  %14027 = vmatmul.mubr.msk.f32.gmra.mrb[6].mxu0 %vm479_vm1, %v16675_v6  ;;  %19845 = vst [vmem:[#allocation20_spill] sm:$0xff] %v16701_v55  ;;  %19846 = vst [vmem:[#allocation21_spill] sm:$0xff] %v16711_v56  ;;  %v16787_v9 = vld [vmem:[#allocation2 + $0x141] sm:$0xff]  ;;  %v16844_v24 = vld [vmem:[#allocation2 + $0x30] sm:$0xff] }
  0x4c   : > { %13832 = vmatprep.mubr.msk.f32.mxu1 %vm479_vm1, %v16677_v51  ;;  %14029 = vmatprep.mubr.msk.f32.mxu0 %vm479_vm1, %v16677_v51  ;;  %19847 = vst [vmem:[#allocation22_spill] sm:$0xff] %v16713_v57  ;;  %19848 = vst [vmem:[#allocation23_spill] sm:$0xff] %v16723_v58  ;;  %v16789_v10 = vld [vmem:[#allocation2 + $0x151] sm:$0xff]  ;;  %v16840_v22 = vld [vmem:[#allocation2 + $0x20] sm:$0xff] }
  0x4d   : > { %19849 = vst [vmem:[#allocation24_spill] sm:$0xff] %v16725_v59  ;;  %19850 = vst [vmem:[#allocation25_spill] sm:$0xff] %v16738_v61  ;;  %v16799_v11 = vld [vmem:[#allocation2 + $0x159] sm:$0xff]  ;;  %v16801_v12 = vld [vmem:[#allocation2 + $0x169] sm:$0xff] }
  0x4e   : > { %19851 = vst [vmem:[#allocation26_spill] sm:$0xff] %v16740_v62  ;;  %19852 = vst [vmem:[#allocation27_spill] sm:$0xff] %v16751_v63  ;;  %v16811_v13 = vld [vmem:[#allocation2 + $0x171] sm:$0xff]  ;;  %v16813_v15 = vld [vmem:[#allocation2 + $0x181] sm:$0xff] }
  0x4f   : > { %13833 = vmatmul.mubr.msk.f32.gmra.mrb[10].mxu1 %vm479_vm1, %v16687_v52  ;;  %14030 = vmatmul.mubr.msk.f32.gmra.mrb[8].mxu0 %vm479_vm1, %v16687_v52  ;;  %19853 = vst [vmem:[#allocation28_spill] sm:$0xff] %v16753_v0  ;;  %19854 = vst [vmem:[#allocation29_spill] sm:$0xff] %v16763_v2  ;;  %v16822_v17 = vld [vmem:[#allocation2 + $0x189] sm:$0xff]  ;;  %v16847_v25 = vld [vmem:[#allocation2 + $0x32] sm:$0xff] }
  0x50   : > { %13835 = vmatprep.mubr.msk.f32.mxu1 %vm479_vm1, %v16689_v53  ;;  %14032 = vmatprep.mubr.msk.f32.mxu0 %vm479_vm1, %v16689_v53  ;;  %19855 = vst [vmem:[#allocation30_spill] sm:$0xff] %v16765_v4  ;;  %19856 = vst [vmem:[#allocation31_spill] sm:$0xff] %v16775_v7  ;;  %v16842_v23 = vld [vmem:[#allocation2 + $0x22] sm:$0xff]  ;;  %v16864_v27 = vld [vmem:[#allocation2 + $0x38] sm:$0xff] }
  0x51   : > { %19857 = vst [vmem:[#allocation32_spill] sm:$0xff] %v16777_v8  ;;  %19858 = vst [vmem:[#allocation33_spill] sm:$0xff] %v16787_v9  ;;  %v16866_v28 = vld [vmem:[#allocation2 + $0x3a] sm:$0xff]  ;;  %v16870_v29 = vld [vmem:[#allocation2 + $0x48] sm:$0xff] }
  0x52   : > { %19859 = vst [vmem:[#allocation34_spill] sm:$0xff] %v16789_v10  ;;  %19860 = vst [vmem:[#allocation35_spill] sm:$0xff] %v16799_v11  ;;  %v16872_v30 = vld [vmem:[#allocation2 + $0x4a] sm:$0xff]  ;;  %v16886_v32 = vld [vmem:[#allocation2 + $0x52] sm:$0xff] }
  0x53   : > { %13836 = vmatmul.mubr.msk.f32.gmra.mrb[12].mxu1 %vm479_vm1, %v16699_v54  ;;  %14033 = vmatmul.mubr.msk.f32.gmra.mrb[10].mxu0 %vm479_vm1, %v16699_v54  ;;  %19861 = vst [vmem:[#allocation36_spill] sm:$0xff] %v16801_v12  ;;  %19862 = vst [vmem:[#allocation37_spill] sm:$0xff] %v16811_v13  ;;  %v16884_v31 = vld [vmem:[#allocation2 + $0x50] sm:$0xff]  ;;  %v16888_v33 = vld [vmem:[#allocation2 + $0x60] sm:$0xff] }
  0x54   : > { %13838 = vmatprep.mubr.msk.f32.mxu1 %vm479_vm1, %v16701_v55  ;;  %14035 = vmatprep.mubr.msk.f32.mxu0 %vm479_vm1, %v16701_v55  ;;  %19863 = vst [vmem:[#allocation38_spill] sm:$0xff] %v16813_v15  ;;  %19864 = vst [vmem:[#allocation39_spill] sm:$0xff] %v16822_v17  ;;  %v16900_v36 = vld [vmem:[#allocation2 + $0x68] sm:$0xff]  ;;  %v16904_v38 = vld [vmem:[#allocation2 + $0x78] sm:$0xff] }
  0x55   : > { %19865 = vst [vmem:[#allocation40_spill] sm:$0xff] %v16824_v18  ;;  %19866 = vst [vmem:[#allocation41_spill] sm:$0xff] %v16840_v22  ;;  %v16902_v37 = vld [vmem:[#allocation2 + $0x6a] sm:$0xff]  ;;  %v16906_v3 = vld [vmem:[#allocation2 + $0x7a] sm:$0xff] }
  0x56   : > { %v16916_v40 = vld [vmem:[#allocation2 + $0x80] sm:$0xff]  ;;  %v16920_v42 = vld [vmem:[#allocation2 + $0x90] sm:$0xff]  ;;  %v16932_v44 = vld [vmem:[#allocation2 + $0x98] sm:$0xff] }
  0x57   : > { %13839 = vmatmul.mubr.msk.f32.gmra.mrb[14].mxu1 %vm479_vm1, %v16711_v56  ;;  %14036 = vmatmul.mubr.msk.f32.gmra.mrb[12].mxu0 %vm479_vm1, %v16711_v56  ;;  %v16918_v41 = vld [vmem:[#allocation2 + $0x82] sm:$0xff]  ;;  %v16922_v43 = vld [vmem:[#allocation2 + $0x92] sm:$0xff]  ;;  %v16934_v45 = vld [vmem:[#allocation2 + $0x9a] sm:$0xff] }
  0x58   : > { %13841 = vmatprep.mubr.msk.f32.mxu1 %vm479_vm1, %v16713_v57  ;;  %14038 = vmatprep.mubr.msk.f32.mxu0 %vm479_vm1, %v16713_v57  ;;  %v16936_v46 = vld [vmem:[#allocation2 + $0xa8] sm:$0xff]  ;;  %v16948_v48 = vld [vmem:[#allocation2 + $0xb0] sm:$0xff]  ;;  %v17034_v57 = vld [vmem:[#allocation2 + $0x13a] sm:$0xff] }
  0x59   : > { %v16938_v47 = vld [vmem:[#allocation2 + $0xaa] sm:$0xff]  ;;  %v16950_v49 = vld [vmem:[#allocation2 + $0xb2] sm:$0xff]  ;;  %v17044_v56 = vld [vmem:[#allocation2 + $0x140] sm:$0xff] }
  0x5a   : > { %v16966_v1 = vld [vmem:[#allocation2 + $0xca] sm:$0xff]  ;;  %v17046_v55 = vld [vmem:[#allocation2 + $0x142] sm:$0xff]  ;;  %v17050_v53 = vld [vmem:[#allocation2 + $0x152] sm:$0xff] }
  0x5b   : > { %13842 = vmatmul.mubr.msk.f32.gmra.mrb[16].mxu1 %vm479_vm1, %v16723_v58  ;;  %14039 = vmatmul.mubr.msk.f32.gmra.mrb[14].mxu0 %vm479_vm1, %v16723_v58  ;;  %v17032_v58 = vld [vmem:[#allocation2 + $0x138] sm:$0xff]  ;;  %v17048_v54 = vld [vmem:[#allocation2 + $0x150] sm:$0xff]  ;;  %v17064_v6 = vld [vmem:[#allocation2 + $0x168] sm:$0xff] }
  0x5c   : > { %13844 = vmatprep.mubr.msk.f32.mxu1 %vm479_vm1, %v16725_v59  ;;  %14041 = vmatprep.mubr.msk.f32.mxu0 %vm479_vm1, %v16725_v59  ;;  %v17030_v59 = vld [vmem:[#allocation2 + $0x12a] sm:$0xff]  ;;  %v17060_v52 = vld [vmem:[#allocation2 + $0x158] sm:$0xff]  ;;  %v1394_v35 = vld [vmem:[#allocation2 + $0x2] sm:$0xff] }
  0x5d   : > { %v17062_v51 = vld [vmem:[#allocation2 + $0x15a] sm:$0xff]  ;;  %v17066_v50 = vld [vmem:[#allocation2 + $0x16a] sm:$0xff]  ;;  %v17078_v39 = vld [vmem:[#allocation2 + $0x172] sm:$0xff] }
  0x5e   : > { %v17076_v5 = vld [vmem:[#allocation2 + $0x170] sm:$0xff]  ;;  %19867 = vst [vmem:[#allocation42_spill] sm:$0xff] %v17078_v39  ;;  %v17080_v19 = vld [vmem:[#allocation2 + $0x182] sm:$0xff]  ;;  %vm19481_vm6 = vmpackc.low %vm11359_vm5, %vm11359_vm5 }
  0x5f   : > { %13845 = vmatmul.mubr.msk.f32.gmra.mrb[18].mxu1 %vm479_vm1, %v16738_v61  ;;  %14042 = vmatmul.mubr.msk.f32.gmra.mrb[16].mxu0 %vm479_vm1, %v16738_v61  ;;  %v17028_v61 = vld [vmem:[#allocation2 + $0x128] sm:$0xff]  ;;  %19868 = vst [vmem:[#allocation43_spill] sm:$0xff] %v17080_v19 }
  0x60   : > { %13847 = vmatprep.mubr.msk.f32.mxu1 %vm479_vm1, %v16740_v62  ;;  %14044 = vmatprep.mubr.msk.f32.mxu0 %vm479_vm1, %v16740_v62  ;;  %v17018_v62 = vld [vmem:[#allocation2 + $0x122] sm:$0xff] }
  0x63   : > { %13848 = vmatmul.mubr.msk.f32.gmra.mrb[20].mxu1 %vm479_vm1, %v16751_v63  ;;  %14045 = vmatmul.mubr.msk.f32.gmra.mrb[18].mxu0 %vm479_vm1, %v16751_v63  ;;  %v17016_v63 = vld [vmem:[#allocation2 + $0x120] sm:$0xff] }
  0x64   : > { %13850 = vmatprep.mubr.msk.f32.mxu1 %vm479_vm1, %v16753_v0  ;;  %14047 = vmatprep.mubr.msk.f32.mxu0 %vm479_vm1, %v16753_v0  ;;  %v17014_v0 = vld [vmem:[#allocation2 + $0x112] sm:$0xff] }
  0x67   : > { %13851 = vmatmul.mubr.msk.f32.gmra.mrb[22].mxu1 %vm479_vm1, %v16763_v2  ;;  %14048 = vmatmul.mubr.msk.f32.gmra.mrb[20].mxu0 %vm479_vm1, %v16763_v2  ;;  %v17012_v2 = vld [vmem:[#allocation2 + $0x110] sm:$0xff] }
  0x68   : > { %13853 = vmatprep.mubr.msk.f32.mxu1 %vm479_vm1, %v16765_v4  ;;  %14050 = vmatprep.mubr.msk.f32.mxu0 %vm479_vm1, %v16765_v4  ;;  %v17002_v4 = vld [vmem:[#allocation2 + $0x10a] sm:$0xff] }
  0x6b   : > { %13854 = vmatmul.mubr.msk.f32.gmra.mrb[24].mxu1 %vm479_vm1, %v16775_v7  ;;  %14051 = vmatmul.mubr.msk.f32.gmra.mrb[22].mxu0 %vm479_vm1, %v16775_v7  ;;  %v17000_v7 = vld [vmem:[#allocation2 + $0x108] sm:$0xff] }
  0x6c   : > { %13856 = vmatprep.mubr.msk.f32.mxu1 %vm479_vm1, %v16777_v8  ;;  %14053 = vmatprep.mubr.msk.f32.mxu0 %vm479_vm1, %v16777_v8  ;;  %v16998_v8 = vld [vmem:[#allocation2 + $0xfa] sm:$0xff] }
  0x6f   : > { %13857 = vmatmul.mubr.msk.f32.gmra.mrb[26].mxu1 %vm479_vm1, %v16787_v9  ;;  %14054 = vmatmul.mubr.msk.f32.gmra.mrb[24].mxu0 %vm479_vm1, %v16787_v9  ;;  %v16996_v9 = vld [vmem:[#allocation2 + $0xf8] sm:$0xff] }
  0x70   : > { %13859 = vmatprep.mubr.msk.f32.mxu1 %vm479_vm1, %v16789_v10  ;;  %14056 = vmatprep.mubr.msk.f32.mxu0 %vm479_vm1, %v16789_v10  ;;  %v16986_v10 = vld [vmem:[#allocation2 + $0xf2] sm:$0xff] }
  0x73   : > { %13860 = vmatmul.mubr.msk.f32.gmra.mrb[28].mxu1 %vm479_vm1, %v16799_v11  ;;  %14057 = vmatmul.mubr.msk.f32.gmra.mrb[26].mxu0 %vm479_vm1, %v16799_v11  ;;  %v16984_v11 = vld [vmem:[#allocation2 + $0xf0] sm:$0xff] }
  0x74   : > { %13862 = vmatprep.mubr.msk.f32.mxu1 %vm479_vm1, %v16801_v12  ;;  %14059 = vmatprep.mubr.msk.f32.mxu0 %vm479_vm1, %v16801_v12  ;;  %v16982_v12 = vld [vmem:[#allocation2 + $0xe2] sm:$0xff] }
  0x77   : > { %13863 = vmatmul.mubr.msk.f32.gmra.mrb[30].mxu1 %vm479_vm1, %v16811_v13  ;;  %14060 = vmatmul.mubr.msk.f32.gmra.mrb[28].mxu0 %vm479_vm1, %v16811_v13  ;;  %v16980_v13 = vld [vmem:[#allocation2 + $0xe0] sm:$0xff] }
  0x78   : > { %13867 = vmatprep.mubr.msk.f32.mxu1 %vm479_vm1, %v678_v14  ;;  %14062 = vmatprep.mubr.msk.f32.mxu0 %vm479_vm1, %v16813_v15  ;;  %v16954_v14 = vld [vmem:[#allocation2 + $0xc2] sm:$0xff]  ;;  %v16970_v15 = vld [vmem:[#allocation2 + $0xda] sm:$0xff] }
  0x7b   : > { %13868 = vmatmul.mubr.msk.f32.vlgmr.msra.gmra.mrb[0].mxu1 %vm479_vm1, %v679_v16  ;;  %14063 = vmatmul.mubr.msk.f32.gmra.mrb[30].mxu0 %vm479_vm1, %v16822_v17  ;;  %v16964_v16 = vld [vmem:[#allocation2 + $0xc8] sm:$0xff]  ;;  %v16968_v17 = vld [vmem:[#allocation2 + $0xd8] sm:$0xff] }
  0x7c   : > { %13870 = vmatprep.mubr.msk.f32.mxu1 %vm479_vm1, %v16824_v18  ;;  %14067 = vmatprep.mubr.msk.f32.mxu0 %vm479_vm1, %v16826_v20  ;;  %v17089_v18 = vld [vmem:[#allocation2 + $0x18a] sm:$0xff] }
  0x7d   : > { %13916 = vmatpush3.msk.msra.mxu1 %vm841_vm0, %v11947_v60  ;;  %v16952_v60 = vld [vmem:[#allocation2 + $0xc0] sm:$0xff]  ;;  %19869 = vst [vmem:[#allocation44_spill] sm:$0xff] %v17089_v18 }
  0x7e   : > { %13965 = vmatprep.subr.msk.mxu1 %vm841_vm0, %v16834_v21 }
  0x7f   : > { %13871 = vmatmul.mubr.msk.f32.gmra.mrb[2].mxu1 %vm479_vm1, %v16840_v22  ;;  %14068 = vmatmul.mubr.msk.f32.vlgmr.msra.gmra.mrb[0].mxu0 %vm479_vm1, %v16842_v23  ;;  %v1395_v22 = vld [vmem:[#allocation2 + $0xa] sm:$0xff] }
  0x80   : > { %14116 = vmatpush3.msk.msra.mxu0 %vm841_vm0, %v16615_v34  ;;  %13873 = vmatprep.mubr.msk.f32.mxu1 %vm479_vm1, %v16844_v24  ;;  %v16890_v34 = vld [vmem:[#allocation2 + $0x62] sm:$0xff] }
  0x81   : > { %14070 = vmatprep.mubr.msk.f32.mxu0 %vm479_vm1, %v16847_v25  ;;  %14165 = vmatprep.subr.msk.mxu0 %vm841_vm0, %v16852_v26 }
  0x83   : > { %13874 = vmatmul.mubr.msk.f32.gmra.mrb[4].mxu1 %vm479_vm1, %v16864_v27  ;;  %14071 = vmatmul.mubr.msk.f32.gmra.mrb[2].mxu0 %vm479_vm1, %v16866_v28 }
  0x84   : > { %13876 = vmatprep.mubr.msk.f32.mxu1 %vm479_vm1, %v16870_v29  ;;  %14073 = vmatprep.mubr.msk.f32.mxu0 %vm479_vm1, %v16872_v30 }
  0x87   : > { %13877 = vmatmul.mubr.msk.f32.gmra.mrb[6].mxu1 %vm479_vm1, %v16884_v31  ;;  %14074 = vmatmul.mubr.msk.f32.gmra.mrb[4].mxu0 %vm479_vm1, %v16886_v32 }
  0x88   : > { %13879 = vmatprep.mubr.msk.f32.mxu1 %vm479_vm1, %v16888_v33  ;;  %14076 = vmatprep.mubr.msk.f32.mxu0 %vm479_vm1, %v16890_v34 }
  0x8b   : > { %13880 = vmatmul.mubr.msk.f32.gmra.mrb[8].mxu1 %vm479_vm1, %v16900_v36  ;;  %14077 = vmatmul.mubr.msk.f32.gmra.mrb[6].mxu0 %vm479_vm1, %v16902_v37 }
  0x8c   : > { %13882 = vmatprep.mubr.msk.f32.mxu1 %vm479_vm1, %v16904_v38  ;;  %14079 = vmatprep.mubr.msk.f32.mxu0 %vm479_vm1, %v16906_v3 }
  0x8f   : > { %13883 = vmatmul.mubr.msk.f32.gmra.mrb[10].mxu1 %vm479_vm1, %v16916_v40  ;;  %14080 = vmatmul.mubr.msk.f32.gmra.mrb[8].mxu0 %vm479_vm1, %v16918_v41 }
  0x90   : > { %13885 = vmatprep.mubr.msk.f32.mxu1 %vm479_vm1, %v16920_v42  ;;  %14082 = vmatprep.mubr.msk.f32.mxu0 %vm479_vm1, %v16922_v43 }
  0x93   : > { %13886 = vmatmul.mubr.msk.f32.gmra.mrb[12].mxu1 %vm479_vm1, %v16932_v44  ;;  %14083 = vmatmul.mubr.msk.f32.gmra.mrb[10].mxu0 %vm479_vm1, %v16934_v45 }
  0x94   : > { %13888 = vmatprep.mubr.msk.f32.mxu1 %vm479_vm1, %v16936_v46  ;;  %14085 = vmatprep.mubr.msk.f32.mxu0 %vm479_vm1, %v16938_v47 }
  0x97   : > { %13889 = vmatmul.mubr.msk.f32.gmra.mrb[14].mxu1 %vm479_vm1, %v16948_v48  ;;  %14086 = vmatmul.mubr.msk.f32.gmra.mrb[12].mxu0 %vm479_vm1, %v16950_v49 }
  0x98   : > { %13891 = vmatprep.mubr.msk.f32.mxu1 %vm479_vm1, %v16952_v60  ;;  %14088 = vmatprep.mubr.msk.f32.mxu0 %vm479_vm1, %v16954_v14 }
  0x9b   : > { %13892 = vmatmul.mubr.msk.f32.gmra.mrb[16].mxu1 %vm479_vm1, %v16964_v16  ;;  %14089 = vmatmul.mubr.msk.f32.gmra.mrb[14].mxu0 %vm479_vm1, %v16966_v1 }
  0x9c   : > { %13894 = vmatprep.mubr.msk.f32.mxu1 %vm479_vm1, %v16968_v17  ;;  %14091 = vmatprep.mubr.msk.f32.mxu0 %vm479_vm1, %v16970_v15 }
  0x9f   : > { %13895 = vmatmul.mubr.msk.f32.gmra.mrb[18].mxu1 %vm479_vm1, %v16980_v13  ;;  %14092 = vmatmul.mubr.msk.f32.gmra.mrb[16].mxu0 %vm479_vm1, %v16982_v12 }
  0xa0   : > { %13897 = vmatprep.mubr.msk.f32.mxu1 %vm479_vm1, %v16984_v11  ;;  %14094 = vmatprep.mubr.msk.f32.mxu0 %vm479_vm1, %v16986_v10 }
  0xa3   : > { %13898 = vmatmul.mubr.msk.f32.gmra.mrb[20].mxu1 %vm479_vm1, %v16996_v9  ;;  %14095 = vmatmul.mubr.msk.f32.gmra.mrb[18].mxu0 %vm479_vm1, %v16998_v8 }
  0xa4   : > { %13900 = vmatprep.mubr.msk.f32.mxu1 %vm479_vm1, %v17000_v7  ;;  %14097 = vmatprep.mubr.msk.f32.mxu0 %vm479_vm1, %v17002_v4 }
  0xa7   : > { %13901 = vmatmul.mubr.msk.f32.gmra.mrb[22].mxu1 %vm479_vm1, %v17012_v2  ;;  %14098 = vmatmul.mubr.msk.f32.gmra.mrb[20].mxu0 %vm479_vm1, %v17014_v0 }
  0xa8   : > { %13903 = vmatprep.mubr.msk.f32.mxu1 %vm479_vm1, %v17016_v63  ;;  %14100 = vmatprep.mubr.msk.f32.mxu0 %vm479_vm1, %v17018_v62 }
  0xab   : > { %13904 = vmatmul.mubr.msk.f32.gmra.mrb[24].mxu1 %vm479_vm1, %v17028_v61  ;;  %14101 = vmatmul.mubr.msk.f32.gmra.mrb[22].mxu0 %vm479_vm1, %v17030_v59 }
  0xac   : > { %13906 = vmatprep.mubr.msk.f32.mxu1 %vm479_vm1, %v17032_v58  ;;  %14103 = vmatprep.mubr.msk.f32.mxu0 %vm479_vm1, %v17034_v57 }
  0xaf   : > { %13907 = vmatmul.mubr.msk.f32.gmra.mrb[26].mxu1 %vm479_vm1, %v17044_v56  ;;  %14104 = vmatmul.mubr.msk.f32.gmra.mrb[24].mxu0 %vm479_vm1, %v17046_v55 }
  0xb0   : > { %13909 = vmatprep.mubr.msk.f32.mxu1 %vm479_vm1, %v17048_v54  ;;  %14106 = vmatprep.mubr.msk.f32.mxu0 %vm479_vm1, %v17050_v53 }
  0xb3   : > { %13910 = vmatmul.mubr.msk.f32.gmra.mrb[28].mxu1 %vm479_vm1, %v17060_v52  ;;  %14107 = vmatmul.mubr.msk.f32.gmra.mrb[26].mxu0 %vm479_vm1, %v17062_v51 }
  0xb4   : > { %13912 = vmatprep.mubr.msk.f32.mxu1 %vm479_vm1, %v17064_v6  ;;  %14109 = vmatprep.mubr.msk.f32.mxu0 %vm479_vm1, %v17066_v50 }
  0xb7   : > { %13913 = vmatmul.mubr.msk.f32.gmra.mrb[30].mxu1 %vm479_vm1, %v17076_v5  ;;  %14110 = vmatmul.mubr.msk.f32.gmra.mrb[28].mxu0 %vm479_vm1, %v17078_v39 }
  0xb8   : > { %13917 = vmatprep.mubr.msk.f32.mxu1 %vm479_vm1, %v1394_v35  ;;  %14112 = vmatprep.mubr.msk.f32.mxu0 %vm479_vm1, %v17080_v19  ;;  %v17103_v35 = vld [vmem:[%s19665_s3 + $0x20] sm:$0x7]  ;;  %v19872_v19 = vld [vmem:[#allocation10_spill] sm:$0xff] }
  0xbb   : > { %13918 = vmatmul.mubr.msk.f32.vlgmr.msra.gmra.mrb[0].mxu1 %vm479_vm1, %v1395_v22  ;;  %14113 = vmatmul.mubr.msk.f32.gmra.mrb[30].mxu0 %vm479_vm1, %v17089_v18  ;;  %v2985_v22 = vld [vmem:[#allocation2 + $0x198] sm:$0xff]  ;;  %v19871_v18 = vld [vmem:[#allocation41_spill] sm:$0xff] }
  0xbc   : > { %13920 = vmatprep.mubr.msk.f32.mxu1 %vm479_vm1, %v16826_v20  ;;  %14117 = vmatprep.mubr.msk.f32.mxu0 %vm479_vm1, %v16844_v24  ;;  %v17213_v20 = vld [vmem:[#allocation2 + $0x180] sm:$0xff] }
  0xbd   : > { %13966 = vmatpush3.msk.msra.mxu1 %vm841_vm0, %v16834_v21  ;;  %v17223_v21 = vld [vmem:[#allocation2 + $0x188] sm:$0xff] }
  0xbf   : > { %13921 = vmatmul.mubr.msk.f32.gmra.mrb[2].mxu1 %vm479_vm1, %v16842_v23  ;;  %14118 = vmatmul.mubr.msk.f32.vlgmr.msra.gmra.mrb[0].mxu0 %vm479_vm1, %v16864_v27  ;;  %v19870_v23 = vld [vmem:[#allocation40_spill] sm:$0xff] }
  0xc0   : > { %14166 = vmatpush3.msk.msra.mxu0 %vm841_vm0, %v16852_v26  ;;  %13923 = vmatprep.mubr.msk.f32.mxu1 %vm479_vm1, %v16847_v25  ;;  %v2986_v26 = vld [vmem:[#allocation2 + $0x1a0] sm:$0xff] }
  0xc1   : > { %14120 = vmatprep.mubr.msk.f32.mxu0 %vm479_vm1, %v16870_v29  ;;  %14215 = vmatprep.subr.msk.mxu0 %vm841_vm0, %v17103_v35 }
  0xc3   : > { %13924 = vmatmul.mubr.msk.f32.gmra.mrb[4].mxu1 %vm479_vm1, %v16866_v28  ;;  %14121 = vmatmul.mubr.msk.f32.gmra.mrb[2].mxu0 %vm479_vm1, %v16884_v31 }
  0xc4   : > { %13926 = vmatprep.mubr.msk.f32.mxu1 %vm479_vm1, %v16872_v30  ;;  %14123 = vmatprep.mubr.msk.f32.mxu0 %vm479_vm1, %v16888_v33 }
  0xc7   : > { %13927 = vmatmul.mubr.msk.f32.gmra.mrb[6].mxu1 %vm479_vm1, %v16886_v32  ;;  %14124 = vmatmul.mubr.msk.f32.gmra.mrb[4].mxu0 %vm479_vm1, %v16900_v36 }
  0xc8   : > { %13929 = vmatprep.mubr.msk.f32.mxu1 %vm479_vm1, %v16890_v34  ;;  %14126 = vmatprep.mubr.msk.f32.mxu0 %vm479_vm1, %v16904_v38 }
  0xcb   : > { %13930 = vmatmul.mubr.msk.f32.gmra.mrb[8].mxu1 %vm479_vm1, %v16902_v37  ;;  %14127 = vmatmul.mubr.msk.f32.gmra.mrb[6].mxu0 %vm479_vm1, %v16916_v40 }
  0xcc   : > { %13932 = vmatprep.mubr.msk.f32.mxu1 %vm479_vm1, %v16906_v3  ;;  %14129 = vmatprep.mubr.msk.f32.mxu0 %vm479_vm1, %v16920_v42 }
  0xcf   : > { %13933 = vmatmul.mubr.msk.f32.gmra.mrb[10].mxu1 %vm479_vm1, %v16918_v41  ;;  %14130 = vmatmul.mubr.msk.f32.gmra.mrb[8].mxu0 %vm479_vm1, %v16932_v44 }
  0xd0   : > { %13935 = vmatprep.mubr.msk.f32.mxu1 %vm479_vm1, %v16922_v43  ;;  %14132 = vmatprep.mubr.msk.f32.mxu0 %vm479_vm1, %v16936_v46 }
  0xd3   : > { %13936 = vmatmul.mubr.msk.f32.gmra.mrb[12].mxu1 %vm479_vm1, %v16934_v45  ;;  %14133 = vmatmul.mubr.msk.f32.gmra.mrb[10].mxu0 %vm479_vm1, %v16948_v48 }
  0xd4   : > { %13938 = vmatprep.mubr.msk.f32.mxu1 %vm479_vm1, %v16938_v47  ;;  %14135 = vmatprep.mubr.msk.f32.mxu0 %vm479_vm1, %v16952_v60 }
  0xd7   : > { %13939 = vmatmul.mubr.msk.f32.gmra.mrb[14].mxu1 %vm479_vm1, %v16950_v49  ;;  %14136 = vmatmul.mubr.msk.f32.gmra.mrb[12].mxu0 %vm479_vm1, %v16964_v16 }
  0xd8   : > { %13941 = vmatprep.mubr.msk.f32.mxu1 %vm479_vm1, %v16954_v14  ;;  %14138 = vmatprep.mubr.msk.f32.mxu0 %vm479_vm1, %v16968_v17 }
  0xdb   : > { %13942 = vmatmul.mubr.msk.f32.gmra.mrb[16].mxu1 %vm479_vm1, %v16966_v1  ;;  %14139 = vmatmul.mubr.msk.f32.gmra.mrb[14].mxu0 %vm479_vm1, %v16980_v13 }
  0xdc   : > { %13944 = vmatprep.mubr.msk.f32.mxu1 %vm479_vm1, %v16970_v15  ;;  %14141 = vmatprep.mubr.msk.f32.mxu0 %vm479_vm1, %v16984_v11 }
  0xdf   : > { %13945 = vmatmul.mubr.msk.f32.gmra.mrb[18].mxu1 %vm479_vm1, %v16982_v12  ;;  %14142 = vmatmul.mubr.msk.f32.gmra.mrb[16].mxu0 %vm479_vm1, %v16996_v9 }
  0xe0   : > { %13947 = vmatprep.mubr.msk.f32.mxu1 %vm479_vm1, %v16986_v10  ;;  %14144 = vmatprep.mubr.msk.f32.mxu0 %vm479_vm1, %v17000_v7 }
  0xe3   : > { %13948 = vmatmul.mubr.msk.f32.gmra.mrb[20].mxu1 %vm479_vm1, %v16998_v8  ;;  %14145 = vmatmul.mubr.msk.f32.gmra.mrb[18].mxu0 %vm479_vm1, %v17012_v2 }
  0xe4   : > { %13950 = vmatprep.mubr.msk.f32.mxu1 %vm479_vm1, %v17002_v4  ;;  %14147 = vmatprep.mubr.msk.f32.mxu0 %vm479_vm1, %v17016_v63 }
  0xe7   : > { %13951 = vmatmul.mubr.msk.f32.gmra.mrb[22].mxu1 %vm479_vm1, %v17014_v0  ;;  %14148 = vmatmul.mubr.msk.f32.gmra.mrb[20].mxu0 %vm479_vm1, %v17028_v61 }
  0xe8   : > { %13953 = vmatprep.mubr.msk.f32.mxu1 %vm479_vm1, %v17018_v62  ;;  %14150 = vmatprep.mubr.msk.f32.mxu0 %vm479_vm1, %v17032_v58 }
  0xeb   : > { %13954 = vmatmul.mubr.msk.f32.gmra.mrb[24].mxu1 %vm479_vm1, %v17030_v59  ;;  %14151 = vmatmul.mubr.msk.f32.gmra.mrb[22].mxu0 %vm479_vm1, %v17044_v56 }
  0xec   : > { %13956 = vmatprep.mubr.msk.f32.mxu1 %vm479_vm1, %v17034_v57  ;;  %14153 = vmatprep.mubr.msk.f32.mxu0 %vm479_vm1, %v17048_v54 }
  0xef   : > { %13957 = vmatmul.mubr.msk.f32.gmra.mrb[26].mxu1 %vm479_vm1, %v17046_v55  ;;  %14154 = vmatmul.mubr.msk.f32.gmra.mrb[24].mxu0 %vm479_vm1, %v17060_v52 }
  0xf0   : > { %13959 = vmatprep.mubr.msk.f32.mxu1 %vm479_vm1, %v17050_v53  ;;  %14156 = vmatprep.mubr.msk.f32.mxu0 %vm479_vm1, %v17064_v6 }
  0xf3   : > { %13960 = vmatmul.mubr.msk.f32.gmra.mrb[28].mxu1 %vm479_vm1, %v17062_v51  ;;  %14157 = vmatmul.mubr.msk.f32.gmra.mrb[26].mxu0 %vm479_vm1, %v17076_v5 }
  0xf4   : > { %13962 = vmatprep.mubr.msk.f32.mxu1 %vm479_vm1, %v17066_v50  ;;  %14159 = vmatprep.mubr.msk.f32.mxu0 %vm479_vm1, %v17213_v20 }
  0xf7   : > { %13963 = vmatmul.mubr.msk.f32.gmra.mrb[30].mxu1 %vm479_vm1, %v17078_v39  ;;  %14160 = vmatmul.mubr.msk.f32.gmra.mrb[28].mxu0 %vm479_vm1, %v17223_v21  ;;  %v19873_v39 = vld [vmem:[#allocation11_spill] sm:$0xff] }
  0xf8   : > { %13967 = vmatprep.mubr.msk.f32.mxu1 %vm479_vm1, %v19870_v23  ;;  %14162 = vmatprep.mubr.msk.f32.mxu0 %vm479_vm1, %v2985_v22 }
  0xfb   : > { %13968 = vmatmul.mubr.msk.f32.vlgmr.msra.gmra.mrb[0].mxu1 %vm479_vm1, %v19871_v18  ;;  %14163 = vmatmul.mubr.msk.f32.gmra.mrb[30].mxu0 %vm479_vm1, %v2986_v26  ;;  %v19874_v18 = vld [vmem:[#allocation12_spill] sm:$0xff] }
  0xfc   : > { %13970 = vmatprep.mubr.msk.f32.mxu1 %vm479_vm1, %v16844_v24  ;;  %14167 = vmatprep.mubr.msk.f32.mxu0 %vm479_vm1, %v19872_v19  ;;  %v19875_v24 = vld [vmem:[#allocation13_spill] sm:$0xff]  ;;  %v19876_v19 = vld [vmem:[#allocation14_spill] sm:$0xff] }
  0xff   : > { %13971 = vmatmul.mubr.msk.f32.gmra.mrb[2].mxu1 %vm479_vm1, %v16864_v27  ;;  %14168 = vmatmul.mubr.msk.f32.vlgmr.msra.gmra.mrb[0].mxu0 %vm479_vm1, %v19873_v39  ;;  %v19877_v39 = vld [vmem:[#allocation15_spill] sm:$0xff]  ;;  %v19878_v27 = vld [vmem:[#allocation16_spill] sm:$0xff] }
 0x100   : > { %14216 = vmatpush3.msk.msra.mxu0 %vm841_vm0, %v17103_v35  ;;  %13973 = vmatprep.mubr.msk.f32.mxu1 %vm479_vm1, %v16870_v29  ;;  %v19879_v29 = vld [vmem:[#allocation17_spill] sm:$0xff] }
 0x101   : > { %14170 = vmatprep.mubr.msk.f32.mxu0 %vm479_vm1, %v19874_v18 }
 0x103   : > { %13974 = vmatmul.mubr.msk.f32.gmra.mrb[4].mxu1 %vm479_vm1, %v16884_v31  ;;  %14171 = vmatmul.mubr.msk.f32.gmra.mrb[2].mxu0 %vm479_vm1, %v19875_v24  ;;  %v19880_v31 = vld [vmem:[#allocation18_spill] sm:$0xff] }
 0x104   : > { %13976 = vmatprep.mubr.msk.f32.mxu1 %vm479_vm1, %v16888_v33  ;;  %14173 = vmatprep.mubr.msk.f32.mxu0 %vm479_vm1, %v19876_v19  ;;  %v19881_v33 = vld [vmem:[#allocation19_spill] sm:$0xff] }
 0x107   : > { %13977 = vmatmul.mubr.msk.f32.gmra.mrb[6].mxu1 %vm479_vm1, %v16900_v36  ;;  %14174 = vmatmul.mubr.msk.f32.gmra.mrb[4].mxu0 %vm479_vm1, %v19877_v39  ;;  %v19882_v36 = vld [vmem:[#allocation20_spill] sm:$0xff] }
 0x108   : > { %13979 = vmatprep.mubr.msk.f32.mxu1 %vm479_vm1, %v16904_v38  ;;  %14176 = vmatprep.mubr.msk.f32.mxu0 %vm479_vm1, %v19878_v27  ;;  %v19883_v38 = vld [vmem:[#allocation21_spill] sm:$0xff] }
 0x10b   : > { %13980 = vmatmul.mubr.msk.f32.gmra.mrb[8].mxu1 %vm479_vm1, %v16916_v40  ;;  %14177 = vmatmul.mubr.msk.f32.gmra.mrb[6].mxu0 %vm479_vm1, %v19879_v29  ;;  %v19884_v40 = vld [vmem:[#allocation22_spill] sm:$0xff] }
 0x10c   : > { %13982 = vmatprep.mubr.msk.f32.mxu1 %vm479_vm1, %v16920_v42  ;;  %14179 = vmatprep.mubr.msk.f32.mxu0 %vm479_vm1, %v19880_v31  ;;  %v19885_v42 = vld [vmem:[#allocation23_spill] sm:$0xff] }
 0x10f   : > { %13983 = vmatmul.mubr.msk.f32.gmra.mrb[10].mxu1 %vm479_vm1, %v16932_v44  ;;  %14180 = vmatmul.mubr.msk.f32.gmra.mrb[8].mxu0 %vm479_vm1, %v19881_v33  ;;  %v19886_v44 = vld [vmem:[#allocation24_spill] sm:$0xff] }
 0x110   : > { %13985 = vmatprep.mubr.msk.f32.mxu1 %vm479_vm1, %v16936_v46  ;;  %14182 = vmatprep.mubr.msk.f32.mxu0 %vm479_vm1, %v19882_v36  ;;  %v19887_v46 = vld [vmem:[#allocation25_spill] sm:$0xff] }
 0x113   : > { %13986 = vmatmul.mubr.msk.f32.gmra.mrb[12].mxu1 %vm479_vm1, %v16948_v48  ;;  %14183 = vmatmul.mubr.msk.f32.gmra.mrb[10].mxu0 %vm479_vm1, %v19883_v38  ;;  %v19888_v48 = vld [vmem:[#allocation26_spill] sm:$0xff] }
 0x114   : > { %13988 = vmatprep.mubr.msk.f32.mxu1 %vm479_vm1, %v16952_v60  ;;  %14185 = vmatprep.mubr.msk.f32.mxu0 %vm479_vm1, %v19884_v40  ;;  %v19889_v60 = vld [vmem:[#allocation27_spill] sm:$0xff]  ;;  %v17702_v40 = vld [vmem:[%s19666_s4] ss:$0 sm:$0xff] }
 0x117   : > { %13989 = vmatmul.mubr.msk.f32.gmra.mrb[14].mxu1 %vm479_vm1, %v16964_v16  ;;  %14186 = vmatmul.mubr.msk.f32.gmra.mrb[12].mxu0 %vm479_vm1, %v19885_v42  ;;  %v3376_v16 = vld [vmem:[#allocation2 + $0x1a1] sm:$0xff] }
 0x118   : > { %13991 = vmatprep.mubr.msk.f32.mxu1 %vm479_vm1, %v16968_v17  ;;  %14188 = vmatprep.mubr.msk.f32.mxu0 %vm479_vm1, %v19886_v44  ;;  %v19890_v17 = vld [vmem:[#allocation28_spill] sm:$0xff] }
 0x11b   : > { %13992 = vmatmul.mubr.msk.f32.gmra.mrb[16].mxu1 %vm479_vm1, %v16980_v13  ;;  %14189 = vmatmul.mubr.msk.f32.gmra.mrb[14].mxu0 %vm479_vm1, %v19887_v46  ;;  %v19891_v13 = vld [vmem:[#allocation29_spill] sm:$0xff] }
 0x11c   : > { %13994 = vmatprep.mubr.msk.f32.mxu1 %vm479_vm1, %v16984_v11  ;;  %14191 = vmatprep.mubr.msk.f32.mxu0 %vm479_vm1, %v19888_v48  ;;  %v19892_v11 = vld [vmem:[#allocation30_spill] sm:$0xff] }
 0x11f   : > { %13995 = vmatmul.mubr.msk.f32.gmra.mrb[18].mxu1 %vm479_vm1, %v16996_v9  ;;  %14192 = vmatmul.mubr.msk.f32.gmra.mrb[16].mxu0 %vm479_vm1, %v19889_v60  ;;  %v19893_v9 = vld [vmem:[#allocation31_spill] sm:$0xff] }
 0x120   : > { %13997 = vmatprep.mubr.msk.f32.mxu1 %vm479_vm1, %v17000_v7  ;;  %14194 = vmatprep.mubr.msk.f32.mxu0 %vm479_vm1, %v19890_v17  ;;  %v19894_v7 = vld [vmem:[#allocation32_spill] sm:$0xff] }
 0x123   : > { %13998 = vmatmul.mubr.msk.f32.gmra.mrb[20].mxu1 %vm479_vm1, %v17012_v2  ;;  %14195 = vmatmul.mubr.msk.f32.gmra.mrb[18].mxu0 %vm479_vm1, %v19891_v13  ;;  %v19895_v2 = vld [vmem:[#allocation33_spill] sm:$0xff] }
 0x124   : > { %14000 = vmatprep.mubr.msk.f32.mxu1 %vm479_vm1, %v17016_v63  ;;  %14197 = vmatprep.mubr.msk.f32.mxu0 %vm479_vm1, %v19892_v11  ;;  %v19896_v63 = vld [vmem:[#allocation34_spill] sm:$0xff] }
 0x127   : > { %14001 = vmatmul.mubr.msk.f32.gmra.mrb[22].mxu1 %vm479_vm1, %v17028_v61  ;;  %14198 = vmatmul.mubr.msk.f32.gmra.mrb[20].mxu0 %vm479_vm1, %v19893_v9  ;;  %v19897_v61 = vld [vmem:[#allocation35_spill] sm:$0xff] }
 0x128   : > { %14003 = vmatprep.mubr.msk.f32.mxu1 %vm479_vm1, %v17032_v58  ;;  %14200 = vmatprep.mubr.msk.f32.mxu0 %vm479_vm1, %v19894_v7  ;;  %v19898_v58 = vld [vmem:[#allocation36_spill] sm:$0xff] }
 0x12b   : > { %14004 = vmatmul.mubr.msk.f32.gmra.mrb[24].mxu1 %vm479_vm1, %v17044_v56  ;;  %14201 = vmatmul.mubr.msk.f32.gmra.mrb[22].mxu0 %vm479_vm1, %v19895_v2  ;;  %v19899_v56 = vld [vmem:[#allocation37_spill] sm:$0xff] }
 0x12c   : > { %14006 = vmatprep.mubr.msk.f32.mxu1 %vm479_vm1, %v17048_v54  ;;  %14203 = vmatprep.mubr.msk.f32.mxu0 %vm479_vm1, %v19896_v63  ;;  %v19900_v54 = vld [vmem:[#allocation38_spill] sm:$0xff] }
 0x12f   : > { %14007 = vmatmul.mubr.msk.f32.gmra.mrb[26].mxu1 %vm479_vm1, %v17060_v52  ;;  %14204 = vmatmul.mubr.msk.f32.gmra.mrb[24].mxu0 %vm479_vm1, %v19897_v61  ;;  %v3375_v52 = vld [vmem:[#allocation2 + $0x199] sm:$0xff] }
 0x130   : > { %14009 = vmatprep.mubr.msk.f32.mxu1 %vm479_vm1, %v17064_v6  ;;  %14206 = vmatprep.mubr.msk.f32.mxu0 %vm479_vm1, %v19898_v58  ;;  %v19901_v6 = vld [vmem:[#allocation39_spill] sm:$0xff] }
 0x133   : > { %14010 = vmatmul.mubr.msk.f32.gmra.mrb[28].mxu1 %vm479_vm1, %v17076_v5  ;;  %14207 = vmatmul.mubr.msk.f32.gmra.mrb[26].mxu0 %vm479_vm1, %v19899_v56  ;;  %v12186_v5 = vld [vmem:[%s19667_s5 + $0x8] sm:$0xff] }
 0x134   : > { %14012 = vmatprep.mubr.msk.f32.mxu1 %vm479_vm1, %v17213_v20  ;;  %14209 = vmatprep.mubr.msk.f32.mxu0 %vm479_vm1, %v19900_v54 }
 0x135   : > { %14265 = vmatprep.subr.mxu1 %v12186_v5 }
 0x136   : > { %14266 = vmatpush3.msra.mxu1 %v12186_v5 }
 0x137   : > { %14013 = vmatmul.mubr.msk.f32.gmra.mrb[30].mxu1 %vm479_vm1, %v17223_v21  ;;  %14210 = vmatmul.mubr.msk.f32.gmra.mrb[28].mxu0 %vm479_vm1, %v19901_v6 }
 0x138   : > { %14212 = vmatprep.mubr.msk.f32.mxu0 %vm479_vm1, %v3375_v52 }
 0x13b   : > { %14213 = vmatmul.mubr.msk.f32.gmra.mrb[30].mxu0 %vm479_vm1, %v3376_v16 }
 0x13c   : > { %14217 = vmatprep.mubr.msk.f32.mxu0 %vm479_vm1, %v16847_v25 }
 0x13f   : > { %14218 = vmatmul.mubr.msk.f32.vlgmr.msra.gmra.mrb[0].mxu0 %vm479_vm1, %v16866_v28 }
 0x140   : > { %14220 = vmatprep.mubr.msk.f32.mxu0 %vm479_vm1, %v16872_v30 }
 0x143   : > { %14221 = vmatmul.mubr.msk.f32.gmra.mrb[2].mxu0 %vm479_vm1, %v16886_v32  ;;  %v17648_v32 = vld [vmem:[%s19667_s5 + $0x10] sm:$0xff] }
 0x144   : > { %14223 = vmatprep.mubr.msk.f32.mxu0 %vm479_vm1, %v16890_v34 }
 0x147   : > { %14224 = vmatmul.mubr.msk.f32.gmra.mrb[4].mxu0 %vm479_vm1, %v16902_v37 }
 0x148   : > { %14226 = vmatprep.mubr.msk.f32.mxu0 %vm479_vm1, %v16906_v3 }
 0x14b   : > { %14227 = vmatmul.mubr.msk.f32.gmra.mrb[6].mxu0 %vm479_vm1, %v16918_v41 }
 0x14c   : > { %14229 = vmatprep.mubr.msk.f32.mxu0 %vm479_vm1, %v16922_v43 }
 0x14f   : > { %14230 = vmatmul.mubr.msk.f32.gmra.mrb[8].mxu0 %vm479_vm1, %v16934_v45 }
 0x150   : > { %14232 = vmatprep.mubr.msk.f32.mxu0 %vm479_vm1, %v16938_v47 }
 0x153   : > { %14233 = vmatmul.mubr.msk.f32.gmra.mrb[10].mxu0 %vm479_vm1, %v16950_v49 }
 0x154   : > { %14235 = vmatprep.mubr.msk.f32.mxu0 %vm479_vm1, %v16954_v14 }
 0x157   : > { %14236 = vmatmul.mubr.msk.f32.gmra.mrb[12].mxu0 %vm479_vm1, %v16966_v1  ;;  %v19902_v1 = vld [vmem:[#allocation42_spill] sm:$0xff] }
 0x158   : > { %14238 = vmatprep.mubr.msk.f32.mxu0 %vm479_vm1, %v16970_v15 }
 0x15b   : > { %14239 = vmatmul.mubr.msk.f32.gmra.mrb[14].mxu0 %vm479_vm1, %v16982_v12 }
 0x15c   : > { %14241 = vmatprep.mubr.msk.f32.mxu0 %vm479_vm1, %v16986_v10 }
 0x15f   : > { %14242 = vmatmul.mubr.msk.f32.gmra.mrb[16].mxu0 %vm479_vm1, %v16998_v8 }
 0x160   : > { %14244 = vmatprep.mubr.msk.f32.mxu0 %vm479_vm1, %v17002_v4 }
 0x163   : > { %14245 = vmatmul.mubr.msk.f32.gmra.mrb[18].mxu0 %vm479_vm1, %v17014_v0  ;;  %v4317_v0 = vld [vmem:[%s19667_s5] sm:$0xff] }
 0x164   : > { %14247 = vmatprep.mubr.msk.f32.mxu0 %vm479_vm1, %v17018_v62  ;;  %v19903_v62 = vld [vmem:[#allocation43_spill] sm:$0xff]  ;;  %14315 = vmatprep.subr.mxu1 %v4317_v0 }
 0x167   : > { %14248 = vmatmul.mubr.msk.f32.gmra.mrb[20].mxu0 %vm479_vm1, %v17030_v59  ;;  %v3765_v59 = vld [vmem:[#allocation2 + $0x19a] sm:$0xff] }
 0x168   : > { %14250 = vmatprep.mubr.msk.f32.mxu0 %vm479_vm1, %v17034_v57  ;;  %v19904_v57 = vld [vmem:[#allocation44_spill] sm:$0xff] }
 0x16b   : > { %14251 = vmatmul.mubr.msk.f32.gmra.mrb[22].mxu0 %vm479_vm1, %v17046_v55  ;;  %v3766_v55 = vld [vmem:[#allocation2 + $0x1a2] sm:$0xff] }
 0x16c   : > { %14253 = vmatprep.mubr.msk.f32.mxu0 %vm479_vm1, %v17050_v53 }
 0x16f   : > { %14254 = vmatmul.mubr.msk.f32.gmra.mrb[24].mxu0 %vm479_vm1, %v17062_v51  ;;  %v19905_v51 = vmov 0.0  }
 0x170   : > { %14256 = vmatprep.mubr.msk.f32.mxu0 %vm479_vm1, %v17066_v50  ;;  %4202 = vst.msk [vmem:[#allocation3 + $0x20] sm:$0xff] %vm4196_vm3, %v19905_v51  ;;  %4197 = vst.msk [vmem:[#allocation3] sm:$0xff] %vm4196_vm3, %v19905_v51 }
 0x171   : > { %4198 = vst.msk [vmem:[#allocation3 + $0x8] sm:$0xff] %vm4196_vm3, %v19905_v51  ;;  %4201 = vst.msk [vmem:[#allocation3 + $0x18] sm:$0xff] %vm4196_vm3, %v19905_v51 }
 0x172   : > { %4204 = vst.msk [vmem:[#allocation3 + $0x30] sm:$0xff] %vm4196_vm3, %v19905_v51  ;;  %4205 = vst.msk [vmem:[#allocation3 + $0x38] sm:$0xff] %vm4196_vm3, %v19905_v51 }
 0x173   : > { %14257 = vmatmul.mubr.msk.f32.gmra.mrb[26].mxu0 %vm479_vm1, %v19902_v1  ;;  %4207 = vst.msk [vmem:[#allocation3 + $0x48] sm:$0xff] %vm4196_vm3, %v19905_v51  ;;  %4208 = vst.msk [vmem:[#allocation3 + $0x50] sm:$0xff] %vm4196_vm3, %v19905_v51 }
 0x174   : > { %14259 = vmatprep.mubr.msk.f32.mxu0 %vm479_vm1, %v19903_v62  ;;  %4210 = vst.msk [vmem:[#allocation3 + $0x60] sm:$0xff] %vm4196_vm3, %v19905_v51  ;;  %4211 = vst.msk [vmem:[#allocation3 + $0x68] sm:$0xff] %vm4196_vm3, %v19905_v51 }
 0x175   : > { %4213 = vst.msk [vmem:[#allocation3 + $0x78] sm:$0xff] %vm4196_vm3, %v19905_v51  ;;  %4214 = vst.msk [vmem:[#allocation3 + $0x80] sm:$0xff] %vm4196_vm3, %v19905_v51 }
 0x176   : > { %4216 = vst.msk [vmem:[#allocation3 + $0x90] sm:$0xff] %vm4196_vm3, %v19905_v51  ;;  %4217 = vst.msk [vmem:[#allocation3 + $0x98] sm:$0xff] %vm4196_vm3, %v19905_v51 }
 0x177   : > { %14260 = vmatmul.mubr.msk.f32.gmra.mrb[28].mxu0 %vm479_vm1, %v19904_v57  ;;  %4219 = vst.msk [vmem:[#allocation3 + $0xa8] sm:$0xff] %vm4196_vm3, %v19905_v51  ;;  %4220 = vst.msk [vmem:[#allocation3 + $0xb0] sm:$0xff] %vm4196_vm3, %v19905_v51 }
 0x178   : > { %14262 = vmatprep.mubr.msk.f32.mxu0 %vm479_vm1, %v3765_v59  ;;  %4222 = vst.msk [vmem:[#allocation3 + $0xc0] sm:$0xff] %vm4196_vm3, %v19905_v51  ;;  %4223 = vst.msk [vmem:[#allocation3 + $0xc8] sm:$0xff] %vm4196_vm3, %v19905_v51  ;;  %v4318_v50 = vld [vmem:[#allocation3 + $0x1] sm:$0xff] }
 0x179   : > { %4225 = vst.msk [vmem:[#allocation3 + $0xd8] sm:$0xff] %vm4196_vm3, %v19905_v51  ;;  %4226 = vst.msk [vmem:[#allocation3 + $0xe0] sm:$0xff] %vm4196_vm3, %v19905_v51  ;;  %14267 = vmatprep.mubr.msk.f32.mxu1 %vm4196_vm3, %v4318_v50 }
 0x17a   : > { %4228 = vst.msk [vmem:[#allocation3 + $0xf0] sm:$0xff] %vm4196_vm3, %v19905_v51  ;;  %4229 = vst.msk [vmem:[#allocation3 + $0xf8] sm:$0xff] %vm4196_vm3, %v19905_v51 }
 0x17b   : > { %14263 = vmatmul.mubr.msk.f32.gmra.mrb[30].mxu0 %vm479_vm1, %v3766_v55  ;;  %4231 = vst.msk [vmem:[#allocation3 + $0x108] sm:$0xff] %vm4196_vm3, %v19905_v51  ;;  %4232 = vst.msk [vmem:[#allocation3 + $0x110] sm:$0xff] %vm4196_vm3, %v19905_v51 }
 0x17c   : > { %4234 = vst.msk [vmem:[#allocation3 + $0x120] sm:$0xff] %vm4196_vm3, %v19905_v51  ;;  %4235 = vst.msk [vmem:[#allocation3 + $0x128] sm:$0xff] %vm4196_vm3, %v19905_v51 }
 0x17d   : > { %4237 = vst.msk [vmem:[#allocation3 + $0x138] sm:$0xff] %vm4196_vm3, %v19905_v51  ;;  %4238 = vst.msk [vmem:[#allocation3 + $0x140] sm:$0xff] %vm4196_vm3, %v19905_v51 }
 0x17e   : > { %4240 = vst.msk [vmem:[#allocation3 + $0x150] sm:$0xff] %vm4196_vm3, %v19905_v51  ;;  %4241 = vst.msk [vmem:[#allocation3 + $0x158] sm:$0xff] %vm4196_vm3, %v19905_v51 }
 0x17f   : > { %4243 = vst.msk [vmem:[#allocation3 + $0x168] sm:$0xff] %vm4196_vm3, %v19905_v51  ;;  %4244 = vst.msk [vmem:[#allocation3 + $0x170] sm:$0xff] %vm4196_vm3, %v19905_v51 }
 0x180   : > { %4246 = vst.msk [vmem:[#allocation3 + $0x180] sm:$0xff] %vm4196_vm3, %v19905_v51  ;;  %4247 = vst.msk [vmem:[#allocation3 + $0x188] sm:$0xff] %vm4196_vm3, %v19905_v51 }
 0x181   : > { %4249 = vst.msk [vmem:[#allocation3 + $0x198] sm:$0xff] %vm4196_vm3, %v19905_v51  ;;  %4250 = vst.msk [vmem:[#allocation3 + $0x1a0] sm:$0xff] %vm4196_vm3, %v19905_v51 }
 0x182   : > { %7775 = vst.msk [vmem:[#allocation4] sm:$0xff] %vm4196_vm3, %v19905_v51  ;;  %7776 = vst.msk [vmem:[#allocation4 + $0x8] sm:$0xff] %vm4196_vm3, %v19905_v51 }
 0x183   : > { %7778 = vst.msk [vmem:[#allocation4 + $0x18] sm:$0xff] %vm4196_vm3, %v19905_v51  ;;  %7779 = vst.msk [vmem:[#allocation4 + $0x20] sm:$0xff] %vm4196_vm3, %v19905_v51 }
 0x184   : > { %7781 = vst.msk [vmem:[#allocation4 + $0x30] sm:$0xff] %vm4196_vm3, %v19905_v51  ;;  %7782 = vst.msk [vmem:[#allocation4 + $0x38] sm:$0xff] %vm4196_vm3, %v19905_v51 }
 0x185   : > { %7784 = vst.msk [vmem:[#allocation4 + $0x48] sm:$0xff] %vm4196_vm3, %v19905_v51  ;;  %7785 = vst.msk [vmem:[#allocation4 + $0x50] sm:$0xff] %vm4196_vm3, %v19905_v51 }
 0x186   : > { %7787 = vst.msk [vmem:[#allocation4 + $0x60] sm:$0xff] %vm4196_vm3, %v19905_v51  ;;  %7788 = vst.msk [vmem:[#allocation4 + $0x68] sm:$0xff] %vm4196_vm3, %v19905_v51 }
 0x187   : > { %7790 = vst.msk [vmem:[#allocation4 + $0x78] sm:$0xff] %vm4196_vm3, %v19905_v51  ;;  %7791 = vst.msk [vmem:[#allocation4 + $0x80] sm:$0xff] %vm4196_vm3, %v19905_v51 }
 0x188   : > { %7793 = vst.msk [vmem:[#allocation4 + $0x90] sm:$0xff] %vm4196_vm3, %v19905_v51  ;;  %7794 = vst.msk [vmem:[#allocation4 + $0x98] sm:$0xff] %vm4196_vm3, %v19905_v51 }
 0x189   : > { %7796 = vst.msk [vmem:[#allocation4 + $0xa8] sm:$0xff] %vm4196_vm3, %v19905_v51  ;;  %7797 = vst.msk [vmem:[#allocation4 + $0xb0] sm:$0xff] %vm4196_vm3, %v19905_v51 }
 0x18a   : > { %7799 = vst.msk [vmem:[#allocation4 + $0xc0] sm:$0xff] %vm4196_vm3, %v19905_v51  ;;  %7800 = vst.msk [vmem:[#allocation4 + $0xc8] sm:$0xff] %vm4196_vm3, %v19905_v51 }
 0x18b   : > { %7802 = vst.msk [vmem:[#allocation4 + $0xd8] sm:$0xff] %vm4196_vm3, %v19905_v51  ;;  %7803 = vst.msk [vmem:[#allocation4 + $0xe0] sm:$0xff] %vm4196_vm3, %v19905_v51 }
 0x18c   : > { %7805 = vst.msk [vmem:[#allocation4 + $0xf0] sm:$0xff] %vm4196_vm3, %v19905_v51  ;;  %7806 = vst.msk [vmem:[#allocation4 + $0xf8] sm:$0xff] %vm4196_vm3, %v19905_v51 }
 0x18d   : > { %7808 = vst.msk [vmem:[#allocation4 + $0x108] sm:$0xff] %vm4196_vm3, %v19905_v51  ;;  %7809 = vst.msk [vmem:[#allocation4 + $0x110] sm:$0xff] %vm4196_vm3, %v19905_v51 }
 0x18e   : > { %7811 = vst.msk [vmem:[#allocation4 + $0x120] sm:$0xff] %vm4196_vm3, %v19905_v51  ;;  %7812 = vst.msk [vmem:[#allocation4 + $0x128] sm:$0xff] %vm4196_vm3, %v19905_v51 }
 0x18f   : > { %7814 = vst.msk [vmem:[#allocation4 + $0x138] sm:$0xff] %vm4196_vm3, %v19905_v51  ;;  %7815 = vst.msk [vmem:[#allocation4 + $0x140] sm:$0xff] %vm4196_vm3, %v19905_v51 }
 0x190   : > { %7817 = vst.msk [vmem:[#allocation4 + $0x150] sm:$0xff] %vm4196_vm3, %v19905_v51  ;;  %7818 = vst.msk [vmem:[#allocation4 + $0x158] sm:$0xff] %vm4196_vm3, %v19905_v51 }
 0x191   : > { %7820 = vst.msk [vmem:[#allocation4 + $0x168] sm:$0xff] %vm4196_vm3, %v19905_v51  ;;  %7821 = vst.msk [vmem:[#allocation4 + $0x170] sm:$0xff] %vm4196_vm3, %v19905_v51 }
 0x192   : > { %7823 = vst.msk [vmem:[#allocation4 + $0x180] sm:$0xff] %vm4196_vm3, %v19905_v51  ;;  %7824 = vst.msk [vmem:[#allocation4 + $0x188] sm:$0xff] %vm4196_vm3, %v19905_v51 }
 0x193   : > { %7826 = vst.msk [vmem:[#allocation4 + $0x198] sm:$0xff] %vm4196_vm3, %v19905_v51  ;;  %7827 = vst.msk [vmem:[#allocation4 + $0x1a0] sm:$0xff] %vm4196_vm3, %v19905_v51 }
 0x194   : > { %4203 = vst.msk [vmem:[#allocation3 + $0x28] sm:$0x3] %vm4199_vm4, %v19905_v51  ;;  %4200 = vst.msk [vmem:[#allocation3 + $0x10] sm:$0x3] %vm4199_vm4, %v19905_v51 }
 0x195   : > { %4206 = vst.msk [vmem:[#allocation3 + $0x40] sm:$0x3] %vm4199_vm4, %v19905_v51  ;;  %4209 = vst.msk [vmem:[#allocation3 + $0x58] sm:$0x3] %vm4199_vm4, %v19905_v51 }
 0x196   : > { %4212 = vst.msk [vmem:[#allocation3 + $0x70] sm:$0x3] %vm4199_vm4, %v19905_v51  ;;  %4215 = vst.msk [vmem:[#allocation3 + $0x88] sm:$0x3] %vm4199_vm4, %v19905_v51 }
 0x197   : > { %4218 = vst.msk [vmem:[#allocation3 + $0xa0] sm:$0x3] %vm4199_vm4, %v19905_v51  ;;  %4221 = vst.msk [vmem:[#allocation3 + $0xb8] sm:$0x3] %vm4199_vm4, %v19905_v51 }
 0x198   : > { %4224 = vst.msk [vmem:[#allocation3 + $0xd0] sm:$0x3] %vm4199_vm4, %v19905_v51  ;;  %4227 = vst.msk [vmem:[#allocation3 + $0xe8] sm:$0x3] %vm4199_vm4, %v19905_v51 }
 0x199   : > { %4230 = vst.msk [vmem:[#allocation3 + $0x100] sm:$0x3] %vm4199_vm4, %v19905_v51  ;;  %4233 = vst.msk [vmem:[#allocation3 + $0x118] sm:$0x3] %vm4199_vm4, %v19905_v51 }
 0x19a   : > { %4236 = vst.msk [vmem:[#allocation3 + $0x130] sm:$0x3] %vm4199_vm4, %v19905_v51  ;;  %4239 = vst.msk [vmem:[#allocation3 + $0x148] sm:$0x3] %vm4199_vm4, %v19905_v51 }
 0x19b   : > { %4242 = vst.msk [vmem:[#allocation3 + $0x160] sm:$0x3] %vm4199_vm4, %v19905_v51  ;;  %4245 = vst.msk [vmem:[#allocation3 + $0x178] sm:$0x3] %vm4199_vm4, %v19905_v51  ;;  %v4319_v53 = vld [vmem:[#allocation3 + $0x9] sm:$0xff] }
 0x19c   : > { %4248 = vst.msk [vmem:[#allocation3 + $0x190] sm:$0x3] %vm4199_vm4, %v19905_v51  ;;  %4251 = vst.msk [vmem:[#allocation3 + $0x1a8] sm:$0x3] %vm4199_vm4, %v19905_v51  ;;  %14268 = vmatmul.mubr.msk.f32.vlgmr.msra.gmra.mrb[32].mxu1 %vm4196_vm3, %v4319_v53 }
 0x19d   : > { %7777 = vst.msk [vmem:[#allocation4 + $0x10] sm:$0x3] %vm4199_vm4, %v19905_v51  ;;  %7780 = vst.msk [vmem:[#allocation4 + $0x28] sm:$0x3] %vm4199_vm4, %v19905_v51  ;;  %14316 = vmatpush3.msra.mxu1 %v4317_v0 }
 0x19e   : > { %7783 = vst.msk [vmem:[#allocation4 + $0x40] sm:$0x3] %vm4199_vm4, %v19905_v51  ;;  %7786 = vst.msk [vmem:[#allocation4 + $0x58] sm:$0x3] %vm4199_vm4, %v19905_v51  ;;  %14365 = vmatprep.subr.mxu1 %v17648_v32 }
 0x19f   : > { %7789 = vst.msk [vmem:[#allocation4 + $0x70] sm:$0x3] %vm4199_vm4, %v19905_v51  ;;  %7792 = vst.msk [vmem:[#allocation4 + $0x88] sm:$0x3] %vm4199_vm4, %v19905_v51 }
 0x1a0   : > { %7795 = vst.msk [vmem:[#allocation4 + $0xa0] sm:$0x3] %vm4199_vm4, %v19905_v51  ;;  %7798 = vst.msk [vmem:[#allocation4 + $0xb8] sm:$0x3] %vm4199_vm4, %v19905_v51 }
 0x1a1   : > { %7801 = vst.msk [vmem:[#allocation4 + $0xd0] sm:$0x3] %vm4199_vm4, %v19905_v51  ;;  %7804 = vst.msk [vmem:[#allocation4 + $0xe8] sm:$0x3] %vm4199_vm4, %v19905_v51 }
 0x1a2   : > { %7807 = vst.msk [vmem:[#allocation4 + $0x100] sm:$0x3] %vm4199_vm4, %v19905_v51  ;;  %7810 = vst.msk [vmem:[#allocation4 + $0x118] sm:$0x3] %vm4199_vm4, %v19905_v51 }
 0x1a3   : > { %7813 = vst.msk [vmem:[#allocation4 + $0x130] sm:$0x3] %vm4199_vm4, %v19905_v51  ;;  %7816 = vst.msk [vmem:[#allocation4 + $0x148] sm:$0x3] %vm4199_vm4, %v19905_v51 }
 0x1a4   : > { %7819 = vst.msk [vmem:[#allocation4 + $0x160] sm:$0x3] %vm4199_vm4, %v19905_v51  ;;  %7822 = vst.msk [vmem:[#allocation4 + $0x178] sm:$0x3] %vm4199_vm4, %v19905_v51 }
 0x1a5   : > { %7825 = vst.msk [vmem:[#allocation4 + $0x190] sm:$0x3] %vm4199_vm4, %v19905_v51  ;;  %7828 = vst.msk [vmem:[#allocation4 + $0x1a8] sm:$0x3] %vm4199_vm4, %v19905_v51 }
 0x1ce   : > { %v13969_v4 = vpop.f32.mrb[0].mxu1 }
 0x1cf   : > { %v1983_v8 = vpop.f32.mrb[1].mxu1 }
 0x1d2   : > { %v13972_v10 = vpop.f32.mrb[2].mxu1 }
 0x1d3   : > { %v1993_v12 = vpop.f32.mrb[3].mxu1 }
 0x1d6   : > { %v13975_v15 = vpop.f32.mrb[4].mxu1 }
 0x1d7   : > { %v2003_v25 = vpop.f32.mrb[5].mxu1 }
 0x1da   : > { %v13978_v28 = vpop.f32.mrb[6].mxu1 }
 0x1db   : > { %v2013_v30 = vpop.f32.mrb[7].mxu1 }
 0x1de   : > { %v17651_v34 = vpop.f32.mrb[8].mxu1 }
 0x1df   : > { %v17653_v37 = vpop.f32.mrb[9].mxu1 }
 0x1e2   : > { %v17655_v3 = vpop.f32.mrb[10].mxu1 }
 0x1e3   : > { %v17657_v41 = vpop.f32.mrb[11].mxu1 }
 0x1e6   : > { %v17659_v43 = vpop.f32.mrb[12].mxu1 }
 0x1e7   : > { %v17661_v45 = vpop.f32.mrb[13].mxu1 }
 0x1ea   : > { %v17663_v47 = vpop.f32.mrb[14].mxu1 }
 0x1eb   : > { %v17665_v49 = vpop.f32.mrb[15].mxu1 }
 0x1ee   : > { %v17667_v14 = vpop.f32.mrb[16].mxu1 }
 0x1ef   : > { %v17669_v35 = vpop.f32.mrb[17].mxu1 }
 0x1f2   : > { %v17671_v20 = vpop.f32.mrb[18].mxu1 }
 0x1f3   : > { %v17673_v21 = vpop.f32.mrb[19].mxu1 }
 0x1f6   : > { %v17675_v22 = vpop.f32.mrb[20].mxu1 }
 0x1f7   : > { %v17677_v23 = vpop.f32.mrb[21].mxu1 }
 0x1fa   : > { %v17679_v26 = vpop.f32.mrb[22].mxu1 }
 0x1fb   : > { %v17681_v18 = vpop.f32.mrb[23].mxu1 }
 0x1fe   : > { %v17683_v24 = vpop.f32.mrb[24].mxu1 }
 0x1ff   : > { %v17685_v19 = vpop.f32.mrb[25].mxu1 }
 0x202   : > { %v17687_v39 = vpop.f32.mrb[26].mxu1 }
 0x203   : > { %v17689_v27 = vpop.f32.mrb[27].mxu1 }
 0x206   : > { %v17691_v29 = vpop.f32.mrb[28].mxu1 }
 0x207   : > { %v17693_v31 = vpop.f32.mrb[29].mxu1 }
 0x20a   : > { %v17695_v33 = vpop.f32.mrb[30].mxu1 }
 0x20b   : > { %v17697_v36 = vpop.f32.mrb[31].mxu1 }
 0x212   : > { %v14219_v38 = vpop.f32.mrb[0].mxu0 }
 0x213   : > { %v15261_v42 = vadd.f32 %v14219_v38, %v13969_v4  ;;  %v3934_v44 = vpop.f32.mrb[1].mxu0 }
 0x214   : > { %v15262_v46 = vadd.f32 %v3934_v44, %v1983_v8 }
 0x215   : > { %v4133_v48 = vadd.f32 %v15261_v42, %v17702_v40 }
 0x216   : > { %v4132_v60 = vadd.f32 %v15262_v46, %v17702_v40  ;;  %v14222_v17 = vpop.f32.mrb[2].mxu0 }
 0x217   : > { %v4165_v13 = vmax.f32 %v4133_v48, 0.0  ;;  %v15263_v11 = vadd.f32 %v14222_v17, %v13972_v10  ;;  %v3944_v9 = vpop.f32.mrb[3].mxu0 }
 0x218   : > { %v4164_v7 = vmax.f32 %v4132_v60, 0.0  ;;  %v15264_v2 = vadd.f32 %v3944_v9, %v1993_v12 }
 0x219   : > { %4254 = vst.msk [vmem:[#allocation3 + $0x21] sm:$0xff] %vm4196_vm3, %v4165_v13  ;;  %v4135_v63 = vadd.f32 %v15263_v11, %v17702_v40 }
 0x21a   : > { %4253 = vst.msk [vmem:[#allocation3 + $0x19] sm:$0xff] %vm4196_vm3, %v4164_v7  ;;  %v4134_v61 = vadd.f32 %v15264_v2, %v17702_v40  ;;  %v14225_v58 = vpop.f32.mrb[4].mxu0 }
 0x21b   : > { %v4167_v56 = vmax.f32 %v4135_v63, 0.0  ;;  %v15265_v54 = vadd.f32 %v14225_v58, %v13975_v15  ;;  %v3954_v52 = vpop.f32.mrb[5].mxu0 }
 0x21c   : > { %v4166_v6 = vmax.f32 %v4134_v61, 0.0  ;;  %v15266_v16 = vadd.f32 %v3954_v52, %v2003_v25 }
 0x21d   : > { %4256 = vst.msk [vmem:[#allocation3 + $0x39] sm:$0xff] %vm4196_vm3, %v4167_v56  ;;  %v4137_v5 = vadd.f32 %v15265_v54, %v17702_v40 }
 0x21e   : > { %4255 = vst.msk [vmem:[#allocation3 + $0x31] sm:$0xff] %vm4196_vm3, %v4166_v6  ;;  %v4136_v1 = vadd.f32 %v15266_v16, %v17702_v40  ;;  %v14228_v62 = vpop.f32.mrb[6].mxu0 }
 0x21f   : > { %v4169_v59 = vmax.f32 %v4137_v5, 0.0  ;;  %v15267_v57 = vadd.f32 %v14228_v62, %v13978_v28  ;;  %v3964_v55 = vpop.f32.mrb[7].mxu0 }
 0x220   : > { %v4168_v51 = vmax.f32 %v4136_v1, 0.0  ;;  %v15268_v50 = vadd.f32 %v3964_v55, %v2013_v30  ;;  %v17722_v10 = vld [vmem:[#allocation3 + $0x21] sm:$0xff] }
 0x221   : > { %4258 = vst.msk [vmem:[#allocation3 + $0x51] sm:$0xff] %vm4196_vm3, %v4169_v59  ;;  %v4139_v53 = vadd.f32 %v15267_v57, %v17702_v40  ;;  %v17716_v0 = vld [vmem:[#allocation3 + $0x19] sm:$0xff] }
 0x222   : > { %4257 = vst.msk [vmem:[#allocation3 + $0x49] sm:$0xff] %vm4196_vm3, %v4168_v51  ;;  %v4138_v4 = vadd.f32 %v15268_v50, %v17702_v40  ;;  %v14231_v8 = vpop.f32.mrb[8].mxu0  ;;  %14270 = vmatprep.mubr.msk.f32.mxu1 %vm4196_vm3, %v17716_v0 }
 0x223   : > { %v4171_v12 = vmax.f32 %v4139_v53, 0.0  ;;  %v15269_v15 = vadd.f32 %v14231_v8, %v17651_v34  ;;  %v3974_v25 = vpop.f32.mrb[9].mxu0  ;;  %14271 = vmatmul.mubr.msk.f32.gmra.mrb[34].mxu1 %vm4196_vm3, %v17722_v10 }
 0x224   : > { %v4170_v28 = vmax.f32 %v4138_v4, 0.0  ;;  %v15270_v30 = vadd.f32 %v3974_v25, %v17653_v37  ;;  %v17736_v34 = vld [vmem:[#allocation3 + $0x39] sm:$0xff] }
 0x225   : > { %4260 = vst.msk [vmem:[#allocation3 + $0x69] sm:$0xff] %vm4196_vm3, %v4171_v12  ;;  %v4141_v38 = vadd.f32 %v15269_v15, %v17702_v40  ;;  %v17730_v42 = vld [vmem:[#allocation3 + $0x31] sm:$0xff] }
 0x226   : > { %4259 = vst.msk [vmem:[#allocation3 + $0x61] sm:$0xff] %vm4196_vm3, %v4170_v28  ;;  %v4140_v44 = vadd.f32 %v15270_v30, %v17702_v40  ;;  %v14234_v46 = vpop.f32.mrb[10].mxu0  ;;  %14273 = vmatprep.mubr.msk.f32.mxu1 %vm4196_vm3, %v17730_v42 }
 0x227   : > { %v4173_v48 = vmax.f32 %v4141_v38, 0.0  ;;  %v15271_v60 = vadd.f32 %v14234_v46, %v17655_v3  ;;  %v3984_v37 = vpop.f32.mrb[11].mxu0  ;;  %14274 = vmatmul.mubr.msk.f32.gmra.mrb[36].mxu1 %vm4196_vm3, %v17736_v34 }
 0x228   : > { %v4172_v17 = vmax.f32 %v4140_v44, 0.0  ;;  %v15272_v13 = vadd.f32 %v3984_v37, %v17657_v41  ;;  %v17750_v3 = vld [vmem:[#allocation3 + $0x51] sm:$0xff] }
 0x229   : > { %4262 = vst.msk [vmem:[#allocation3 + $0x81] sm:$0xff] %vm4196_vm3, %v4173_v48  ;;  %v4143_v11 = vadd.f32 %v15271_v60, %v17702_v40  ;;  %v17744_v9 = vld [vmem:[#allocation3 + $0x49] sm:$0xff] }
 0x22a   : > { %4261 = vst.msk [vmem:[#allocation3 + $0x79] sm:$0xff] %vm4196_vm3, %v4172_v17  ;;  %v4142_v7 = vadd.f32 %v15272_v13, %v17702_v40  ;;  %v14237_v2 = vpop.f32.mrb[12].mxu0  ;;  %14276 = vmatprep.mubr.msk.f32.mxu1 %vm4196_vm3, %v17744_v9 }
 0x22b   : > { %v4175_v63 = vmax.f32 %v4143_v11, 0.0  ;;  %v15273_v61 = vadd.f32 %v14237_v2, %v17659_v43  ;;  %v3994_v41 = vpop.f32.mrb[13].mxu0  ;;  %14277 = vmatmul.mubr.msk.f32.gmra.mrb[38].mxu1 %vm4196_vm3, %v17750_v3 }
 0x22c   : > { %v4174_v58 = vmax.f32 %v4142_v7, 0.0  ;;  %v15274_v56 = vadd.f32 %v3994_v41, %v17661_v45  ;;  %v17764_v43 = vld [vmem:[#allocation3 + $0x69] sm:$0xff] }
 0x22d   : > { %4264 = vst.msk [vmem:[#allocation3 + $0x99] sm:$0xff] %vm4196_vm3, %v4175_v63  ;;  %v4145_v54 = vadd.f32 %v15273_v61, %v17702_v40  ;;  %v17758_v52 = vld [vmem:[#allocation3 + $0x61] sm:$0xff] }
 0x22e   : > { %4263 = vst.msk [vmem:[#allocation3 + $0x91] sm:$0xff] %vm4196_vm3, %v4174_v58  ;;  %v4144_v6 = vadd.f32 %v15274_v56, %v17702_v40  ;;  %v14240_v16 = vpop.f32.mrb[14].mxu0  ;;  %14279 = vmatprep.mubr.msk.f32.mxu1 %vm4196_vm3, %v17758_v52 }
 0x22f   : > { %v4177_v5 = vmax.f32 %v4145_v54, 0.0  ;;  %v15275_v1 = vadd.f32 %v14240_v16, %v17663_v47  ;;  %v4004_v45 = vpop.f32.mrb[15].mxu0  ;;  %14280 = vmatmul.mubr.msk.f32.gmra.mrb[40].mxu1 %vm4196_vm3, %v17764_v43 }
 0x230   : > { %v4176_v62 = vmax.f32 %v4144_v6, 0.0  ;;  %v15276_v59 = vadd.f32 %v4004_v45, %v17665_v49  ;;  %v17778_v47 = vld [vmem:[#allocation3 + $0x81] sm:$0xff] }
 0x231   : > { %4266 = vst.msk [vmem:[#allocation3 + $0xb1] sm:$0xff] %vm4196_vm3, %v4177_v5  ;;  %v4147_v57 = vadd.f32 %v15275_v1, %v17702_v40  ;;  %v17772_v55 = vld [vmem:[#allocation3 + $0x79] sm:$0xff] }
 0x232   : > { %4265 = vst.msk [vmem:[#allocation3 + $0xa9] sm:$0xff] %vm4196_vm3, %v4176_v62  ;;  %v4146_v51 = vadd.f32 %v15276_v59, %v17702_v40  ;;  %v14243_v50 = vpop.f32.mrb[16].mxu0  ;;  %14282 = vmatprep.mubr.msk.f32.mxu1 %vm4196_vm3, %v17772_v55 }
 0x233   : > { %v4179_v53 = vmax.f32 %v4147_v57, 0.0  ;;  %v15277_v4 = vadd.f32 %v14243_v50, %v17667_v14  ;;  %v4014_v49 = vpop.f32.mrb[17].mxu0  ;;  %14283 = vmatmul.mubr.msk.f32.gmra.mrb[42].mxu1 %vm4196_vm3, %v17778_v47 }
 0x234   : > { %v4178_v8 = vmax.f32 %v4146_v51, 0.0  ;;  %v15278_v12 = vadd.f32 %v4014_v49, %v17669_v35  ;;  %v17792_v14 = vld [vmem:[#allocation3 + $0x99] sm:$0xff] }
 0x235   : > { %4268 = vst.msk [vmem:[#allocation3 + $0xc9] sm:$0xff] %vm4196_vm3, %v4179_v53  ;;  %v4149_v15 = vadd.f32 %v15277_v4, %v17702_v40  ;;  %v17786_v25 = vld [vmem:[#allocation3 + $0x91] sm:$0xff] }
 0x236   : > { %4267 = vst.msk [vmem:[#allocation3 + $0xc1] sm:$0xff] %vm4196_vm3, %v4178_v8  ;;  %v4148_v28 = vadd.f32 %v15278_v12, %v17702_v40  ;;  %v14246_v30 = vpop.f32.mrb[18].mxu0  ;;  %14285 = vmatprep.mubr.msk.f32.mxu1 %vm4196_vm3, %v17786_v25 }
 0x237   : > { %v4181_v38 = vmax.f32 %v4149_v15, 0.0  ;;  %v15279_v44 = vadd.f32 %v14246_v30, %v17671_v20  ;;  %v4024_v35 = vpop.f32.mrb[19].mxu0  ;;  %14286 = vmatmul.mubr.msk.f32.gmra.mrb[44].mxu1 %vm4196_vm3, %v17792_v14 }
 0x238   : > { %v4180_v46 = vmax.f32 %v4148_v28, 0.0  ;;  %v15280_v48 = vadd.f32 %v4024_v35, %v17673_v21  ;;  %v17806_v20 = vld [vmem:[#allocation3 + $0xb1] sm:$0xff] }
 0x239   : > { %4270 = vst.msk [vmem:[#allocation3 + $0xe1] sm:$0xff] %vm4196_vm3, %v4181_v38  ;;  %v4151_v60 = vadd.f32 %v15279_v44, %v17702_v40  ;;  %v17800_v37 = vld [vmem:[#allocation3 + $0xa9] sm:$0xff] }
 0x23a   : > { %4269 = vst.msk [vmem:[#allocation3 + $0xd9] sm:$0xff] %vm4196_vm3, %v4180_v46  ;;  %v4150_v17 = vadd.f32 %v15280_v48, %v17702_v40  ;;  %v14249_v13 = vpop.f32.mrb[20].mxu0  ;;  %14288 = vmatprep.mubr.msk.f32.mxu1 %vm4196_vm3, %v17800_v37 }
 0x23b   : > { %v4183_v11 = vmax.f32 %v4151_v60, 0.0  ;;  %v15281_v7 = vadd.f32 %v14249_v13, %v17675_v22  ;;  %v4034_v21 = vpop.f32.mrb[21].mxu0  ;;  %14289 = vmatmul.mubr.msk.f32.gmra.mrb[46].mxu1 %vm4196_vm3, %v17806_v20 }
 0x23c   : > { %v4182_v2 = vmax.f32 %v4150_v17, 0.0  ;;  %v15282_v63 = vadd.f32 %v4034_v21, %v17677_v23  ;;  %v17820_v22 = vld [vmem:[#allocation3 + $0xc9] sm:$0xff] }
 0x23d   : > { %4272 = vst.msk [vmem:[#allocation3 + $0xf9] sm:$0xff] %vm4196_vm3, %v4183_v11  ;;  %v4153_v61 = vadd.f32 %v15281_v7, %v17702_v40  ;;  %v17814_v41 = vld [vmem:[#allocation3 + $0xc1] sm:$0xff] }
 0x23e   : > { %4271 = vst.msk [vmem:[#allocation3 + $0xf1] sm:$0xff] %vm4196_vm3, %v4182_v2  ;;  %v4152_v58 = vadd.f32 %v15282_v63, %v17702_v40  ;;  %v14252_v56 = vpop.f32.mrb[22].mxu0  ;;  %14291 = vmatprep.mubr.msk.f32.mxu1 %vm4196_vm3, %v17814_v41 }
 0x23f   : > { %v4185_v54 = vmax.f32 %v4153_v61, 0.0  ;;  %v15283_v6 = vadd.f32 %v14252_v56, %v17679_v26  ;;  %v4044_v23 = vpop.f32.mrb[23].mxu0  ;;  %14292 = vmatmul.mubr.msk.f32.gmra.mrb[48].mxu1 %vm4196_vm3, %v17820_v22 }
 0x240   : > { %v4184_v16 = vmax.f32 %v4152_v58, 0.0  ;;  %v15284_v5 = vadd.f32 %v4044_v23, %v17681_v18  ;;  %v17834_v26 = vld [vmem:[#allocation3 + $0xe1] sm:$0xff] }
 0x241   : > { %4274 = vst.msk [vmem:[#allocation3 + $0x111] sm:$0xff] %vm4196_vm3, %v4185_v54  ;;  %v4155_v1 = vadd.f32 %v15283_v6, %v17702_v40  ;;  %v17828_v45 = vld [vmem:[#allocation3 + $0xd9] sm:$0xff] }
 0x242   : > { %4273 = vst.msk [vmem:[#allocation3 + $0x109] sm:$0xff] %vm4196_vm3, %v4184_v16  ;;  %v4154_v62 = vadd.f32 %v15284_v5, %v17702_v40  ;;  %v14255_v59 = vpop.f32.mrb[24].mxu0  ;;  %14294 = vmatprep.mubr.msk.f32.mxu1 %vm4196_vm3, %v17828_v45 }
 0x243   : > { %v4187_v57 = vmax.f32 %v4155_v1, 0.0  ;;  %v15285_v51 = vadd.f32 %v14255_v59, %v17683_v24  ;;  %v4054_v18 = vpop.f32.mrb[25].mxu0  ;;  %14295 = vmatmul.mubr.msk.f32.gmra.mrb[50].mxu1 %vm4196_vm3, %v17834_v26  ;;  %v4285_v59 = vld [vmem:[#allocation3] sm:$0xff] }
 0x244   : > { %v4186_v50 = vmax.f32 %v4154_v62, 0.0  ;;  %v15286_v53 = vadd.f32 %v4054_v18, %v17685_v19  ;;  %v17848_v24 = vld [vmem:[#allocation3 + $0xf9] sm:$0xff]  ;;  %v17916_v18 = vld [vmem:[%s19667_s5 + $0x18] sm:$0xff] }
 0x245   : > { %4276 = vst.msk [vmem:[#allocation3 + $0x129] sm:$0xff] %vm4196_vm3, %v4187_v57  ;;  %v4157_v4 = vadd.f32 %v15285_v51, %v17702_v40  ;;  %v17842_v49 = vld [vmem:[#allocation3 + $0xf1] sm:$0xff]  ;;  %v4286_v51 = vld [vmem:[#allocation3 + $0x8] sm:$0xff] }
 0x246   : > { %4275 = vst.msk [vmem:[#allocation3 + $0x121] sm:$0xff] %vm4196_vm3, %v4186_v50  ;;  %v4156_v8 = vadd.f32 %v15286_v53, %v17702_v40  ;;  %v14258_v12 = vpop.f32.mrb[26].mxu0  ;;  %14297 = vmatprep.mubr.msk.f32.mxu1 %vm4196_vm3, %v17842_v49  ;;  %v17919_v50 = vld [vmem:[#allocation3 + $0x18] sm:$0xff]  ;;  %v17925_v53 = vld [vmem:[#allocation3 + $0x20] sm:$0xff] }
 0x247   : > { %v4189_v15 = vmax.f32 %v4157_v4, 0.0  ;;  %v15287_v28 = vadd.f32 %v14258_v12, %v17687_v39  ;;  %v4064_v19 = vpop.f32.mrb[27].mxu0  ;;  %14298 = vmatmul.mubr.msk.f32.gmra.mrb[52].mxu1 %vm4196_vm3, %v17848_v24  ;;  %v17929_v4 = vld [vmem:[#allocation3 + $0x30] sm:$0xff] }
 0x248   : > { %v4188_v30 = vmax.f32 %v4156_v8, 0.0  ;;  %v15288_v38 = vadd.f32 %v4064_v19, %v17689_v27  ;;  %v17862_v39 = vld [vmem:[#allocation3 + $0x111] sm:$0xff] }
 0x249   : > { %4278 = vst.msk [vmem:[#allocation3 + $0x141] sm:$0xff] %vm4196_vm3, %v4189_v15  ;;  %v4159_v44 = vadd.f32 %v15287_v28, %v17702_v40  ;;  %v17856_v35 = vld [vmem:[#allocation3 + $0x109] sm:$0xff]  ;;  %v17933_v8 = vld [vmem:[#allocation3 + $0x38] sm:$0xff]  ;;  %v17945_v15 = vld [vmem:[#allocation3 + $0x60] sm:$0xff] }
 0x24a   : > { %4277 = vst.msk [vmem:[#allocation3 + $0x139] sm:$0xff] %vm4196_vm3, %v4188_v30  ;;  %v4158_v46 = vadd.f32 %v15288_v38, %v17702_v40  ;;  %v14261_v48 = vpop.f32.mrb[28].mxu0  ;;  %14300 = vmatprep.mubr.msk.f32.mxu1 %vm4196_vm3, %v17856_v35  ;;  %v17941_v12 = vld [vmem:[#allocation3 + $0x50] sm:$0xff]  ;;  %v17949_v28 = vld [vmem:[#allocation3 + $0x68] sm:$0xff]  ;;  %v17953_v19 = vld [vmem:[#allocation3 + $0x78] sm:$0xff] }
 0x24b   : > { %v4191_v60 = vmax.f32 %v4159_v44, 0.0  ;;  %v15289_v17 = vadd.f32 %v14261_v48, %v17691_v29  ;;  %v4074_v27 = vpop.f32.mrb[29].mxu0  ;;  %14301 = vmatmul.mubr.msk.f32.gmra.mrb[54].mxu1 %vm4196_vm3, %v17862_v39  ;;  %v17957_v30 = vld [vmem:[#allocation3 + $0x80] sm:$0xff]  ;;  %v17961_v38 = vld [vmem:[#allocation3 + $0x90] sm:$0xff]  ;;  %v17965_v44 = vld [vmem:[#allocation3 + $0x98] sm:$0xff] }
 0x24c   : > { %v4190_v13 = vmax.f32 %v4158_v46, 0.0  ;;  %v15290_v11 = vadd.f32 %v4074_v27, %v17693_v31  ;;  %v17876_v29 = vld [vmem:[#allocation3 + $0x129] sm:$0xff]  ;;  %v17985_v27 = vld [vmem:[#allocation3 + $0xd8] sm:$0xff] }
 0x24d   : > { %4280 = vst.msk [vmem:[#allocation3 + $0x159] sm:$0xff] %vm4196_vm3, %v4191_v60  ;;  %v4161_v7 = vadd.f32 %v15289_v17, %v17702_v40  ;;  %v17870_v21 = vld [vmem:[#allocation3 + $0x121] sm:$0xff]  ;;  %v17973_v48 = vld [vmem:[#allocation3 + $0xb0] sm:$0xff] }
 0x24e   : > { %4279 = vst.msk [vmem:[#allocation3 + $0x151] sm:$0xff] %vm4196_vm3, %v4190_v13  ;;  %v4160_v2 = vadd.f32 %v15290_v11, %v17702_v40  ;;  %v14264_v63 = vpop.f32.mrb[30].mxu0  ;;  %14303 = vmatprep.mubr.msk.f32.mxu1 %vm4196_vm3, %v17870_v21  ;;  %v17969_v46 = vld [vmem:[#allocation3 + $0xa8] sm:$0xff]  ;;  %v17977_v60 = vld [vmem:[#allocation3 + $0xc0] sm:$0xff]  ;;  %v17993_v11 = vld [vmem:[#allocation3 + $0xf0] sm:$0xff] }
 0x24f   : > { %v4193_v61 = vmax.f32 %v4161_v7, 0.0  ;;  %v15291_v58 = vadd.f32 %v14264_v63, %v17695_v33  ;;  %v4084_v31 = vpop.f32.mrb[31].mxu0  ;;  %14304 = vmatmul.mubr.msk.f32.gmra.mrb[56].mxu1 %vm4196_vm3, %v17876_v29  ;;  %v17981_v17 = vld [vmem:[#allocation3 + $0xc8] sm:$0xff]  ;;  %v17989_v13 = vld [vmem:[#allocation3 + $0xe0] sm:$0xff]  ;;  %v17997_v7 = vld [vmem:[#allocation3 + $0xf8] sm:$0xff] }
 0x250   : > { %v4192_v56 = vmax.f32 %v4160_v2, 0.0  ;;  %v15292_v54 = vadd.f32 %v4084_v31, %v17697_v36  ;;  %v17890_v33 = vld [vmem:[#allocation3 + $0x141] sm:$0xff]  ;;  %v18005_v63 = vld [vmem:[#allocation3 + $0x110] sm:$0xff] }
 0x251   : > { %4282 = vst.msk [vmem:[#allocation3 + $0x171] sm:$0xff] %vm4196_vm3, %v4193_v61  ;;  %v4163_v6 = vadd.f32 %v15291_v58, %v17702_v40  ;;  %v17884_v23 = vld [vmem:[#allocation3 + $0x139] sm:$0xff]  ;;  %v18001_v2 = vld [vmem:[#allocation3 + $0x108] sm:$0xff] }
 0x252   : > { %4281 = vst.msk [vmem:[#allocation3 + $0x169] sm:$0xff] %vm4196_vm3, %v4192_v56  ;;  %v4162_v16 = vadd.f32 %v15292_v54, %v17702_v40  ;;  %14306 = vmatprep.mubr.msk.f32.mxu1 %vm4196_vm3, %v17884_v23  ;;  %v18009_v61 = vld [vmem:[#allocation3 + $0x120] sm:$0xff]  ;;  %v18013_v58 = vld [vmem:[#allocation3 + $0x128] sm:$0xff]  ;;  %v18017_v31 = vld [vmem:[#allocation3 + $0x138] sm:$0xff] }
 0x253   : > { %v4195_v5 = vmax.f32 %v4163_v6, 0.0  ;;  %14307 = vmatmul.mubr.msk.f32.gmra.mrb[58].mxu1 %vm4196_vm3, %v17890_v33  ;;  %v18021_v56 = vld [vmem:[#allocation3 + $0x140] sm:$0xff] }
 0x254   : > { %v4194_v36 = vmax.f32 %v4162_v16, 0.0  ;;  %v17900_v40 = vld [vmem:[#allocation3 + $0x159] sm:$0xff] }
 0x255   : > { %4284 = vst.msk [vmem:[#allocation3 + $0x189] sm:$0xff] %vm4196_vm3, %v4195_v5  ;;  %v17895_v1 = vld [vmem:[#allocation3 + $0x151] sm:$0xff]  ;;  %v4994_v5 = vld [vmem:[#allocation3 + $0x2] sm:$0xff] }
 0x256   : > { %4283 = vst.msk [vmem:[#allocation3 + $0x181] sm:$0xff] %vm4196_vm3, %v4194_v36  ;;  %14309 = vmatprep.mubr.msk.f32.mxu1 %vm4196_vm3, %v17895_v1  ;;  %v18025_v54 = vld [vmem:[#allocation3 + $0x150] sm:$0xff]  ;;  %v18029_v6 = vld [vmem:[#allocation3 + $0x158] sm:$0xff] }
 0x257   : > { %14310 = vmatmul.mubr.msk.f32.gmra.mrb[60].mxu1 %vm4196_vm3, %v17900_v40 }
 0x258   : > { %v17908_v57 = vld [vmem:[#allocation3 + $0x171] sm:$0xff] }
 0x259   : > { %v17904_v62 = vld [vmem:[#allocation3 + $0x169] sm:$0xff]  ;;  %19907 = vst [vmem:[#allocation41_spill] sm:$0xff] %v17908_v57 }
 0x25a   : > { %19906 = vst [vmem:[#allocation40_spill] sm:$0xff] %v17904_v62  ;;  %14312 = vmatprep.mubr.msk.f32.mxu1 %vm4196_vm3, %v17904_v62  ;;  %v18033_v16 = vld [vmem:[#allocation3 + $0x168] sm:$0xff]  ;;  %v18037_v36 = vld [vmem:[#allocation3 + $0x170] sm:$0xff] }
 0x25b   : > { %14313 = vmatmul.mubr.msk.f32.gmra.mrb[62].mxu1 %vm4196_vm3, %v17908_v57  ;;  %v18048_v57 = vld [vmem:[#allocation3 + $0x1a] sm:$0xff]  ;;  %v18054_v62 = vld [vmem:[#allocation3 + $0x22] sm:$0xff] }
 0x25c   : > { %14317 = vmatprep.mubr.msk.f32.mxu1 %vm4196_vm3, %v4285_v59  ;;  %v4995_v59 = vld [vmem:[#allocation3 + $0xa] sm:$0xff]  ;;  %19908 = vst [vmem:[#allocation10_spill] sm:$0xff] %v18048_v57  ;;  %19909 = vst [vmem:[#allocation11_spill] sm:$0xff] %v18054_v62 }
 0x25f   : > { %14318 = vmatmul.mubr.msk.f32.vlgmr.msra.gmra.mrb[32].mxu1 %vm4196_vm3, %v4286_v51  ;;  %v18045_v51 = vld [vmem:[%s19667_s5 + $0x20] sm:$0xff] }
 0x260   : > { %14366 = vmatpush3.msra.mxu1 %v17648_v32  ;;  %14320 = vmatprep.mubr.msk.f32.mxu1 %vm4196_vm3, %v17919_v50  ;;  %v17937_v32 = vld [vmem:[#allocation3 + $0x48] sm:$0xff] }
 0x261   : > { %14415 = vmatprep.subr.mxu1 %v17916_v18 }
 0x263   : > { %14321 = vmatmul.mubr.msk.f32.gmra.mrb[34].mxu1 %vm4196_vm3, %v17925_v53 }
 0x264   : > { %14323 = vmatprep.mubr.msk.f32.mxu1 %vm4196_vm3, %v17929_v4 }
 0x267   : > { %14324 = vmatmul.mubr.msk.f32.gmra.mrb[36].mxu1 %vm4196_vm3, %v17933_v8 }
 0x268   : > { %14326 = vmatprep.mubr.msk.f32.mxu1 %vm4196_vm3, %v17937_v32 }
 0x26b   : > { %14327 = vmatmul.mubr.msk.f32.gmra.mrb[38].mxu1 %vm4196_vm3, %v17941_v12 }
 0x26c   : > { %14329 = vmatprep.mubr.msk.f32.mxu1 %vm4196_vm3, %v17945_v15 }
 0x26f   : > { %14330 = vmatmul.mubr.msk.f32.gmra.mrb[40].mxu1 %vm4196_vm3, %v17949_v28 }
 0x270   : > { %14332 = vmatprep.mubr.msk.f32.mxu1 %vm4196_vm3, %v17953_v19 }
 0x273   : > { %14333 = vmatmul.mubr.msk.f32.gmra.mrb[42].mxu1 %vm4196_vm3, %v17957_v30 }
 0x274   : > { %14335 = vmatprep.mubr.msk.f32.mxu1 %vm4196_vm3, %v17961_v38 }
 0x277   : > { %14336 = vmatmul.mubr.msk.f32.gmra.mrb[44].mxu1 %vm4196_vm3, %v17965_v44 }
 0x278   : > { %14338 = vmatprep.mubr.msk.f32.mxu1 %vm4196_vm3, %v17969_v46 }
 0x27b   : > { %14339 = vmatmul.mubr.msk.f32.gmra.mrb[46].mxu1 %vm4196_vm3, %v17973_v48 }
 0x27c   : > { %14341 = vmatprep.mubr.msk.f32.mxu1 %vm4196_vm3, %v17977_v60 }
 0x27f   : > { %14342 = vmatmul.mubr.msk.f32.gmra.mrb[48].mxu1 %vm4196_vm3, %v17981_v17 }
 0x280   : > { %14344 = vmatprep.mubr.msk.f32.mxu1 %vm4196_vm3, %v17985_v27 }
 0x283   : > { %14345 = vmatmul.mubr.msk.f32.gmra.mrb[50].mxu1 %vm4196_vm3, %v17989_v13 }
 0x284   : > { %14347 = vmatprep.mubr.msk.f32.mxu1 %vm4196_vm3, %v17993_v11 }
 0x287   : > { %14348 = vmatmul.mubr.msk.f32.gmra.mrb[52].mxu1 %vm4196_vm3, %v17997_v7 }
 0x288   : > { %14350 = vmatprep.mubr.msk.f32.mxu1 %vm4196_vm3, %v18001_v2 }
 0x28b   : > { %14351 = vmatmul.mubr.msk.f32.gmra.mrb[54].mxu1 %vm4196_vm3, %v18005_v63 }
 0x28c   : > { %14353 = vmatprep.mubr.msk.f32.mxu1 %vm4196_vm3, %v18009_v61 }
 0x28f   : > { %14354 = vmatmul.mubr.msk.f32.gmra.mrb[56].mxu1 %vm4196_vm3, %v18013_v58 }
 0x290   : > { %14356 = vmatprep.mubr.msk.f32.mxu1 %vm4196_vm3, %v18017_v31 }
 0x293   : > { %14357 = vmatmul.mubr.msk.f32.gmra.mrb[58].mxu1 %vm4196_vm3, %v18021_v56 }
 0x294   : > { %14359 = vmatprep.mubr.msk.f32.mxu1 %vm4196_vm3, %v18025_v54 }
 0x297   : > { %14360 = vmatmul.mubr.msk.f32.gmra.mrb[60].mxu1 %vm4196_vm3, %v18029_v6 }
 0x298   : > { %14362 = vmatprep.mubr.msk.f32.mxu1 %vm4196_vm3, %v18033_v16 }
 0x29b   : > { %14363 = vmatmul.mubr.msk.f32.gmra.mrb[62].mxu1 %vm4196_vm3, %v18037_v36 }
 0x29c   : > { %14367 = vmatprep.mubr.msk.f32.mxu1 %vm4196_vm3, %v4994_v5  ;;  %v18058_v5 = vld [vmem:[#allocation3 + $0x32] sm:$0xff] }
 0x29d   : > { %19910 = vst [vmem:[#allocation12_spill] sm:$0xff] %v18058_v5 }
 0x29f   : > { %14368 = vmatmul.mubr.msk.f32.vlgmr.msra.gmra.mrb[32].mxu1 %vm4196_vm3, %v4995_v59  ;;  %v18062_v59 = vld [vmem:[#allocation3 + $0x3a] sm:$0xff] }
 0x2a0   : > { %14416 = vmatpush3.msra.mxu1 %v17916_v18  ;;  %14370 = vmatprep.mubr.msk.f32.mxu1 %vm4196_vm3, %v18048_v57  ;;  %19911 = vst [vmem:[#allocation13_spill] sm:$0xff] %v18062_v59  ;;  %v18066_v18 = vld [vmem:[#allocation3 + $0x4a] sm:$0xff]  ;;  %v18070_v57 = vld [vmem:[#allocation3 + $0x52] sm:$0xff] }
 0x2a1   : > { %14465 = vmatprep.subr.mxu1 %v18045_v51  ;;  %19912 = vst [vmem:[#allocation14_spill] sm:$0xff] %v18066_v18  ;;  %19913 = vst [vmem:[#allocation15_spill] sm:$0xff] %v18070_v57 }
 0x2a3   : > { %14371 = vmatmul.mubr.msk.f32.gmra.mrb[34].mxu1 %vm4196_vm3, %v18054_v62  ;;  %v18074_v62 = vld [vmem:[#allocation3 + $0x62] sm:$0xff] }
 0x2a4   : > { %14373 = vmatprep.mubr.msk.f32.mxu1 %vm4196_vm3, %v18058_v5  ;;  %19914 = vst [vmem:[#allocation16_spill] sm:$0xff] %v18074_v62  ;;  %v18078_v5 = vld [vmem:[#allocation3 + $0x6a] sm:$0xff] }
 0x2a5   : > { %19915 = vst [vmem:[#allocation17_spill] sm:$0xff] %v18078_v5 }
 0x2a7   : > { %14374 = vmatmul.mubr.msk.f32.gmra.mrb[36].mxu1 %vm4196_vm3, %v18062_v59  ;;  %v18082_v59 = vld [vmem:[#allocation3 + $0x7a] sm:$0xff] }
 0x2a8   : > { %14376 = vmatprep.mubr.msk.f32.mxu1 %vm4196_vm3, %v18066_v18  ;;  %19916 = vst [vmem:[#allocation18_spill] sm:$0xff] %v18082_v59  ;;  %v18086_v18 = vld [vmem:[#allocation3 + $0x82] sm:$0xff] }
 0x2a9   : > { %19917 = vst [vmem:[#allocation19_spill] sm:$0xff] %v18086_v18 }
 0x2ab   : > { %14377 = vmatmul.mubr.msk.f32.gmra.mrb[38].mxu1 %vm4196_vm3, %v18070_v57  ;;  %v18090_v57 = vld [vmem:[#allocation3 + $0x92] sm:$0xff] }
 0x2ac   : > { %14379 = vmatprep.mubr.msk.f32.mxu1 %vm4196_vm3, %v18074_v62  ;;  %19918 = vst [vmem:[#allocation20_spill] sm:$0xff] %v18090_v57  ;;  %v18094_v62 = vld [vmem:[#allocation3 + $0x9a] sm:$0xff] }
 0x2ad   : > { %19919 = vst [vmem:[#allocation21_spill] sm:$0xff] %v18094_v62 }
 0x2af   : > { %14380 = vmatmul.mubr.msk.f32.gmra.mrb[40].mxu1 %vm4196_vm3, %v18078_v5  ;;  %v18098_v5 = vld [vmem:[#allocation3 + $0xaa] sm:$0xff] }
 0x2b0   : > { %14382 = vmatprep.mubr.msk.f32.mxu1 %vm4196_vm3, %v18082_v59  ;;  %19920 = vst [vmem:[#allocation22_spill] sm:$0xff] %v18098_v5  ;;  %v18102_v59 = vld [vmem:[#allocation3 + $0xb2] sm:$0xff] }
 0x2b1   : > { %19921 = vst [vmem:[#allocation23_spill] sm:$0xff] %v18102_v59 }
 0x2b3   : > { %14383 = vmatmul.mubr.msk.f32.gmra.mrb[42].mxu1 %vm4196_vm3, %v18086_v18  ;;  %v18106_v18 = vld [vmem:[#allocation3 + $0xc2] sm:$0xff] }
 0x2b4   : > { %14385 = vmatprep.mubr.msk.f32.mxu1 %vm4196_vm3, %v18090_v57  ;;  %19922 = vst [vmem:[#allocation24_spill] sm:$0xff] %v18106_v18  ;;  %v18110_v57 = vld [vmem:[#allocation3 + $0xca] sm:$0xff] }
 0x2b5   : > { %19923 = vst [vmem:[#allocation25_spill] sm:$0xff] %v18110_v57 }
 0x2b7   : > { %14386 = vmatmul.mubr.msk.f32.gmra.mrb[44].mxu1 %vm4196_vm3, %v18094_v62  ;;  %v18114_v62 = vld [vmem:[#allocation3 + $0xda] sm:$0xff] }
 0x2b8   : > { %14388 = vmatprep.mubr.msk.f32.mxu1 %vm4196_vm3, %v18098_v5  ;;  %19924 = vst [vmem:[#allocation26_spill] sm:$0xff] %v18114_v62  ;;  %v18118_v5 = vld [vmem:[#allocation3 + $0xe2] sm:$0xff] }
 0x2b9   : > { %19925 = vst [vmem:[#allocation27_spill] sm:$0xff] %v18118_v5 }
 0x2bb   : > { %14389 = vmatmul.mubr.msk.f32.gmra.mrb[46].mxu1 %vm4196_vm3, %v18102_v59  ;;  %v18122_v59 = vld [vmem:[#allocation3 + $0xf2] sm:$0xff] }
 0x2bc   : > { %14391 = vmatprep.mubr.msk.f32.mxu1 %vm4196_vm3, %v18106_v18  ;;  %19926 = vst [vmem:[#allocation28_spill] sm:$0xff] %v18122_v59  ;;  %v18126_v18 = vld [vmem:[#allocation3 + $0xfa] sm:$0xff] }
 0x2bd   : > { %19927 = vst [vmem:[#allocation29_spill] sm:$0xff] %v18126_v18 }
 0x2bf   : > { %14392 = vmatmul.mubr.msk.f32.gmra.mrb[48].mxu1 %vm4196_vm3, %v18110_v57  ;;  %v18130_v57 = vld [vmem:[#allocation3 + $0x10a] sm:$0xff] }
 0x2c0   : > { %14394 = vmatprep.mubr.msk.f32.mxu1 %vm4196_vm3, %v18114_v62  ;;  %19928 = vst [vmem:[#allocation30_spill] sm:$0xff] %v18130_v57  ;;  %v18134_v62 = vld [vmem:[#allocation3 + $0x112] sm:$0xff] }
 0x2c1   : > { %19929 = vst [vmem:[#allocation31_spill] sm:$0xff] %v18134_v62 }
 0x2c3   : > { %14395 = vmatmul.mubr.msk.f32.gmra.mrb[50].mxu1 %vm4196_vm3, %v18118_v5  ;;  %v18138_v5 = vld [vmem:[#allocation3 + $0x122] sm:$0xff] }
 0x2c4   : > { %14397 = vmatprep.mubr.msk.f32.mxu1 %vm4196_vm3, %v18122_v59  ;;  %19930 = vst [vmem:[#allocation32_spill] sm:$0xff] %v18138_v5  ;;  %v18142_v59 = vld [vmem:[#allocation3 + $0x12a] sm:$0xff] }
 0x2c5   : > { %19931 = vst [vmem:[#allocation33_spill] sm:$0xff] %v18142_v59 }
 0x2c7   : > { %14398 = vmatmul.mubr.msk.f32.gmra.mrb[52].mxu1 %vm4196_vm3, %v18126_v18  ;;  %v18146_v18 = vld [vmem:[#allocation3 + $0x13a] sm:$0xff] }
 0x2c8   : > { %14400 = vmatprep.mubr.msk.f32.mxu1 %vm4196_vm3, %v18130_v57  ;;  %19932 = vst [vmem:[#allocation34_spill] sm:$0xff] %v18146_v18  ;;  %v18150_v57 = vld [vmem:[#allocation3 + $0x142] sm:$0xff] }
 0x2cb   : > { %14401 = vmatmul.mubr.msk.f32.gmra.mrb[54].mxu1 %vm4196_vm3, %v18134_v62  ;;  %v18154_v62 = vld [vmem:[#allocation3 + $0x152] sm:$0xff] }
 0x2cc   : > { %14403 = vmatprep.mubr.msk.f32.mxu1 %vm4196_vm3, %v18138_v5  ;;  %19933 = vst [vmem:[#allocation35_spill] sm:$0xff] %v18154_v62  ;;  %v18158_v5 = vld [vmem:[#allocation3 + $0x15a] sm:$0xff] }
 0x2cf   : > { %14404 = vmatmul.mubr.msk.f32.gmra.mrb[56].mxu1 %vm4196_vm3, %v18142_v59  ;;  %v18162_v59 = vld [vmem:[#allocation3 + $0x16a] sm:$0xff] }
 0x2d0   : > { %14406 = vmatprep.mubr.msk.f32.mxu1 %vm4196_vm3, %v18146_v18  ;;  %19934 = vst [vmem:[#allocation36_spill] sm:$0xff] %v18162_v59  ;;  %v18166_v18 = vld [vmem:[#allocation3 + $0x172] sm:$0xff] }
 0x2d3   : > { %14407 = vmatmul.mubr.msk.f32.gmra.mrb[58].mxu1 %vm4196_vm3, %v18150_v57 }
 0x2d4   : > { %14409 = vmatprep.mubr.msk.f32.mxu1 %vm4196_vm3, %v18154_v62  ;;  %v12350_v62 = vld [vmem:[%s19667_s5 + $0x28] sm:$0xff] }
 0x2d7   : > { %14410 = vmatmul.mubr.msk.f32.gmra.mrb[60].mxu1 %vm4196_vm3, %v18158_v5 }
 0x2d8   : > { %14412 = vmatprep.mubr.msk.f32.mxu1 %vm4196_vm3, %v18162_v59 }
 0x2db   : > { %14413 = vmatmul.mubr.msk.f32.gmra.mrb[62].mxu1 %vm4196_vm3, %v18166_v18 }
 0x2dc   : > { %14417 = vmatprep.mubr.msk.f32.mxu1 %vm4196_vm3, %v17919_v50  ;;  %v18234_v50 = vld [vmem:[#allocation3 + $0x180] sm:$0xff] }
 0x2df   : > { %14418 = vmatmul.mubr.msk.f32.vlgmr.msra.gmra.mrb[32].mxu1 %vm4196_vm3, %v17925_v53  ;;  %v18238_v53 = vld [vmem:[#allocation3 + $0x188] sm:$0xff] }
 0x2e0   : > { %14466 = vmatpush3.msra.mxu1 %v18045_v51  ;;  %14420 = vmatprep.mubr.msk.f32.mxu1 %vm4196_vm3, %v17929_v4  ;;  %v12383_v51 = vld [vmem:[%s19667_s5 + $0x30] sm:$0xff] }
 0x2e1   : > { %14515 = vmatprep.subr.mxu1 %v12350_v62 }
 0x2e3   : > { %14421 = vmatmul.mubr.msk.f32.gmra.mrb[34].mxu1 %vm4196_vm3, %v17933_v8 }
 0x2e4   : > { %14423 = vmatprep.mubr.msk.f32.mxu1 %vm4196_vm3, %v17937_v32 }
 0x2e7   : > { %14424 = vmatmul.mubr.msk.f32.gmra.mrb[36].mxu1 %vm4196_vm3, %v17941_v12 }
 0x2e8   : > { %14426 = vmatprep.mubr.msk.f32.mxu1 %vm4196_vm3, %v17945_v15 }
 0x2eb   : > { %14427 = vmatmul.mubr.msk.f32.gmra.mrb[38].mxu1 %vm4196_vm3, %v17949_v28 }
 0x2ec   : > { %14429 = vmatprep.mubr.msk.f32.mxu1 %vm4196_vm3, %v17953_v19 }
 0x2ef   : > { %14430 = vmatmul.mubr.msk.f32.gmra.mrb[40].mxu1 %vm4196_vm3, %v17957_v30 }
 0x2f0   : > { %14432 = vmatprep.mubr.msk.f32.mxu1 %vm4196_vm3, %v17961_v38 }
 0x2f3   : > { %14433 = vmatmul.mubr.msk.f32.gmra.mrb[42].mxu1 %vm4196_vm3, %v17965_v44 }
 0x2f4   : > { %14435 = vmatprep.mubr.msk.f32.mxu1 %vm4196_vm3, %v17969_v46 }
 0x2f7   : > { %14436 = vmatmul.mubr.msk.f32.gmra.mrb[44].mxu1 %vm4196_vm3, %v17973_v48 }
 0x2f8   : > { %14438 = vmatprep.mubr.msk.f32.mxu1 %vm4196_vm3, %v17977_v60 }
 0x2fb   : > { %14439 = vmatmul.mubr.msk.f32.gmra.mrb[46].mxu1 %vm4196_vm3, %v17981_v17 }
 0x2fc   : > { %14441 = vmatprep.mubr.msk.f32.mxu1 %vm4196_vm3, %v17985_v27 }
 0x2ff   : > { %14442 = vmatmul.mubr.msk.f32.gmra.mrb[48].mxu1 %vm4196_vm3, %v17989_v13 }
 0x300   : > { %14444 = vmatprep.mubr.msk.f32.mxu1 %vm4196_vm3, %v17993_v11 }
 0x303   : > { %14445 = vmatmul.mubr.msk.f32.gmra.mrb[50].mxu1 %vm4196_vm3, %v17997_v7 }
 0x304   : > { %14447 = vmatprep.mubr.msk.f32.mxu1 %vm4196_vm3, %v18001_v2 }
 0x307   : > { %14448 = vmatmul.mubr.msk.f32.gmra.mrb[52].mxu1 %vm4196_vm3, %v18005_v63 }
 0x308   : > { %14450 = vmatprep.mubr.msk.f32.mxu1 %vm4196_vm3, %v18009_v61 }
 0x30b   : > { %14451 = vmatmul.mubr.msk.f32.gmra.mrb[54].mxu1 %vm4196_vm3, %v18013_v58 }
 0x30c   : > { %14453 = vmatprep.mubr.msk.f32.mxu1 %vm4196_vm3, %v18017_v31 }
 0x30f   : > { %14454 = vmatmul.mubr.msk.f32.gmra.mrb[56].mxu1 %vm4196_vm3, %v18021_v56 }
 0x310   : > { %14456 = vmatprep.mubr.msk.f32.mxu1 %vm4196_vm3, %v18025_v54 }
 0x313   : > { %14457 = vmatmul.mubr.msk.f32.gmra.mrb[58].mxu1 %vm4196_vm3, %v18029_v6 }
 0x314   : > { %14459 = vmatprep.mubr.msk.f32.mxu1 %vm4196_vm3, %v18033_v16 }
 0x317   : > { %14460 = vmatmul.mubr.msk.f32.gmra.mrb[60].mxu1 %vm4196_vm3, %v18037_v36 }
 0x318   : > { %14462 = vmatprep.mubr.msk.f32.mxu1 %vm4196_vm3, %v18234_v50 }
 0x31b   : > { %14463 = vmatmul.mubr.msk.f32.gmra.mrb[62].mxu1 %vm4196_vm3, %v18238_v53 }
 0x31c   : > { %14467 = vmatprep.mubr.msk.f32.mxu1 %vm4196_vm3, %v17716_v0  ;;  %v19935_v0 = vld [vmem:[#allocation40_spill] sm:$0xff] }
 0x31f   : > { %14468 = vmatmul.mubr.msk.f32.vlgmr.msra.gmra.mrb[32].mxu1 %vm4196_vm3, %v17722_v10  ;;  %v19936_v10 = vld [vmem:[#allocation41_spill] sm:$0xff] }
 0x320   : > { %14516 = vmatpush3.msra.mxu1 %v12350_v62  ;;  %14470 = vmatprep.mubr.msk.f32.mxu1 %vm4196_vm3, %v17730_v42  ;;  %v18305_v42 = vld [vmem:[#allocation3 + $0x181] sm:$0xff] }
 0x321   : > { %14565 = vmatprep.subr.mxu1 %v12383_v51  ;;  %v19945_v62 = vld [vmem:[#allocation18_spill] sm:$0xff] }
 0x323   : > { %14471 = vmatmul.mubr.msk.f32.gmra.mrb[34].mxu1 %vm4196_vm3, %v17736_v34  ;;  %v18309_v34 = vld [vmem:[#allocation3 + $0x189] sm:$0xff] }
 0x324   : > { %14473 = vmatprep.mubr.msk.f32.mxu1 %vm4196_vm3, %v17744_v9  ;;  %v19937_v9 = vld [vmem:[#allocation10_spill] sm:$0xff] }
 0x327   : > { %14474 = vmatmul.mubr.msk.f32.gmra.mrb[36].mxu1 %vm4196_vm3, %v17750_v3  ;;  %v12416_v3 = vld [vmem:[%s19667_s5 + $0x38] sm:$0xff] }
 0x328   : > { %14476 = vmatprep.mubr.msk.f32.mxu1 %vm4196_vm3, %v17758_v52  ;;  %v19938_v52 = vld [vmem:[#allocation11_spill] sm:$0xff] }
 0x32b   : > { %14477 = vmatmul.mubr.msk.f32.gmra.mrb[38].mxu1 %vm4196_vm3, %v17764_v43  ;;  %v19939_v43 = vld [vmem:[#allocation12_spill] sm:$0xff] }
 0x32c   : > { %14479 = vmatprep.mubr.msk.f32.mxu1 %vm4196_vm3, %v17772_v55  ;;  %v19940_v55 = vld [vmem:[#allocation13_spill] sm:$0xff] }
 0x32f   : > { %14480 = vmatmul.mubr.msk.f32.gmra.mrb[40].mxu1 %vm4196_vm3, %v17778_v47  ;;  %v19941_v47 = vld [vmem:[#allocation14_spill] sm:$0xff] }
 0x330   : > { %14482 = vmatprep.mubr.msk.f32.mxu1 %vm4196_vm3, %v17786_v25  ;;  %v19942_v25 = vld [vmem:[#allocation15_spill] sm:$0xff] }
 0x333   : > { %14483 = vmatmul.mubr.msk.f32.gmra.mrb[42].mxu1 %vm4196_vm3, %v17792_v14  ;;  %v19943_v14 = vld [vmem:[#allocation16_spill] sm:$0xff] }
 0x334   : > { %14485 = vmatprep.mubr.msk.f32.mxu1 %vm4196_vm3, %v17800_v37  ;;  %v19944_v37 = vld [vmem:[#allocation17_spill] sm:$0xff] }
 0x337   : > { %14486 = vmatmul.mubr.msk.f32.gmra.mrb[44].mxu1 %vm4196_vm3, %v17806_v20 }
 0x338   : > { %14488 = vmatprep.mubr.msk.f32.mxu1 %vm4196_vm3, %v17814_v41 }
 0x33b   : > { %14489 = vmatmul.mubr.msk.f32.gmra.mrb[46].mxu1 %vm4196_vm3, %v17820_v22 }
 0x33c   : > { %14491 = vmatprep.mubr.msk.f32.mxu1 %vm4196_vm3, %v17828_v45 }
 0x33f   : > { %14492 = vmatmul.mubr.msk.f32.gmra.mrb[48].mxu1 %vm4196_vm3, %v17834_v26 }
 0x340   : > { %14494 = vmatprep.mubr.msk.f32.mxu1 %vm4196_vm3, %v17842_v49 }
 0x343   : > { %14495 = vmatmul.mubr.msk.f32.gmra.mrb[50].mxu1 %vm4196_vm3, %v17848_v24 }
 0x344   : > { %14497 = vmatprep.mubr.msk.f32.mxu1 %vm4196_vm3, %v17856_v35 }
 0x347   : > { %14498 = vmatmul.mubr.msk.f32.gmra.mrb[52].mxu1 %vm4196_vm3, %v17862_v39 }
 0x348   : > { %14500 = vmatprep.mubr.msk.f32.mxu1 %vm4196_vm3, %v17870_v21 }
 0x34b   : > { %14501 = vmatmul.mubr.msk.f32.gmra.mrb[54].mxu1 %vm4196_vm3, %v17876_v29 }
 0x34c   : > { %14503 = vmatprep.mubr.msk.f32.mxu1 %vm4196_vm3, %v17884_v23 }
 0x34f   : > { %14504 = vmatmul.mubr.msk.f32.gmra.mrb[56].mxu1 %vm4196_vm3, %v17890_v33 }
 0x350   : > { %14506 = vmatprep.mubr.msk.f32.mxu1 %vm4196_vm3, %v17895_v1 }
 0x353   : > { %14507 = vmatmul.mubr.msk.f32.gmra.mrb[58].mxu1 %vm4196_vm3, %v17900_v40 }
 0x354   : > { %14509 = vmatprep.mubr.msk.f32.mxu1 %vm4196_vm3, %v19935_v0 }
 0x357   : > { %14510 = vmatmul.mubr.msk.f32.gmra.mrb[60].mxu1 %vm4196_vm3, %v19936_v10 }
 0x358   : > { %14512 = vmatprep.mubr.msk.f32.mxu1 %vm4196_vm3, %v18305_v42 }
 0x35b   : > { %14513 = vmatmul.mubr.msk.f32.gmra.mrb[62].mxu1 %vm4196_vm3, %v18309_v34 }
 0x35c   : > { %14517 = vmatprep.mubr.msk.f32.mxu1 %vm4196_vm3, %v19937_v9  ;;  %v19947_v9 = vld [vmem:[#allocation20_spill] sm:$0xff] }
 0x35f   : > { %14518 = vmatmul.mubr.msk.f32.vlgmr.msra.gmra.mrb[32].mxu1 %vm4196_vm3, %v19938_v52  ;;  %v19948_v52 = vld [vmem:[#allocation21_spill] sm:$0xff] }
 0x360   : > { %14566 = vmatpush3.msra.mxu1 %v12383_v51  ;;  %14520 = vmatprep.mubr.msk.f32.mxu1 %vm4196_vm3, %v19939_v43  ;;  %v19946_v51 = vld [vmem:[#allocation19_spill] sm:$0xff] }
 0x361   : > { %14615 = vmatprep.subr.mxu1 %v12416_v3 }
 0x363   : > { %14521 = vmatmul.mubr.msk.f32.gmra.mrb[34].mxu1 %vm4196_vm3, %v19940_v55 }
 0x364   : > { %14523 = vmatprep.mubr.msk.f32.mxu1 %vm4196_vm3, %v19941_v47  ;;  %v19949_v47 = vld [vmem:[#allocation22_spill] sm:$0xff] }
 0x367   : > { %14524 = vmatmul.mubr.msk.f32.gmra.mrb[36].mxu1 %vm4196_vm3, %v19942_v25  ;;  %v19950_v25 = vld [vmem:[#allocation23_spill] sm:$0xff] }
 0x368   : > { %14526 = vmatprep.mubr.msk.f32.mxu1 %vm4196_vm3, %v19943_v14  ;;  %v19951_v14 = vld [vmem:[#allocation24_spill] sm:$0xff] }
 0x36b   : > { %14527 = vmatmul.mubr.msk.f32.gmra.mrb[38].mxu1 %vm4196_vm3, %v19944_v37  ;;  %v19952_v37 = vld [vmem:[#allocation25_spill] sm:$0xff] }
 0x36c   : > { %14529 = vmatprep.mubr.msk.f32.mxu1 %vm4196_vm3, %v19945_v62  ;;  %v19953_v62 = vld [vmem:[#allocation26_spill] sm:$0xff] }
 0x36f   : > { %14530 = vmatmul.mubr.msk.f32.gmra.mrb[40].mxu1 %vm4196_vm3, %v19946_v51  ;;  %v19954_v51 = vld [vmem:[#allocation27_spill] sm:$0xff] }
 0x370   : > { %14532 = vmatprep.mubr.msk.f32.mxu1 %vm4196_vm3, %v19947_v9  ;;  %v19955_v9 = vld [vmem:[#allocation28_spill] sm:$0xff] }
 0x373   : > { %14533 = vmatmul.mubr.msk.f32.gmra.mrb[42].mxu1 %vm4196_vm3, %v19948_v52  ;;  %v19956_v52 = vld [vmem:[#allocation29_spill] sm:$0xff] }
 0x374   : > { %14535 = vmatprep.mubr.msk.f32.mxu1 %vm4196_vm3, %v19949_v47  ;;  %v19957_v47 = vld [vmem:[#allocation30_spill] sm:$0xff] }
 0x377   : > { %14536 = vmatmul.mubr.msk.f32.gmra.mrb[44].mxu1 %vm4196_vm3, %v19950_v25  ;;  %v19958_v25 = vld [vmem:[#allocation31_spill] sm:$0xff] }
 0x378   : > { %14538 = vmatprep.mubr.msk.f32.mxu1 %vm4196_vm3, %v19951_v14  ;;  %v19959_v14 = vld [vmem:[#allocation32_spill] sm:$0xff] }
 0x37b   : > { %14539 = vmatmul.mubr.msk.f32.gmra.mrb[46].mxu1 %vm4196_vm3, %v19952_v37  ;;  %v19960_v37 = vld [vmem:[#allocation33_spill] sm:$0xff] }
 0x37c   : > { %14541 = vmatprep.mubr.msk.f32.mxu1 %vm4196_vm3, %v19953_v62  ;;  %v19961_v62 = vld [vmem:[#allocation34_spill] sm:$0xff] }
 0x37f   : > { %14542 = vmatmul.mubr.msk.f32.gmra.mrb[48].mxu1 %vm4196_vm3, %v19954_v51 }
 0x380   : > { %14544 = vmatprep.mubr.msk.f32.mxu1 %vm4196_vm3, %v19955_v9  ;;  %v19962_v9 = vld [vmem:[#allocation35_spill] sm:$0xff] }
 0x383   : > { %14545 = vmatmul.mubr.msk.f32.gmra.mrb[50].mxu1 %vm4196_vm3, %v19956_v52 }
 0x384   : > { %14547 = vmatprep.mubr.msk.f32.mxu1 %vm4196_vm3, %v19957_v47 }
 0x387   : > { %14548 = vmatmul.mubr.msk.f32.gmra.mrb[52].mxu1 %vm4196_vm3, %v19958_v25 }
 0x388   : > { %14550 = vmatprep.mubr.msk.f32.mxu1 %vm4196_vm3, %v19959_v14  ;;  %v18376_v14 = vld [vmem:[#allocation3 + $0x182] sm:$0xff] }
 0x38b   : > { %14551 = vmatmul.mubr.msk.f32.gmra.mrb[54].mxu1 %vm4196_vm3, %v19960_v37 }
 0x38c   : > { %14553 = vmatprep.mubr.msk.f32.mxu1 %vm4196_vm3, %v19961_v62  ;;  %v18380_v62 = vld [vmem:[#allocation3 + $0x18a] sm:$0xff] }
 0x38f   : > { %14554 = vmatmul.mubr.msk.f32.gmra.mrb[56].mxu1 %vm4196_vm3, %v18150_v57 }
 0x390   : > { %14556 = vmatprep.mubr.msk.f32.mxu1 %vm4196_vm3, %v19962_v9 }
 0x393   : > { %14557 = vmatmul.mubr.msk.f32.gmra.mrb[58].mxu1 %vm4196_vm3, %v18158_v5 }
 0x394   : > { %14559 = vmatprep.mubr.msk.f32.mxu1 %vm4196_vm3, %v18162_v59  ;;  %v12449_v59 = vld [vmem:[%s19667_s5 + $0x40] sm:$0xff] }
 0x397   : > { %14560 = vmatmul.mubr.msk.f32.gmra.mrb[60].mxu1 %vm4196_vm3, %v18166_v18 }
 0x398   : > { %14562 = vmatprep.mubr.msk.f32.mxu1 %vm4196_vm3, %v18376_v14 }
 0x39b   : > { %14563 = vmatmul.mubr.msk.f32.gmra.mrb[62].mxu1 %vm4196_vm3, %v18380_v62 }
 0x39c   : > { %14567 = vmatprep.mubr.msk.f32.mxu1 %vm4196_vm3, %v17929_v4  ;;  %v6573_v4 = vld [vmem:[#allocation3 + $0x198] sm:$0xff] }
 0x39f   : > { %14568 = vmatmul.mubr.msk.f32.vlgmr.msra.gmra.mrb[32].mxu1 %vm4196_vm3, %v17933_v8  ;;  %v6574_v8 = vld [vmem:[#allocation3 + $0x1a0] sm:$0xff] }
 0x3a0   : > { %14616 = vmatpush3.msra.mxu1 %v12416_v3  ;;  %14570 = vmatprep.mubr.msk.f32.mxu1 %vm4196_vm3, %v17937_v32  ;;  %v6930_v32 = vld [vmem:[#allocation3 + $0x31] sm:$0xff] }
 0x3a1   : > { %14665 = vmatprep.subr.mxu1 %v12449_v59 }
 0x3a3   : > { %14571 = vmatmul.mubr.msk.f32.gmra.mrb[34].mxu1 %vm4196_vm3, %v17941_v12  ;;  %v12483_v12 = vld [vmem:[%s19669_s7 + $0x8] sm:$0xff] }
 0x3a4   : > { %14573 = vmatprep.mubr.msk.f32.mxu1 %vm4196_vm3, %v17945_v15  ;;  %14715 = vmatprep.subr.mxu0 %v12483_v12  ;;  %v6931_v15 = vld [vmem:[#allocation3 + $0x39] sm:$0xff] }
 0x3a5   : > { %14716 = vmatpush3.msra.mxu0 %v12483_v12 }
 0x3a7   : > { %14574 = vmatmul.mubr.msk.f32.gmra.mrb[36].mxu1 %vm4196_vm3, %v17949_v28  ;;  %v6932_v28 = vld [vmem:[#allocation3 + $0x49] sm:$0xff] }
 0x3a8   : > { %14576 = vmatprep.mubr.msk.f32.mxu1 %vm4196_vm3, %v17953_v19  ;;  %v6933_v19 = vld [vmem:[#allocation3 + $0x51] sm:$0xff] }
 0x3ab   : > { %14577 = vmatmul.mubr.msk.f32.gmra.mrb[38].mxu1 %vm4196_vm3, %v17957_v30  ;;  %v6934_v30 = vld [vmem:[#allocation3 + $0x61] sm:$0xff] }
 0x3ac   : > { %14579 = vmatprep.mubr.msk.f32.mxu1 %vm4196_vm3, %v17961_v38  ;;  %v6935_v38 = vld [vmem:[#allocation3 + $0x69] sm:$0xff] }
 0x3af   : > { %14580 = vmatmul.mubr.msk.f32.gmra.mrb[40].mxu1 %vm4196_vm3, %v17965_v44  ;;  %v6936_v44 = vld [vmem:[#allocation3 + $0x79] sm:$0xff] }
 0x3b0   : > { %14582 = vmatprep.mubr.msk.f32.mxu1 %vm4196_vm3, %v17969_v46  ;;  %v6937_v46 = vld [vmem:[#allocation3 + $0x81] sm:$0xff] }
 0x3b3   : > { %14583 = vmatmul.mubr.msk.f32.gmra.mrb[42].mxu1 %vm4196_vm3, %v17973_v48  ;;  %v6938_v48 = vld [vmem:[#allocation3 + $0x91] sm:$0xff] }
 0x3b4   : > { %14585 = vmatprep.mubr.msk.f32.mxu1 %vm4196_vm3, %v17977_v60  ;;  %v6939_v60 = vld [vmem:[#allocation3 + $0x99] sm:$0xff] }
 0x3b7   : > { %14586 = vmatmul.mubr.msk.f32.gmra.mrb[44].mxu1 %vm4196_vm3, %v17981_v17  ;;  %v6940_v17 = vld [vmem:[#allocation3 + $0xa9] sm:$0xff] }
 0x3b8   : > { %14588 = vmatprep.mubr.msk.f32.mxu1 %vm4196_vm3, %v17985_v27  ;;  %v19976_v27 = vld [vmem:[#allocation28_spill] sm:$0xff] }
 0x3bb   : > { %14589 = vmatmul.mubr.msk.f32.gmra.mrb[46].mxu1 %vm4196_vm3, %v17989_v13  ;;  %v19977_v13 = vld [vmem:[#allocation32_spill] sm:$0xff] }
 0x3bc   : > { %14591 = vmatprep.mubr.msk.f32.mxu1 %vm4196_vm3, %v17993_v11  ;;  %v19978_v11 = vld [vmem:[#allocation34_spill] sm:$0xff] }
 0x3bf   : > { %14592 = vmatmul.mubr.msk.f32.gmra.mrb[48].mxu1 %vm4196_vm3, %v17997_v7  ;;  %v19979_v7 = vld [vmem:[#allocation36_spill] sm:$0xff] }
 0x3c0   : > { %14594 = vmatprep.mubr.msk.f32.mxu1 %vm4196_vm3, %v18001_v2  ;;  %v7347_v2 = vld [vmem:[#allocation3 + $0x19a] sm:$0xff] }
 0x3c3   : > { %14595 = vmatmul.mubr.msk.f32.gmra.mrb[50].mxu1 %vm4196_vm3, %v18005_v63  ;;  %v7895_v63 = vld [vmem:[#allocation4 + $0x1] sm:$0xff] }
 0x3c4   : > { %14597 = vmatprep.mubr.msk.f32.mxu1 %vm4196_vm3, %v18009_v61  ;;  %14717 = vmatprep.mubr.msk.f32.mxu0 %vm4196_vm3, %v7895_v63  ;;  %v7896_v61 = vld [vmem:[#allocation4 + $0x9] sm:$0xff] }
 0x3c5   : > { %14718 = vmatmul.mubr.msk.f32.vlgmr.msra.gmra.mrb[32].mxu0 %vm4196_vm3, %v7896_v61 }
 0x3c7   : > { %14598 = vmatmul.mubr.msk.f32.gmra.mrb[52].mxu1 %vm4196_vm3, %v18013_v58  ;;  %v7894_v58 = vld [vmem:[%s19669_s7] sm:$0xff] }
 0x3c8   : > { %14600 = vmatprep.mubr.msk.f32.mxu1 %vm4196_vm3, %v18017_v31  ;;  %14765 = vmatprep.subr.mxu0 %v7894_v58  ;;  %v18573_v31 = vld [vmem:[%s19669_s7 + $0x10] sm:$0xff] }
 0x3c9   : > { %14766 = vmatpush3.msra.mxu0 %v7894_v58 }
 0x3ca   : > { %14815 = vmatprep.subr.mxu0 %v18573_v31 }
 0x3cb   : > { %14601 = vmatmul.mubr.msk.f32.gmra.mrb[54].mxu1 %vm4196_vm3, %v18021_v56  ;;  %v18579_v56 = vld [vmem:[%s19668_s6] ss:$0 sm:$0xff] }
 0x3cc   : > { %14603 = vmatprep.mubr.msk.f32.mxu1 %vm4196_vm3, %v18025_v54 }
 0x3cf   : > { %14604 = vmatmul.mubr.msk.f32.gmra.mrb[56].mxu1 %vm4196_vm3, %v18029_v6 }
 0x3d0   : > { %14606 = vmatprep.mubr.msk.f32.mxu1 %vm4196_vm3, %v18033_v16 }
 0x3d3   : > { %14607 = vmatmul.mubr.msk.f32.gmra.mrb[58].mxu1 %vm4196_vm3, %v18037_v36 }
 0x3d4   : > { %14609 = vmatprep.mubr.msk.f32.mxu1 %vm4196_vm3, %v18234_v50 }
 0x3d7   : > { %14610 = vmatmul.mubr.msk.f32.gmra.mrb[60].mxu1 %vm4196_vm3, %v18238_v53 }
 0x3d8   : > { %14612 = vmatprep.mubr.msk.f32.mxu1 %vm4196_vm3, %v6573_v4 }
 0x3db   : > { %14613 = vmatmul.mubr.msk.f32.gmra.mrb[62].mxu1 %vm4196_vm3, %v6574_v8 }
 0x3dc   : > { %14617 = vmatprep.mubr.msk.f32.mxu1 %vm4196_vm3, %v6930_v32 }
 0x3df   : > { %14618 = vmatmul.mubr.msk.f32.vlgmr.msra.gmra.mrb[32].mxu1 %vm4196_vm3, %v6931_v15 }
 0x3e0   : > { %14666 = vmatpush3.msra.mxu1 %v12449_v59  ;;  %14620 = vmatprep.mubr.msk.f32.mxu1 %vm4196_vm3, %v6932_v28 }
 0x3e3   : > { %14621 = vmatmul.mubr.msk.f32.gmra.mrb[34].mxu1 %vm4196_vm3, %v6933_v19 }
 0x3e4   : > { %14623 = vmatprep.mubr.msk.f32.mxu1 %vm4196_vm3, %v6934_v30 }
 0x3e7   : > { %14624 = vmatmul.mubr.msk.f32.gmra.mrb[36].mxu1 %vm4196_vm3, %v6935_v38 }
 0x3e8   : > { %14626 = vmatprep.mubr.msk.f32.mxu1 %vm4196_vm3, %v6936_v44 }
 0x3eb   : > { %14627 = vmatmul.mubr.msk.f32.gmra.mrb[38].mxu1 %vm4196_vm3, %v6937_v46 }
 0x3ec   : > { %14629 = vmatprep.mubr.msk.f32.mxu1 %vm4196_vm3, %v6938_v48 }
 0x3ef   : > { %14630 = vmatmul.mubr.msk.f32.gmra.mrb[40].mxu1 %vm4196_vm3, %v6939_v60 }
 0x3f0   : > { %14632 = vmatprep.mubr.msk.f32.mxu1 %vm4196_vm3, %v6940_v17 }
 0x3f3   : > { %14633 = vmatmul.mubr.msk.f32.gmra.mrb[42].mxu1 %vm4196_vm3, %v17806_v20  ;;  %v6960_v20 = vld [vmem:[#allocation3 + $0x199] sm:$0xff] }
 0x3f4   : > { %14635 = vmatprep.mubr.msk.f32.mxu1 %vm4196_vm3, %v17814_v41  ;;  %v6961_v41 = vld [vmem:[#allocation3 + $0x1a1] sm:$0xff] }
 0x3f7   : > { %14636 = vmatmul.mubr.msk.f32.gmra.mrb[44].mxu1 %vm4196_vm3, %v17820_v22  ;;  %v19963_v22 = vld [vmem:[#allocation14_spill] sm:$0xff] }
 0x3f8   : > { %14638 = vmatprep.mubr.msk.f32.mxu1 %vm4196_vm3, %v17828_v45  ;;  %v19964_v45 = vld [vmem:[#allocation15_spill] sm:$0xff] }
 0x3fb   : > { %14639 = vmatmul.mubr.msk.f32.gmra.mrb[46].mxu1 %vm4196_vm3, %v17834_v26  ;;  %v19965_v26 = vld [vmem:[#allocation16_spill] sm:$0xff] }
 0x3fc   : > { %14641 = vmatprep.mubr.msk.f32.mxu1 %vm4196_vm3, %v17842_v49  ;;  %v19966_v49 = vld [vmem:[#allocation17_spill] sm:$0xff] }
 0x3ff   : > { %14642 = vmatmul.mubr.msk.f32.gmra.mrb[48].mxu1 %vm4196_vm3, %v17848_v24  ;;  %v19967_v24 = vld [vmem:[#allocation18_spill] sm:$0xff] }
 0x400   : > { %14644 = vmatprep.mubr.msk.f32.mxu1 %vm4196_vm3, %v17856_v35  ;;  %v19968_v35 = vld [vmem:[#allocation19_spill] sm:$0xff] }
 0x403   : > { %14645 = vmatmul.mubr.msk.f32.gmra.mrb[50].mxu1 %vm4196_vm3, %v17862_v39  ;;  %v19969_v39 = vld [vmem:[#allocation20_spill] sm:$0xff] }
 0x404   : > { %14647 = vmatprep.mubr.msk.f32.mxu1 %vm4196_vm3, %v17870_v21  ;;  %v19970_v21 = vld [vmem:[#allocation21_spill] sm:$0xff] }
 0x407   : > { %14648 = vmatmul.mubr.msk.f32.gmra.mrb[52].mxu1 %vm4196_vm3, %v17876_v29  ;;  %v19971_v29 = vld [vmem:[#allocation22_spill] sm:$0xff] }
 0x408   : > { %14650 = vmatprep.mubr.msk.f32.mxu1 %vm4196_vm3, %v17884_v23  ;;  %v19972_v23 = vld [vmem:[#allocation23_spill] sm:$0xff] }
 0x40b   : > { %14651 = vmatmul.mubr.msk.f32.gmra.mrb[54].mxu1 %vm4196_vm3, %v17890_v33  ;;  %v19973_v33 = vld [vmem:[#allocation24_spill] sm:$0xff] }
 0x40c   : > { %14653 = vmatprep.mubr.msk.f32.mxu1 %vm4196_vm3, %v17895_v1  ;;  %v19974_v1 = vld [vmem:[#allocation25_spill] sm:$0xff] }
 0x40f   : > { %14654 = vmatmul.mubr.msk.f32.gmra.mrb[56].mxu1 %vm4196_vm3, %v17900_v40  ;;  %v19975_v40 = vld [vmem:[#allocation26_spill] sm:$0xff] }
 0x410   : > { %14656 = vmatprep.mubr.msk.f32.mxu1 %vm4196_vm3, %v19935_v0 }
 0x413   : > { %14657 = vmatmul.mubr.msk.f32.gmra.mrb[58].mxu1 %vm4196_vm3, %v19936_v10 }
 0x414   : > { %14659 = vmatprep.mubr.msk.f32.mxu1 %vm4196_vm3, %v18305_v42 }
 0x417   : > { %14660 = vmatmul.mubr.msk.f32.gmra.mrb[60].mxu1 %vm4196_vm3, %v18309_v34 }
 0x418   : > { %14662 = vmatprep.mubr.msk.f32.mxu1 %vm4196_vm3, %v6960_v20 }
 0x41b   : > { %14663 = vmatmul.mubr.msk.f32.gmra.mrb[62].mxu1 %vm4196_vm3, %v6961_v41 }
 0x41c   : > { %14667 = vmatprep.mubr.msk.f32.mxu1 %vm4196_vm3, %v19939_v43 }
 0x41f   : > { %14668 = vmatmul.mubr.msk.f32.vlgmr.msra.gmra.mrb[32].mxu1 %vm4196_vm3, %v19940_v55 }
 0x420   : > { %14670 = vmatprep.mubr.msk.f32.mxu1 %vm4196_vm3, %v19963_v22 }
 0x423   : > { %14671 = vmatmul.mubr.msk.f32.gmra.mrb[34].mxu1 %vm4196_vm3, %v19964_v45 }
 0x424   : > { %14673 = vmatprep.mubr.msk.f32.mxu1 %vm4196_vm3, %v19965_v26 }
 0x427   : > { %14674 = vmatmul.mubr.msk.f32.gmra.mrb[36].mxu1 %vm4196_vm3, %v19966_v49 }
 0x428   : > { %14676 = vmatprep.mubr.msk.f32.mxu1 %vm4196_vm3, %v19967_v24 }
 0x42b   : > { %14677 = vmatmul.mubr.msk.f32.gmra.mrb[38].mxu1 %vm4196_vm3, %v19968_v35 }
 0x42c   : > { %14679 = vmatprep.mubr.msk.f32.mxu1 %vm4196_vm3, %v19969_v39 }
 0x42f   : > { %14680 = vmatmul.mubr.msk.f32.gmra.mrb[40].mxu1 %vm4196_vm3, %v19970_v21 }
 0x430   : > { %14682 = vmatprep.mubr.msk.f32.mxu1 %vm4196_vm3, %v19971_v29 }
 0x433   : > { %14683 = vmatmul.mubr.msk.f32.gmra.mrb[42].mxu1 %vm4196_vm3, %v19972_v23 }
 0x434   : > { %14685 = vmatprep.mubr.msk.f32.mxu1 %vm4196_vm3, %v19973_v33 }
 0x437   : > { %14686 = vmatmul.mubr.msk.f32.gmra.mrb[44].mxu1 %vm4196_vm3, %v19974_v1 }
 0x438   : > { %14688 = vmatprep.mubr.msk.f32.mxu1 %vm4196_vm3, %v19975_v40 }
 0x43b   : > { %14689 = vmatmul.mubr.msk.f32.gmra.mrb[46].mxu1 %vm4196_vm3, %v19954_v51 }
 0x43c   : > { %14691 = vmatprep.mubr.msk.f32.mxu1 %vm4196_vm3, %v19976_v27 }
 0x43f   : > { %14692 = vmatmul.mubr.msk.f32.gmra.mrb[48].mxu1 %vm4196_vm3, %v19956_v52 }
 0x440   : > { %14694 = vmatprep.mubr.msk.f32.mxu1 %vm4196_vm3, %v19957_v47 }
 0x443   : > { %14695 = vmatmul.mubr.msk.f32.gmra.mrb[50].mxu1 %vm4196_vm3, %v19958_v25 }
 0x444   : > { %14697 = vmatprep.mubr.msk.f32.mxu1 %vm4196_vm3, %v19977_v13 }
 0x447   : > { %14698 = vmatmul.mubr.msk.f32.gmra.mrb[52].mxu1 %vm4196_vm3, %v19960_v37 }
 0x448   : > { %14700 = vmatprep.mubr.msk.f32.mxu1 %vm4196_vm3, %v19978_v11 }
 0x44b   : > { %14701 = vmatmul.mubr.msk.f32.gmra.mrb[54].mxu1 %vm4196_vm3, %v18150_v57  ;;  %v7348_v57 = vld [vmem:[#allocation3 + $0x1a2] sm:$0xff] }
 0x44c   : > { %14703 = vmatprep.mubr.msk.f32.mxu1 %vm4196_vm3, %v19962_v9 }
 0x44f   : > { %14704 = vmatmul.mubr.msk.f32.gmra.mrb[56].mxu1 %vm4196_vm3, %v18158_v5 }
 0x450   : > { %14706 = vmatprep.mubr.msk.f32.mxu1 %vm4196_vm3, %v19979_v7 }
 0x453   : > { %14707 = vmatmul.mubr.msk.f32.gmra.mrb[58].mxu1 %vm4196_vm3, %v18166_v18 }
 0x454   : > { %14709 = vmatprep.mubr.msk.f32.mxu1 %vm4196_vm3, %v18376_v14 }
 0x457   : > { %14710 = vmatmul.mubr.msk.f32.gmra.mrb[60].mxu1 %vm4196_vm3, %v18380_v62 }
 0x458   : > { %14712 = vmatprep.mubr.msk.f32.mxu1 %vm4196_vm3, %v7347_v2 }
 0x45b   : > { %14713 = vmatmul.mubr.msk.f32.gmra.mrb[62].mxu1 %vm4196_vm3, %v7348_v57 }
 0x4f2   : > { %v14669_v54 = vpop.f32.mrb[32].mxu1 }
 0x4f3   : > { %v7712_v6 = vadd.f32 %v14669_v54, %v18579_v56  ;;  %v7513_v16 = vpop.f32.mrb[33].mxu1 }
 0x4f4   : > { %v7711_v36 = vadd.f32 %v18579_v56, %v7513_v16 }
 0x4f5   : > { %v7744_v5 = vmax.f32 %v7712_v6, 0.0 }
 0x4f6   : > { %v7743_v59 = vmax.f32 %v7711_v36, 0.0  ;;  %v14672_v18 = vpop.f32.mrb[34].mxu1 }
 0x4f7   : > { %7831 = vst.msk [vmem:[#allocation4 + $0x21] sm:$0xff] %vm4196_vm3, %v7744_v5  ;;  %v7714_v50 = vadd.f32 %v14672_v18, %v18579_v56  ;;  %v7523_v53 = vpop.f32.mrb[35].mxu1 }
 0x4f8   : > { %7830 = vst.msk [vmem:[#allocation4 + $0x19] sm:$0xff] %vm4196_vm3, %v7743_v59  ;;  %v7713_v0 = vadd.f32 %v18579_v56, %v7523_v53 }
 0x4f9   : > { %v7746_v10 = vmax.f32 %v7714_v50, 0.0 }
 0x4fa   : > { %v7745_v42 = vmax.f32 %v7713_v0, 0.0  ;;  %v14675_v34 = vpop.f32.mrb[36].mxu1 }
 0x4fb   : > { %7833 = vst.msk [vmem:[#allocation4 + $0x39] sm:$0xff] %vm4196_vm3, %v7746_v10  ;;  %v7716_v3 = vadd.f32 %v14675_v34, %v18579_v56  ;;  %v7533_v43 = vpop.f32.mrb[37].mxu1 }
 0x4fc   : > { %7832 = vst.msk [vmem:[#allocation4 + $0x31] sm:$0xff] %vm4196_vm3, %v7745_v42  ;;  %v7715_v55 = vadd.f32 %v18579_v56, %v7533_v43 }
 0x4fd   : > { %v7748_v47 = vmax.f32 %v7716_v3, 0.0 }
 0x4fe   : > { %v7747_v25 = vmax.f32 %v7715_v55, 0.0  ;;  %v14678_v14 = vpop.f32.mrb[38].mxu1  ;;  %v18599_v52 = vld [vmem:[#allocation4 + $0x21] sm:$0xff] }
 0x4ff   : > { %7835 = vst.msk [vmem:[#allocation4 + $0x51] sm:$0xff] %vm4196_vm3, %v7748_v47  ;;  %v7718_v37 = vadd.f32 %v14678_v14, %v18579_v56  ;;  %v7543_v62 = vpop.f32.mrb[39].mxu1  ;;  %v18593_v51 = vld [vmem:[#allocation4 + $0x19] sm:$0xff] }
 0x500   : > { %7834 = vst.msk [vmem:[#allocation4 + $0x49] sm:$0xff] %vm4196_vm3, %v7747_v25  ;;  %v7717_v9 = vadd.f32 %v18579_v56, %v7543_v62  ;;  %14720 = vmatprep.mubr.msk.f32.mxu0 %vm4196_vm3, %v18593_v51 }
 0x501   : > { %v7750_v4 = vmax.f32 %v7718_v37, 0.0  ;;  %14721 = vmatmul.mubr.msk.f32.gmra.mrb[34].mxu0 %vm4196_vm3, %v18599_v52 }
 0x502   : > { %v7749_v8 = vmax.f32 %v7717_v9, 0.0  ;;  %v14681_v32 = vpop.f32.mrb[40].mxu1  ;;  %v18611_v30 = vld [vmem:[#allocation4 + $0x39] sm:$0xff] }
 0x503   : > { %7837 = vst.msk [vmem:[#allocation4 + $0x69] sm:$0xff] %vm4196_vm3, %v7750_v4  ;;  %v7720_v12 = vadd.f32 %v14681_v32, %v18579_v56  ;;  %v7553_v15 = vpop.f32.mrb[41].mxu1  ;;  %v18605_v28 = vld [vmem:[#allocation4 + $0x31] sm:$0xff] }
 0x504   : > { %7836 = vst.msk [vmem:[#allocation4 + $0x61] sm:$0xff] %vm4196_vm3, %v7749_v8  ;;  %v7719_v19 = vadd.f32 %v18579_v56, %v7553_v15  ;;  %14723 = vmatprep.mubr.msk.f32.mxu0 %vm4196_vm3, %v18605_v28 }
 0x505   : > { %v7752_v38 = vmax.f32 %v7720_v12, 0.0  ;;  %14724 = vmatmul.mubr.msk.f32.gmra.mrb[36].mxu0 %vm4196_vm3, %v18611_v30 }
 0x506   : > { %v7751_v44 = vmax.f32 %v7719_v19, 0.0  ;;  %v14684_v46 = vpop.f32.mrb[42].mxu1  ;;  %v18623_v41 = vld [vmem:[#allocation4 + $0x51] sm:$0xff] }
 0x507   : > { %7839 = vst.msk [vmem:[#allocation4 + $0x81] sm:$0xff] %vm4196_vm3, %v7752_v38  ;;  %v7722_v48 = vadd.f32 %v14684_v46, %v18579_v56  ;;  %v7563_v60 = vpop.f32.mrb[43].mxu1  ;;  %v18617_v17 = vld [vmem:[#allocation4 + $0x49] sm:$0xff] }
 0x508   : > { %7838 = vst.msk [vmem:[#allocation4 + $0x79] sm:$0xff] %vm4196_vm3, %v7751_v44  ;;  %v7721_v20 = vadd.f32 %v18579_v56, %v7563_v60  ;;  %14726 = vmatprep.mubr.msk.f32.mxu0 %vm4196_vm3, %v18617_v17 }
 0x509   : > { %v7754_v22 = vmax.f32 %v7722_v48, 0.0  ;;  %14727 = vmatmul.mubr.msk.f32.gmra.mrb[38].mxu0 %vm4196_vm3, %v18623_v41 }
 0x50a   : > { %v7753_v45 = vmax.f32 %v7721_v20, 0.0  ;;  %v14687_v26 = vpop.f32.mrb[44].mxu1  ;;  %v18635_v21 = vld [vmem:[#allocation4 + $0x69] sm:$0xff] }
 0x50b   : > { %7841 = vst.msk [vmem:[#allocation4 + $0x99] sm:$0xff] %vm4196_vm3, %v7754_v22  ;;  %v7724_v49 = vadd.f32 %v14687_v26, %v18579_v56  ;;  %v7573_v24 = vpop.f32.mrb[45].mxu1  ;;  %v18629_v35 = vld [vmem:[#allocation4 + $0x61] sm:$0xff] }
 0x50c   : > { %7840 = vst.msk [vmem:[#allocation4 + $0x91] sm:$0xff] %vm4196_vm3, %v7753_v45  ;;  %v7723_v39 = vadd.f32 %v18579_v56, %v7573_v24  ;;  %14729 = vmatprep.mubr.msk.f32.mxu0 %vm4196_vm3, %v18629_v35 }
 0x50d   : > { %v7756_v29 = vmax.f32 %v7724_v49, 0.0  ;;  %14730 = vmatmul.mubr.msk.f32.gmra.mrb[40].mxu0 %vm4196_vm3, %v18635_v21 }
 0x50e   : > { %v7755_v23 = vmax.f32 %v7723_v39, 0.0  ;;  %v14690_v33 = vpop.f32.mrb[46].mxu1  ;;  %v18647_v11 = vld [vmem:[#allocation4 + $0x81] sm:$0xff] }
 0x50f   : > { %7843 = vst.msk [vmem:[#allocation4 + $0xb1] sm:$0xff] %vm4196_vm3, %v7756_v29  ;;  %v7726_v1 = vadd.f32 %v14690_v33, %v18579_v56  ;;  %v7583_v40 = vpop.f32.mrb[47].mxu1  ;;  %v18641_v27 = vld [vmem:[#allocation4 + $0x79] sm:$0xff] }
 0x510   : > { %7842 = vst.msk [vmem:[#allocation4 + $0xa9] sm:$0xff] %vm4196_vm3, %v7755_v23  ;;  %v7725_v13 = vadd.f32 %v18579_v56, %v7583_v40  ;;  %14732 = vmatprep.mubr.msk.f32.mxu0 %vm4196_vm3, %v18641_v27 }
 0x511   : > { %v7758_v7 = vmax.f32 %v7726_v1, 0.0  ;;  %14733 = vmatmul.mubr.msk.f32.gmra.mrb[42].mxu0 %vm4196_vm3, %v18647_v11 }
 0x512   : > { %v7757_v2 = vmax.f32 %v7725_v13, 0.0  ;;  %v14693_v57 = vpop.f32.mrb[48].mxu1  ;;  %v18659_v6 = vld [vmem:[#allocation4 + $0x99] sm:$0xff] }
 0x513   : > { %7845 = vst.msk [vmem:[#allocation4 + $0xc9] sm:$0xff] %vm4196_vm3, %v7758_v7  ;;  %v7728_v63 = vadd.f32 %v14693_v57, %v18579_v56  ;;  %v7593_v61 = vpop.f32.mrb[49].mxu1  ;;  %v18653_v58 = vld [vmem:[#allocation4 + $0x91] sm:$0xff] }
 0x514   : > { %7844 = vst.msk [vmem:[#allocation4 + $0xc1] sm:$0xff] %vm4196_vm3, %v7757_v2  ;;  %v7727_v54 = vadd.f32 %v18579_v56, %v7593_v61  ;;  %14735 = vmatprep.mubr.msk.f32.mxu0 %vm4196_vm3, %v18653_v58 }
 0x515   : > { %v7760_v16 = vmax.f32 %v7728_v63, 0.0  ;;  %14736 = vmatmul.mubr.msk.f32.gmra.mrb[44].mxu0 %vm4196_vm3, %v18659_v6 }
 0x516   : > { %v7759_v36 = vmax.f32 %v7727_v54, 0.0  ;;  %v14696_v5 = vpop.f32.mrb[50].mxu1  ;;  %v18671_v0 = vld [vmem:[#allocation4 + $0xb1] sm:$0xff] }
 0x517   : > { %7847 = vst.msk [vmem:[#allocation4 + $0xe1] sm:$0xff] %vm4196_vm3, %v7760_v16  ;;  %v7730_v59 = vadd.f32 %v14696_v5, %v18579_v56  ;;  %v7603_v18 = vpop.f32.mrb[51].mxu1  ;;  %v18665_v50 = vld [vmem:[#allocation4 + $0xa9] sm:$0xff] }
 0x518   : > { %7846 = vst.msk [vmem:[#allocation4 + $0xd9] sm:$0xff] %vm4196_vm3, %v7759_v36  ;;  %v7729_v53 = vadd.f32 %v18579_v56, %v7603_v18  ;;  %14738 = vmatprep.mubr.msk.f32.mxu0 %vm4196_vm3, %v18665_v50 }
 0x519   : > { %v7762_v10 = vmax.f32 %v7730_v59, 0.0  ;;  %14739 = vmatmul.mubr.msk.f32.gmra.mrb[46].mxu0 %vm4196_vm3, %v18671_v0 }
 0x51a   : > { %v7761_v42 = vmax.f32 %v7729_v53, 0.0  ;;  %v14699_v34 = vpop.f32.mrb[52].mxu1  ;;  %v18683_v25 = vld [vmem:[#allocation4 + $0xc9] sm:$0xff] }
 0x51b   : > { %7849 = vst.msk [vmem:[#allocation4 + $0xf9] sm:$0xff] %vm4196_vm3, %v7762_v10  ;;  %v7732_v3 = vadd.f32 %v14699_v34, %v18579_v56  ;;  %v7613_v43 = vpop.f32.mrb[53].mxu1  ;;  %v18677_v55 = vld [vmem:[#allocation4 + $0xc1] sm:$0xff] }
 0x51c   : > { %7848 = vst.msk [vmem:[#allocation4 + $0xf1] sm:$0xff] %vm4196_vm3, %v7761_v42  ;;  %v7731_v47 = vadd.f32 %v18579_v56, %v7613_v43  ;;  %14741 = vmatprep.mubr.msk.f32.mxu0 %vm4196_vm3, %v18677_v55  ;;  %v7862_v43 = vld [vmem:[#allocation4] sm:$0xff] }
 0x51d   : > { %v7764_v14 = vmax.f32 %v7732_v3, 0.0  ;;  %14742 = vmatmul.mubr.msk.f32.gmra.mrb[48].mxu0 %vm4196_vm3, %v18683_v25 }
 0x51e   : > { %v7763_v37 = vmax.f32 %v7731_v47, 0.0  ;;  %v14702_v62 = vpop.f32.mrb[54].mxu1  ;;  %v18695_v12 = vld [vmem:[#allocation4 + $0xe1] sm:$0xff] }
 0x51f   : > { %7851 = vst.msk [vmem:[#allocation4 + $0x111] sm:$0xff] %vm4196_vm3, %v7764_v14  ;;  %v7734_v9 = vadd.f32 %v14702_v62, %v18579_v56  ;;  %v7623_v4 = vpop.f32.mrb[55].mxu1  ;;  %v18689_v8 = vld [vmem:[#allocation4 + $0xd9] sm:$0xff]  ;;  %v7863_v14 = vld [vmem:[#allocation4 + $0x8] sm:$0xff] }
 0x520   : > { %7850 = vst.msk [vmem:[#allocation4 + $0x109] sm:$0xff] %vm4196_vm3, %v7763_v37  ;;  %v7733_v32 = vadd.f32 %v18579_v56, %v7623_v4  ;;  %14744 = vmatprep.mubr.msk.f32.mxu0 %vm4196_vm3, %v18689_v8  ;;  %v18769_v37 = vld [vmem:[%s19669_s7 + $0x18] sm:$0xff]  ;;  %v18782_v4 = vld [vmem:[#allocation4 + $0x30] sm:$0xff] }
 0x521   : > { %v7766_v15 = vmax.f32 %v7734_v9, 0.0  ;;  %14745 = vmatmul.mubr.msk.f32.gmra.mrb[50].mxu0 %vm4196_vm3, %v18695_v12  ;;  %v18772_v62 = vld [vmem:[#allocation4 + $0x18] sm:$0xff]  ;;  %v18778_v9 = vld [vmem:[#allocation4 + $0x20] sm:$0xff] }
 0x522   : > { %v7765_v19 = vmax.f32 %v7733_v32, 0.0  ;;  %v14705_v38 = vpop.f32.mrb[56].mxu1  ;;  %v18707_v20 = vld [vmem:[#allocation4 + $0xf9] sm:$0xff] }
 0x523   : > { %7853 = vst.msk [vmem:[#allocation4 + $0x129] sm:$0xff] %vm4196_vm3, %v7766_v15  ;;  %v7736_v44 = vadd.f32 %v14705_v38, %v18579_v56  ;;  %v7633_v46 = vpop.f32.mrb[57].mxu1  ;;  %v18701_v48 = vld [vmem:[#allocation4 + $0xf1] sm:$0xff]  ;;  %v18802_v38 = vld [vmem:[#allocation4 + $0x68] sm:$0xff] }
 0x524   : > { %7852 = vst.msk [vmem:[#allocation4 + $0x121] sm:$0xff] %vm4196_vm3, %v7765_v19  ;;  %v7735_v60 = vadd.f32 %v18579_v56, %v7633_v46  ;;  %14747 = vmatprep.mubr.msk.f32.mxu0 %vm4196_vm3, %v18701_v48  ;;  %v18786_v32 = vld [vmem:[#allocation4 + $0x38] sm:$0xff]  ;;  %v18794_v15 = vld [vmem:[#allocation4 + $0x50] sm:$0xff]  ;;  %v18798_v19 = vld [vmem:[#allocation4 + $0x60] sm:$0xff] }
 0x525   : > { %v7768_v22 = vmax.f32 %v7736_v44, 0.0  ;;  %14748 = vmatmul.mubr.msk.f32.gmra.mrb[52].mxu0 %vm4196_vm3, %v18707_v20  ;;  %v18806_v44 = vld [vmem:[#allocation4 + $0x78] sm:$0xff]  ;;  %v18810_v46 = vld [vmem:[#allocation4 + $0x80] sm:$0xff] }
 0x526   : > { %v7767_v45 = vmax.f32 %v7735_v60, 0.0  ;;  %v14708_v26 = vpop.f32.mrb[58].mxu1  ;;  %v18719_v23 = vld [vmem:[#allocation4 + $0x111] sm:$0xff] }
 0x527   : > { %7855 = vst.msk [vmem:[#allocation4 + $0x141] sm:$0xff] %vm4196_vm3, %v7768_v22  ;;  %v7738_v49 = vadd.f32 %v14708_v26, %v18579_v56  ;;  %v7643_v24 = vpop.f32.mrb[59].mxu1  ;;  %v18713_v39 = vld [vmem:[#allocation4 + $0x109] sm:$0xff]  ;;  %v18818_v22 = vld [vmem:[#allocation4 + $0x98] sm:$0xff] }
 0x528   : > { %7854 = vst.msk [vmem:[#allocation4 + $0x139] sm:$0xff] %vm4196_vm3, %v7767_v45  ;;  %v7737_v29 = vadd.f32 %v18579_v56, %v7643_v24  ;;  %14750 = vmatprep.mubr.msk.f32.mxu0 %vm4196_vm3, %v18713_v39  ;;  %v18814_v60 = vld [vmem:[#allocation4 + $0x90] sm:$0xff]  ;;  %v18822_v45 = vld [vmem:[#allocation4 + $0xa8] sm:$0xff] }
 0x529   : > { %v7770_v33 = vmax.f32 %v7738_v49, 0.0  ;;  %14751 = vmatmul.mubr.msk.f32.gmra.mrb[54].mxu0 %vm4196_vm3, %v18719_v23  ;;  %v18826_v26 = vld [vmem:[#allocation4 + $0xb0] sm:$0xff]  ;;  %v18830_v49 = vld [vmem:[#allocation4 + $0xc0] sm:$0xff]  ;;  %v18834_v24 = vld [vmem:[#allocation4 + $0xc8] sm:$0xff] }
 0x52a   : > { %v7769_v1 = vmax.f32 %v7737_v29, 0.0  ;;  %v14711_v40 = vpop.f32.mrb[60].mxu1  ;;  %v18731_v63 = vld [vmem:[#allocation4 + $0x129] sm:$0xff]  ;;  %v18838_v29 = vld [vmem:[#allocation4 + $0xd8] sm:$0xff] }
 0x52b   : > { %7857 = vst.msk [vmem:[#allocation4 + $0x159] sm:$0xff] %vm4196_vm3, %v7770_v33  ;;  %v7740_v13 = vadd.f32 %v14711_v40, %v18579_v56  ;;  %v7653_v7 = vpop.f32.mrb[61].mxu1  ;;  %v18725_v2 = vld [vmem:[#allocation4 + $0x121] sm:$0xff]  ;;  %v18850_v40 = vld [vmem:[#allocation4 + $0xf8] sm:$0xff] }
 0x52c   : > { %7856 = vst.msk [vmem:[#allocation4 + $0x151] sm:$0xff] %vm4196_vm3, %v7769_v1  ;;  %v7739_v57 = vadd.f32 %v18579_v56, %v7653_v7  ;;  %14753 = vmatprep.mubr.msk.f32.mxu0 %vm4196_vm3, %v18725_v2  ;;  %v18842_v33 = vld [vmem:[#allocation4 + $0xe0] sm:$0xff]  ;;  %v18846_v1 = vld [vmem:[#allocation4 + $0xf0] sm:$0xff] }
 0x52d   : > { %v7772_v61 = vmax.f32 %v7740_v13, 0.0  ;;  %14754 = vmatmul.mubr.msk.f32.gmra.mrb[56].mxu0 %vm4196_vm3, %v18731_v63  ;;  %v18854_v13 = vld [vmem:[#allocation4 + $0x108] sm:$0xff]  ;;  %v18858_v7 = vld [vmem:[#allocation4 + $0x110] sm:$0xff] }
 0x52e   : > { %v7771_v54 = vmax.f32 %v7739_v57, 0.0  ;;  %v14714_v16 = vpop.f32.mrb[62].mxu1  ;;  %v18743_v53 = vld [vmem:[#allocation4 + $0x141] sm:$0xff] }
 0x52f   : > { %7859 = vst.msk [vmem:[#allocation4 + $0x171] sm:$0xff] %vm4196_vm3, %v7772_v61  ;;  %v7742_v36 = vadd.f32 %v14714_v16, %v18579_v56  ;;  %v7663_v5 = vpop.f32.mrb[63].mxu1  ;;  %v18737_v59 = vld [vmem:[#allocation4 + $0x139] sm:$0xff]  ;;  %v18866_v61 = vld [vmem:[#allocation4 + $0x128] sm:$0xff] }
 0x530   : > { %7858 = vst.msk [vmem:[#allocation4 + $0x169] sm:$0xff] %vm4196_vm3, %v7771_v54  ;;  %v7741_v18 = vadd.f32 %v18579_v56, %v7663_v5  ;;  %14756 = vmatprep.mubr.msk.f32.mxu0 %vm4196_vm3, %v18737_v59  ;;  %v18862_v57 = vld [vmem:[#allocation4 + $0x120] sm:$0xff]  ;;  %v18870_v54 = vld [vmem:[#allocation4 + $0x138] sm:$0xff] }
 0x531   : > { %v7774_v10 = vmax.f32 %v7742_v36, 0.0  ;;  %14757 = vmatmul.mubr.msk.f32.gmra.mrb[58].mxu0 %vm4196_vm3, %v18743_v53  ;;  %v18874_v16 = vld [vmem:[#allocation4 + $0x140] sm:$0xff] }
 0x532   : > { %v7773_v42 = vmax.f32 %v7741_v18, 0.0  ;;  %v18753_v56 = vld [vmem:[#allocation4 + $0x159] sm:$0xff] }
 0x533   : > { %7861 = vst.msk [vmem:[#allocation4 + $0x189] sm:$0xff] %vm4196_vm3, %v7774_v10  ;;  %v18748_v34 = vld [vmem:[#allocation4 + $0x151] sm:$0xff]  ;;  %v8571_v10 = vld [vmem:[#allocation4 + $0x2] sm:$0xff] }
 0x534   : > { %7860 = vst.msk [vmem:[#allocation4 + $0x181] sm:$0xff] %vm4196_vm3, %v7773_v42  ;;  %14759 = vmatprep.mubr.msk.f32.mxu0 %vm4196_vm3, %v18748_v34  ;;  %v18878_v36 = vld [vmem:[#allocation4 + $0x150] sm:$0xff]  ;;  %v18882_v5 = vld [vmem:[#allocation4 + $0x158] sm:$0xff] }
 0x535   : > { %14760 = vmatmul.mubr.msk.f32.gmra.mrb[60].mxu0 %vm4196_vm3, %v18753_v56 }
 0x536   : > { %v18761_v47 = vld [vmem:[#allocation4 + $0x171] sm:$0xff] }
 0x537   : > { %v18757_v3 = vld [vmem:[#allocation4 + $0x169] sm:$0xff]  ;;  %19981 = vst [vmem:[#allocation38_spill] sm:$0xff] %v18761_v47 }
 0x538   : > { %19980 = vst [vmem:[#allocation37_spill] sm:$0xff] %v18757_v3  ;;  %14762 = vmatprep.mubr.msk.f32.mxu0 %vm4196_vm3, %v18757_v3  ;;  %v18886_v18 = vld [vmem:[#allocation4 + $0x168] sm:$0xff]  ;;  %v18890_v42 = vld [vmem:[#allocation4 + $0x170] sm:$0xff] }
 0x539   : > { %14763 = vmatmul.mubr.msk.f32.gmra.mrb[62].mxu0 %vm4196_vm3, %v18761_v47  ;;  %v18901_v47 = vld [vmem:[#allocation4 + $0x1a] sm:$0xff]  ;;  %v18907_v3 = vld [vmem:[#allocation4 + $0x22] sm:$0xff] }
 0x53a   : > { %14767 = vmatprep.mubr.msk.f32.mxu0 %vm4196_vm3, %v7862_v43  ;;  %v8572_v43 = vld [vmem:[#allocation4 + $0xa] sm:$0xff]  ;;  %19982 = vst [vmem:[#allocation39_spill] sm:$0xff] %v18901_v47  ;;  %19983 = vst [vmem:[#allocation42_spill] sm:$0xff] %v18907_v3 }
 0x53d   : > { %14768 = vmatmul.mubr.msk.f32.vlgmr.msra.gmra.mrb[32].mxu0 %vm4196_vm3, %v7863_v14  ;;  %v18898_v14 = vld [vmem:[%s19669_s7 + $0x20] sm:$0xff] }
 0x53e   : > { %14816 = vmatpush3.msra.mxu0 %v18573_v31  ;;  %14770 = vmatprep.mubr.msk.f32.mxu0 %vm4196_vm3, %v18772_v62  ;;  %v18790_v31 = vld [vmem:[#allocation4 + $0x48] sm:$0xff] }
 0x53f   : > { %14865 = vmatprep.subr.mxu0 %v18769_v37 }
 0x541   : > { %14771 = vmatmul.mubr.msk.f32.gmra.mrb[34].mxu0 %vm4196_vm3, %v18778_v9 }
 0x542   : > { %14773 = vmatprep.mubr.msk.f32.mxu0 %vm4196_vm3, %v18782_v4 }
 0x545   : > { %14774 = vmatmul.mubr.msk.f32.gmra.mrb[36].mxu0 %vm4196_vm3, %v18786_v32 }
 0x546   : > { %14776 = vmatprep.mubr.msk.f32.mxu0 %vm4196_vm3, %v18790_v31 }
 0x549   : > { %14777 = vmatmul.mubr.msk.f32.gmra.mrb[38].mxu0 %vm4196_vm3, %v18794_v15 }
 0x54a   : > { %14779 = vmatprep.mubr.msk.f32.mxu0 %vm4196_vm3, %v18798_v19 }
 0x54d   : > { %14780 = vmatmul.mubr.msk.f32.gmra.mrb[40].mxu0 %vm4196_vm3, %v18802_v38 }
 0x54e   : > { %14782 = vmatprep.mubr.msk.f32.mxu0 %vm4196_vm3, %v18806_v44 }
 0x551   : > { %14783 = vmatmul.mubr.msk.f32.gmra.mrb[42].mxu0 %vm4196_vm3, %v18810_v46 }
 0x552   : > { %14785 = vmatprep.mubr.msk.f32.mxu0 %vm4196_vm3, %v18814_v60 }
 0x555   : > { %14786 = vmatmul.mubr.msk.f32.gmra.mrb[44].mxu0 %vm4196_vm3, %v18818_v22 }
 0x556   : > { %14788 = vmatprep.mubr.msk.f32.mxu0 %vm4196_vm3, %v18822_v45 }
 0x559   : > { %14789 = vmatmul.mubr.msk.f32.gmra.mrb[46].mxu0 %vm4196_vm3, %v18826_v26 }
 0x55a   : > { %14791 = vmatprep.mubr.msk.f32.mxu0 %vm4196_vm3, %v18830_v49 }
 0x55d   : > { %14792 = vmatmul.mubr.msk.f32.gmra.mrb[48].mxu0 %vm4196_vm3, %v18834_v24 }
 0x55e   : > { %14794 = vmatprep.mubr.msk.f32.mxu0 %vm4196_vm3, %v18838_v29 }
 0x561   : > { %14795 = vmatmul.mubr.msk.f32.gmra.mrb[50].mxu0 %vm4196_vm3, %v18842_v33 }
 0x562   : > { %14797 = vmatprep.mubr.msk.f32.mxu0 %vm4196_vm3, %v18846_v1 }
 0x565   : > { %14798 = vmatmul.mubr.msk.f32.gmra.mrb[52].mxu0 %vm4196_vm3, %v18850_v40 }
 0x566   : > { %14800 = vmatprep.mubr.msk.f32.mxu0 %vm4196_vm3, %v18854_v13 }
 0x569   : > { %14801 = vmatmul.mubr.msk.f32.gmra.mrb[54].mxu0 %vm4196_vm3, %v18858_v7 }
 0x56a   : > { %14803 = vmatprep.mubr.msk.f32.mxu0 %vm4196_vm3, %v18862_v57 }
 0x56d   : > { %14804 = vmatmul.mubr.msk.f32.gmra.mrb[56].mxu0 %vm4196_vm3, %v18866_v61 }
 0x56e   : > { %14806 = vmatprep.mubr.msk.f32.mxu0 %vm4196_vm3, %v18870_v54 }
 0x571   : > { %14807 = vmatmul.mubr.msk.f32.gmra.mrb[58].mxu0 %vm4196_vm3, %v18874_v16 }
 0x572   : > { %14809 = vmatprep.mubr.msk.f32.mxu0 %vm4196_vm3, %v18878_v36 }
 0x575   : > { %14810 = vmatmul.mubr.msk.f32.gmra.mrb[60].mxu0 %vm4196_vm3, %v18882_v5 }
 0x576   : > { %14812 = vmatprep.mubr.msk.f32.mxu0 %vm4196_vm3, %v18886_v18 }
 0x579   : > { %14813 = vmatmul.mubr.msk.f32.gmra.mrb[62].mxu0 %vm4196_vm3, %v18890_v42 }
 0x57a   : > { %14817 = vmatprep.mubr.msk.f32.mxu0 %vm4196_vm3, %v8571_v10  ;;  %v18911_v10 = vld [vmem:[#allocation4 + $0x32] sm:$0xff] }
 0x57b   : > { %19984 = vst [vmem:[#allocation43_spill] sm:$0xff] %v18911_v10 }
 0x57d   : > { %14818 = vmatmul.mubr.msk.f32.vlgmr.msra.gmra.mrb[32].mxu0 %vm4196_vm3, %v8572_v43  ;;  %v18915_v43 = vld [vmem:[#allocation4 + $0x3a] sm:$0xff] }
 0x57e   : > { %14866 = vmatpush3.msra.mxu0 %v18769_v37  ;;  %14820 = vmatprep.mubr.msk.f32.mxu0 %vm4196_vm3, %v18901_v47  ;;  %19985 = vst [vmem:[#allocation44_spill] sm:$0xff] %v18915_v43  ;;  %v18919_v37 = vld [vmem:[#allocation4 + $0x4a] sm:$0xff]  ;;  %v18923_v47 = vld [vmem:[#allocation4 + $0x52] sm:$0xff] }
 0x57f   : > { %14915 = vmatprep.subr.mxu0 %v18898_v14  ;;  %19986 = vst [vmem:[#allocation40_spill] sm:$0xff] %v18919_v37  ;;  %19987 = vst [vmem:[#allocation41_spill] sm:$0xff] %v18923_v47 }
 0x581   : > { %14821 = vmatmul.mubr.msk.f32.gmra.mrb[34].mxu0 %vm4196_vm3, %v18907_v3  ;;  %v18927_v3 = vld [vmem:[#allocation4 + $0x62] sm:$0xff] }
 0x582   : > { %14823 = vmatprep.mubr.msk.f32.mxu0 %vm4196_vm3, %v18911_v10  ;;  %19988 = vst [vmem:[#allocation10_spill] sm:$0xff] %v18927_v3  ;;  %v18931_v10 = vld [vmem:[#allocation4 + $0x6a] sm:$0xff] }
 0x583   : > { %19989 = vst [vmem:[#allocation11_spill] sm:$0xff] %v18931_v10 }
 0x585   : > { %14824 = vmatmul.mubr.msk.f32.gmra.mrb[36].mxu0 %vm4196_vm3, %v18915_v43  ;;  %v18935_v43 = vld [vmem:[#allocation4 + $0x7a] sm:$0xff] }
 0x586   : > { %14826 = vmatprep.mubr.msk.f32.mxu0 %vm4196_vm3, %v18919_v37  ;;  %19990 = vst [vmem:[#allocation12_spill] sm:$0xff] %v18935_v43  ;;  %v18939_v37 = vld [vmem:[#allocation4 + $0x82] sm:$0xff] }
 0x587   : > { %19991 = vst [vmem:[#allocation13_spill] sm:$0xff] %v18939_v37 }
 0x589   : > { %14827 = vmatmul.mubr.msk.f32.gmra.mrb[38].mxu0 %vm4196_vm3, %v18923_v47  ;;  %v18943_v47 = vld [vmem:[#allocation4 + $0x92] sm:$0xff] }
 0x58a   : > { %14829 = vmatprep.mubr.msk.f32.mxu0 %vm4196_vm3, %v18927_v3  ;;  %19992 = vst [vmem:[#allocation27_spill] sm:$0xff] %v18943_v47  ;;  %v18947_v3 = vld [vmem:[#allocation4 + $0x9a] sm:$0xff] }
 0x58b   : > { %19993 = vst [vmem:[#allocation29_spill] sm:$0xff] %v18947_v3 }
 0x58d   : > { %14830 = vmatmul.mubr.msk.f32.gmra.mrb[40].mxu0 %vm4196_vm3, %v18931_v10  ;;  %v18951_v10 = vld [vmem:[#allocation4 + $0xaa] sm:$0xff] }
 0x58e   : > { %14832 = vmatprep.mubr.msk.f32.mxu0 %vm4196_vm3, %v18935_v43  ;;  %19994 = vst [vmem:[#allocation30_spill] sm:$0xff] %v18951_v10  ;;  %v18955_v43 = vld [vmem:[#allocation4 + $0xb2] sm:$0xff] }
 0x58f   : > { %19995 = vst [vmem:[#allocation31_spill] sm:$0xff] %v18955_v43 }
 0x591   : > { %14833 = vmatmul.mubr.msk.f32.gmra.mrb[42].mxu0 %vm4196_vm3, %v18939_v37  ;;  %v18959_v37 = vld [vmem:[#allocation4 + $0xc2] sm:$0xff] }
 0x592   : > { %14835 = vmatprep.mubr.msk.f32.mxu0 %vm4196_vm3, %v18943_v47  ;;  %19996 = vst [vmem:[#allocation33_spill] sm:$0xff] %v18959_v37  ;;  %v18963_v47 = vld [vmem:[#allocation4 + $0xca] sm:$0xff] }
 0x593   : > { %19997 = vst [vmem:[#allocation35_spill] sm:$0xff] %v18963_v47 }
 0x595   : > { %14836 = vmatmul.mubr.msk.f32.gmra.mrb[44].mxu0 %vm4196_vm3, %v18947_v3  ;;  %v18967_v3 = vld [vmem:[#allocation4 + $0xda] sm:$0xff] }
 0x596   : > { %14838 = vmatprep.mubr.msk.f32.mxu0 %vm4196_vm3, %v18951_v10  ;;  %19998 = vst [vmem:[#allocation14_spill] sm:$0xff] %v18967_v3  ;;  %v18971_v10 = vld [vmem:[#allocation4 + $0xe2] sm:$0xff] }
 0x597   : > { %19999 = vst [vmem:[#allocation15_spill] sm:$0xff] %v18971_v10 }
 0x599   : > { %14839 = vmatmul.mubr.msk.f32.gmra.mrb[46].mxu0 %vm4196_vm3, %v18955_v43  ;;  %v18975_v43 = vld [vmem:[#allocation4 + $0xf2] sm:$0xff] }
 0x59a   : > { %14841 = vmatprep.mubr.msk.f32.mxu0 %vm4196_vm3, %v18959_v37  ;;  %20000 = vst [vmem:[#allocation16_spill] sm:$0xff] %v18975_v43  ;;  %v18979_v37 = vld [vmem:[#allocation4 + $0xfa] sm:$0xff] }
 0x59b   : > { %20001 = vst [vmem:[#allocation17_spill] sm:$0xff] %v18979_v37 }
 0x59d   : > { %14842 = vmatmul.mubr.msk.f32.gmra.mrb[48].mxu0 %vm4196_vm3, %v18963_v47  ;;  %v18983_v47 = vld [vmem:[#allocation4 + $0x10a] sm:$0xff] }
 0x59e   : > { %14844 = vmatprep.mubr.msk.f32.mxu0 %vm4196_vm3, %v18967_v3  ;;  %20002 = vst [vmem:[#allocation18_spill] sm:$0xff] %v18983_v47  ;;  %v18987_v3 = vld [vmem:[#allocation4 + $0x112] sm:$0xff] }
 0x59f   : > { %20003 = vst [vmem:[#allocation19_spill] sm:$0xff] %v18987_v3 }
 0x5a1   : > { %14845 = vmatmul.mubr.msk.f32.gmra.mrb[50].mxu0 %vm4196_vm3, %v18971_v10  ;;  %v18991_v10 = vld [vmem:[#allocation4 + $0x122] sm:$0xff] }
 0x5a2   : > { %14847 = vmatprep.mubr.msk.f32.mxu0 %vm4196_vm3, %v18975_v43  ;;  %20004 = vst [vmem:[#allocation20_spill] sm:$0xff] %v18991_v10  ;;  %v18995_v43 = vld [vmem:[#allocation4 + $0x12a] sm:$0xff] }
 0x5a3   : > { %20005 = vst [vmem:[#allocation21_spill] sm:$0xff] %v18995_v43 }
 0x5a5   : > { %14848 = vmatmul.mubr.msk.f32.gmra.mrb[52].mxu0 %vm4196_vm3, %v18979_v37  ;;  %v18999_v37 = vld [vmem:[#allocation4 + $0x13a] sm:$0xff] }
 0x5a6   : > { %14850 = vmatprep.mubr.msk.f32.mxu0 %vm4196_vm3, %v18983_v47  ;;  %20006 = vst [vmem:[#allocation22_spill] sm:$0xff] %v18999_v37  ;;  %v19003_v47 = vld [vmem:[#allocation4 + $0x142] sm:$0xff] }
 0x5a9   : > { %14851 = vmatmul.mubr.msk.f32.gmra.mrb[54].mxu0 %vm4196_vm3, %v18987_v3  ;;  %v19007_v3 = vld [vmem:[#allocation4 + $0x152] sm:$0xff] }
 0x5aa   : > { %14853 = vmatprep.mubr.msk.f32.mxu0 %vm4196_vm3, %v18991_v10  ;;  %20007 = vst [vmem:[#allocation23_spill] sm:$0xff] %v19007_v3  ;;  %v19011_v10 = vld [vmem:[#allocation4 + $0x15a] sm:$0xff] }
 0x5ad   : > { %14854 = vmatmul.mubr.msk.f32.gmra.mrb[56].mxu0 %vm4196_vm3, %v18995_v43  ;;  %v19015_v43 = vld [vmem:[#allocation4 + $0x16a] sm:$0xff] }
 0x5ae   : > { %14856 = vmatprep.mubr.msk.f32.mxu0 %vm4196_vm3, %v18999_v37  ;;  %20008 = vst [vmem:[#allocation24_spill] sm:$0xff] %v19015_v43  ;;  %v19019_v37 = vld [vmem:[#allocation4 + $0x172] sm:$0xff] }
 0x5b1   : > { %14857 = vmatmul.mubr.msk.f32.gmra.mrb[58].mxu0 %vm4196_vm3, %v19003_v47 }
 0x5b2   : > { %14859 = vmatprep.mubr.msk.f32.mxu0 %vm4196_vm3, %v19007_v3  ;;  %v12647_v3 = vld [vmem:[%s19669_s7 + $0x28] sm:$0xff] }
 0x5b5   : > { %14860 = vmatmul.mubr.msk.f32.gmra.mrb[60].mxu0 %vm4196_vm3, %v19011_v10 }
 0x5b6   : > { %14862 = vmatprep.mubr.msk.f32.mxu0 %vm4196_vm3, %v19015_v43 }
 0x5b9   : > { %14863 = vmatmul.mubr.msk.f32.gmra.mrb[62].mxu0 %vm4196_vm3, %v19019_v37 }
 0x5ba   : > { %14867 = vmatprep.mubr.msk.f32.mxu0 %vm4196_vm3, %v18772_v62  ;;  %v19087_v62 = vld [vmem:[#allocation4 + $0x180] sm:$0xff] }
 0x5bd   : > { %14868 = vmatmul.mubr.msk.f32.vlgmr.msra.gmra.mrb[32].mxu0 %vm4196_vm3, %v18778_v9  ;;  %v19091_v9 = vld [vmem:[#allocation4 + $0x188] sm:$0xff] }
 0x5be   : > { %14916 = vmatpush3.msra.mxu0 %v18898_v14  ;;  %14870 = vmatprep.mubr.msk.f32.mxu0 %vm4196_vm3, %v18782_v4  ;;  %v12680_v14 = vld [vmem:[%s19669_s7 + $0x30] sm:$0xff] }
 0x5bf   : > { %14965 = vmatprep.subr.mxu0 %v12647_v3 }
 0x5c1   : > { %14871 = vmatmul.mubr.msk.f32.gmra.mrb[34].mxu0 %vm4196_vm3, %v18786_v32 }
 0x5c2   : > { %14873 = vmatprep.mubr.msk.f32.mxu0 %vm4196_vm3, %v18790_v31 }
 0x5c5   : > { %14874 = vmatmul.mubr.msk.f32.gmra.mrb[36].mxu0 %vm4196_vm3, %v18794_v15 }
 0x5c6   : > { %14876 = vmatprep.mubr.msk.f32.mxu0 %vm4196_vm3, %v18798_v19 }
 0x5c9   : > { %14877 = vmatmul.mubr.msk.f32.gmra.mrb[38].mxu0 %vm4196_vm3, %v18802_v38 }
 0x5ca   : > { %14879 = vmatprep.mubr.msk.f32.mxu0 %vm4196_vm3, %v18806_v44 }
 0x5cd   : > { %14880 = vmatmul.mubr.msk.f32.gmra.mrb[40].mxu0 %vm4196_vm3, %v18810_v46 }
 0x5ce   : > { %14882 = vmatprep.mubr.msk.f32.mxu0 %vm4196_vm3, %v18814_v60 }
 0x5d1   : > { %14883 = vmatmul.mubr.msk.f32.gmra.mrb[42].mxu0 %vm4196_vm3, %v18818_v22 }
 0x5d2   : > { %14885 = vmatprep.mubr.msk.f32.mxu0 %vm4196_vm3, %v18822_v45 }
 0x5d5   : > { %14886 = vmatmul.mubr.msk.f32.gmra.mrb[44].mxu0 %vm4196_vm3, %v18826_v26 }
 0x5d6   : > { %14888 = vmatprep.mubr.msk.f32.mxu0 %vm4196_vm3, %v18830_v49 }
 0x5d9   : > { %14889 = vmatmul.mubr.msk.f32.gmra.mrb[46].mxu0 %vm4196_vm3, %v18834_v24 }
 0x5da   : > { %14891 = vmatprep.mubr.msk.f32.mxu0 %vm4196_vm3, %v18838_v29 }
 0x5dd   : > { %14892 = vmatmul.mubr.msk.f32.gmra.mrb[48].mxu0 %vm4196_vm3, %v18842_v33 }
 0x5de   : > { %14894 = vmatprep.mubr.msk.f32.mxu0 %vm4196_vm3, %v18846_v1 }
 0x5e1   : > { %14895 = vmatmul.mubr.msk.f32.gmra.mrb[50].mxu0 %vm4196_vm3, %v18850_v40 }
 0x5e2   : > { %14897 = vmatprep.mubr.msk.f32.mxu0 %vm4196_vm3, %v18854_v13 }
 0x5e5   : > { %14898 = vmatmul.mubr.msk.f32.gmra.mrb[52].mxu0 %vm4196_vm3, %v18858_v7 }
 0x5e6   : > { %14900 = vmatprep.mubr.msk.f32.mxu0 %vm4196_vm3, %v18862_v57 }
 0x5e9   : > { %14901 = vmatmul.mubr.msk.f32.gmra.mrb[54].mxu0 %vm4196_vm3, %v18866_v61 }
 0x5ea   : > { %14903 = vmatprep.mubr.msk.f32.mxu0 %vm4196_vm3, %v18870_v54 }
 0x5ed   : > { %14904 = vmatmul.mubr.msk.f32.gmra.mrb[56].mxu0 %vm4196_vm3, %v18874_v16 }
 0x5ee   : > { %14906 = vmatprep.mubr.msk.f32.mxu0 %vm4196_vm3, %v18878_v36 }
 0x5f1   : > { %14907 = vmatmul.mubr.msk.f32.gmra.mrb[58].mxu0 %vm4196_vm3, %v18882_v5 }
 0x5f2   : > { %14909 = vmatprep.mubr.msk.f32.mxu0 %vm4196_vm3, %v18886_v18 }
 0x5f5   : > { %14910 = vmatmul.mubr.msk.f32.gmra.mrb[60].mxu0 %vm4196_vm3, %v18890_v42 }
 0x5f6   : > { %14912 = vmatprep.mubr.msk.f32.mxu0 %vm4196_vm3, %v19087_v62 }
 0x5f9   : > { %14913 = vmatmul.mubr.msk.f32.gmra.mrb[62].mxu0 %vm4196_vm3, %v19091_v9 }
 0x5fa   : > { %14917 = vmatprep.mubr.msk.f32.mxu0 %vm4196_vm3, %v18593_v51  ;;  %v20009_v51 = vld [vmem:[#allocation37_spill] sm:$0xff] }
 0x5fd   : > { %14918 = vmatmul.mubr.msk.f32.vlgmr.msra.gmra.mrb[32].mxu0 %vm4196_vm3, %v18599_v52  ;;  %v20010_v52 = vld [vmem:[#allocation38_spill] sm:$0xff] }
 0x5fe   : > { %14966 = vmatpush3.msra.mxu0 %v12647_v3  ;;  %14920 = vmatprep.mubr.msk.f32.mxu0 %vm4196_vm3, %v18605_v28  ;;  %v19158_v28 = vld [vmem:[#allocation4 + $0x181] sm:$0xff]  ;;  %v20018_v3 = vld [vmem:[#allocation11_spill] sm:$0xff] }
 0x5ff   : > { %15015 = vmatprep.subr.mxu0 %v12680_v14 }
 0x601   : > { %14921 = vmatmul.mubr.msk.f32.gmra.mrb[34].mxu0 %vm4196_vm3, %v18611_v30  ;;  %v19162_v30 = vld [vmem:[#allocation4 + $0x189] sm:$0xff] }
 0x602   : > { %14923 = vmatprep.mubr.msk.f32.mxu0 %vm4196_vm3, %v18617_v17  ;;  %v20011_v17 = vld [vmem:[#allocation39_spill] sm:$0xff] }
 0x605   : > { %14924 = vmatmul.mubr.msk.f32.gmra.mrb[36].mxu0 %vm4196_vm3, %v18623_v41  ;;  %v12713_v41 = vld [vmem:[%s19669_s7 + $0x38] sm:$0xff] }
 0x606   : > { %14926 = vmatprep.mubr.msk.f32.mxu0 %vm4196_vm3, %v18629_v35  ;;  %v20012_v35 = vld [vmem:[#allocation42_spill] sm:$0xff] }
 0x609   : > { %14927 = vmatmul.mubr.msk.f32.gmra.mrb[38].mxu0 %vm4196_vm3, %v18635_v21  ;;  %v20013_v21 = vld [vmem:[#allocation43_spill] sm:$0xff] }
 0x60a   : > { %14929 = vmatprep.mubr.msk.f32.mxu0 %vm4196_vm3, %v18641_v27  ;;  %v20014_v27 = vld [vmem:[#allocation44_spill] sm:$0xff] }
 0x60d   : > { %14930 = vmatmul.mubr.msk.f32.gmra.mrb[40].mxu0 %vm4196_vm3, %v18647_v11  ;;  %v20015_v11 = vld [vmem:[#allocation40_spill] sm:$0xff] }
 0x60e   : > { %14932 = vmatprep.mubr.msk.f32.mxu0 %vm4196_vm3, %v18653_v58  ;;  %v20016_v58 = vld [vmem:[#allocation41_spill] sm:$0xff] }
 0x611   : > { %14933 = vmatmul.mubr.msk.f32.gmra.mrb[42].mxu0 %vm4196_vm3, %v18659_v6  ;;  %v20017_v6 = vld [vmem:[#allocation10_spill] sm:$0xff] }
 0x612   : > { %14935 = vmatprep.mubr.msk.f32.mxu0 %vm4196_vm3, %v18665_v50 }
 0x615   : > { %14936 = vmatmul.mubr.msk.f32.gmra.mrb[44].mxu0 %vm4196_vm3, %v18671_v0 }
 0x616   : > { %14938 = vmatprep.mubr.msk.f32.mxu0 %vm4196_vm3, %v18677_v55 }
 0x619   : > { %14939 = vmatmul.mubr.msk.f32.gmra.mrb[46].mxu0 %vm4196_vm3, %v18683_v25 }
 0x61a   : > { %14941 = vmatprep.mubr.msk.f32.mxu0 %vm4196_vm3, %v18689_v8 }
 0x61d   : > { %14942 = vmatmul.mubr.msk.f32.gmra.mrb[48].mxu0 %vm4196_vm3, %v18695_v12 }
 0x61e   : > { %14944 = vmatprep.mubr.msk.f32.mxu0 %vm4196_vm3, %v18701_v48 }
 0x621   : > { %14945 = vmatmul.mubr.msk.f32.gmra.mrb[50].mxu0 %vm4196_vm3, %v18707_v20 }
 0x622   : > { %14947 = vmatprep.mubr.msk.f32.mxu0 %vm4196_vm3, %v18713_v39 }
 0x625   : > { %14948 = vmatmul.mubr.msk.f32.gmra.mrb[52].mxu0 %vm4196_vm3, %v18719_v23 }
 0x626   : > { %14950 = vmatprep.mubr.msk.f32.mxu0 %vm4196_vm3, %v18725_v2 }
 0x629   : > { %14951 = vmatmul.mubr.msk.f32.gmra.mrb[54].mxu0 %vm4196_vm3, %v18731_v63 }
 0x62a   : > { %14953 = vmatprep.mubr.msk.f32.mxu0 %vm4196_vm3, %v18737_v59 }
 0x62d   : > { %14954 = vmatmul.mubr.msk.f32.gmra.mrb[56].mxu0 %vm4196_vm3, %v18743_v53 }
 0x62e   : > { %14956 = vmatprep.mubr.msk.f32.mxu0 %vm4196_vm3, %v18748_v34 }
 0x631   : > { %14957 = vmatmul.mubr.msk.f32.gmra.mrb[58].mxu0 %vm4196_vm3, %v18753_v56 }
 0x632   : > { %14959 = vmatprep.mubr.msk.f32.mxu0 %vm4196_vm3, %v20009_v51 }
 0x635   : > { %14960 = vmatmul.mubr.msk.f32.gmra.mrb[60].mxu0 %vm4196_vm3, %v20010_v52 }
 0x636   : > { %14962 = vmatprep.mubr.msk.f32.mxu0 %vm4196_vm3, %v19158_v28 }
 0x639   : > { %14963 = vmatmul.mubr.msk.f32.gmra.mrb[62].mxu0 %vm4196_vm3, %v19162_v30 }
 0x63a   : > { %14967 = vmatprep.mubr.msk.f32.mxu0 %vm4196_vm3, %v20011_v17  ;;  %v20020_v17 = vld [vmem:[#allocation13_spill] sm:$0xff] }
 0x63d   : > { %14968 = vmatmul.mubr.msk.f32.vlgmr.msra.gmra.mrb[32].mxu0 %vm4196_vm3, %v20012_v35  ;;  %v20021_v35 = vld [vmem:[#allocation27_spill] sm:$0xff] }
 0x63e   : > { %15016 = vmatpush3.msra.mxu0 %v12680_v14  ;;  %14970 = vmatprep.mubr.msk.f32.mxu0 %vm4196_vm3, %v20013_v21  ;;  %v20019_v14 = vld [vmem:[#allocation12_spill] sm:$0xff] }
 0x63f   : > { %15065 = vmatprep.subr.mxu0 %v12713_v41 }
 0x641   : > { %14971 = vmatmul.mubr.msk.f32.gmra.mrb[34].mxu0 %vm4196_vm3, %v20014_v27  ;;  %v20022_v27 = vld [vmem:[#allocation29_spill] sm:$0xff] }
 0x642   : > { %14973 = vmatprep.mubr.msk.f32.mxu0 %vm4196_vm3, %v20015_v11  ;;  %v20023_v11 = vld [vmem:[#allocation30_spill] sm:$0xff] }
 0x645   : > { %14974 = vmatmul.mubr.msk.f32.gmra.mrb[36].mxu0 %vm4196_vm3, %v20016_v58  ;;  %v20024_v58 = vld [vmem:[#allocation31_spill] sm:$0xff] }
 0x646   : > { %14976 = vmatprep.mubr.msk.f32.mxu0 %vm4196_vm3, %v20017_v6  ;;  %v20025_v6 = vld [vmem:[#allocation33_spill] sm:$0xff] }
 0x649   : > { %14977 = vmatmul.mubr.msk.f32.gmra.mrb[38].mxu0 %vm4196_vm3, %v20018_v3  ;;  %v20026_v3 = vld [vmem:[#allocation35_spill] sm:$0xff] }
 0x64a   : > { %14979 = vmatprep.mubr.msk.f32.mxu0 %vm4196_vm3, %v20019_v14  ;;  %v20027_v14 = vld [vmem:[#allocation14_spill] sm:$0xff] }
 0x64d   : > { %14980 = vmatmul.mubr.msk.f32.gmra.mrb[40].mxu0 %vm4196_vm3, %v20020_v17  ;;  %v20028_v17 = vld [vmem:[#allocation15_spill] sm:$0xff] }
 0x64e   : > { %14982 = vmatprep.mubr.msk.f32.mxu0 %vm4196_vm3, %v20021_v35  ;;  %v20029_v35 = vld [vmem:[#allocation16_spill] sm:$0xff] }
 0x651   : > { %14983 = vmatmul.mubr.msk.f32.gmra.mrb[42].mxu0 %vm4196_vm3, %v20022_v27  ;;  %v20030_v27 = vld [vmem:[#allocation17_spill] sm:$0xff] }
 0x652   : > { %14985 = vmatprep.mubr.msk.f32.mxu0 %vm4196_vm3, %v20023_v11  ;;  %v20031_v11 = vld [vmem:[#allocation18_spill] sm:$0xff] }
 0x655   : > { %14986 = vmatmul.mubr.msk.f32.gmra.mrb[44].mxu0 %vm4196_vm3, %v20024_v58  ;;  %v20032_v58 = vld [vmem:[#allocation19_spill] sm:$0xff] }
 0x656   : > { %14988 = vmatprep.mubr.msk.f32.mxu0 %vm4196_vm3, %v20025_v6  ;;  %v20033_v6 = vld [vmem:[#allocation20_spill] sm:$0xff] }
 0x659   : > { %14989 = vmatmul.mubr.msk.f32.gmra.mrb[46].mxu0 %vm4196_vm3, %v20026_v3  ;;  %v20034_v3 = vld [vmem:[#allocation21_spill] sm:$0xff] }
 0x65a   : > { %14991 = vmatprep.mubr.msk.f32.mxu0 %vm4196_vm3, %v20027_v14  ;;  %v20035_v14 = vld [vmem:[#allocation22_spill] sm:$0xff] }
 0x65d   : > { %14992 = vmatmul.mubr.msk.f32.gmra.mrb[48].mxu0 %vm4196_vm3, %v20028_v17 }
 0x65e   : > { %14994 = vmatprep.mubr.msk.f32.mxu0 %vm4196_vm3, %v20029_v35  ;;  %v20036_v35 = vld [vmem:[#allocation23_spill] sm:$0xff] }
 0x661   : > { %14995 = vmatmul.mubr.msk.f32.gmra.mrb[50].mxu0 %vm4196_vm3, %v20030_v27 }
 0x662   : > { %14997 = vmatprep.mubr.msk.f32.mxu0 %vm4196_vm3, %v20031_v11 }
 0x665   : > { %14998 = vmatmul.mubr.msk.f32.gmra.mrb[52].mxu0 %vm4196_vm3, %v20032_v58 }
 0x666   : > { %15000 = vmatprep.mubr.msk.f32.mxu0 %vm4196_vm3, %v20033_v6  ;;  %v19229_v6 = vld [vmem:[#allocation4 + $0x182] sm:$0xff] }
 0x669   : > { %15001 = vmatmul.mubr.msk.f32.gmra.mrb[54].mxu0 %vm4196_vm3, %v20034_v3 }
 0x66a   : > { %15003 = vmatprep.mubr.msk.f32.mxu0 %vm4196_vm3, %v20035_v14  ;;  %v19233_v14 = vld [vmem:[#allocation4 + $0x18a] sm:$0xff] }
 0x66d   : > { %15004 = vmatmul.mubr.msk.f32.gmra.mrb[56].mxu0 %vm4196_vm3, %v19003_v47 }
 0x66e   : > { %15006 = vmatprep.mubr.msk.f32.mxu0 %vm4196_vm3, %v20036_v35 }
 0x671   : > { %15007 = vmatmul.mubr.msk.f32.gmra.mrb[58].mxu0 %vm4196_vm3, %v19011_v10 }
 0x672   : > { %15009 = vmatprep.mubr.msk.f32.mxu0 %vm4196_vm3, %v19015_v43  ;;  %v12746_v43 = vld [vmem:[%s19669_s7 + $0x40] sm:$0xff] }
 0x675   : > { %15010 = vmatmul.mubr.msk.f32.gmra.mrb[60].mxu0 %vm4196_vm3, %v19019_v37 }
 0x676   : > { %15012 = vmatprep.mubr.msk.f32.mxu0 %vm4196_vm3, %v19229_v6 }
 0x679   : > { %15013 = vmatmul.mubr.msk.f32.gmra.mrb[62].mxu0 %vm4196_vm3, %v19233_v14 }
 0x67a   : > { %15017 = vmatprep.mubr.msk.f32.mxu0 %vm4196_vm3, %v18782_v4  ;;  %v10150_v4 = vld [vmem:[#allocation4 + $0x198] sm:$0xff] }
 0x67d   : > { %15018 = vmatmul.mubr.msk.f32.vlgmr.msra.gmra.mrb[32].mxu0 %vm4196_vm3, %v18786_v32  ;;  %v10151_v32 = vld [vmem:[#allocation4 + $0x1a0] sm:$0xff] }
 0x67e   : > { %15066 = vmatpush3.msra.mxu0 %v12713_v41  ;;  %15020 = vmatprep.mubr.msk.f32.mxu0 %vm4196_vm3, %v18790_v31  ;;  %v10507_v31 = vld [vmem:[#allocation4 + $0x31] sm:$0xff] }
 0x67f   : > { %15115 = vmatprep.subr.mxu0 %v12746_v43 }
 0x681   : > { %15021 = vmatmul.mubr.msk.f32.gmra.mrb[34].mxu0 %vm4196_vm3, %v18794_v15  ;;  %v10508_v15 = vld [vmem:[#allocation4 + $0x39] sm:$0xff] }
 0x682   : > { %15023 = vmatprep.mubr.msk.f32.mxu0 %vm4196_vm3, %v18798_v19  ;;  %v10509_v19 = vld [vmem:[#allocation4 + $0x49] sm:$0xff] }
 0x685   : > { %15024 = vmatmul.mubr.msk.f32.gmra.mrb[36].mxu0 %vm4196_vm3, %v18802_v38  ;;  %v10510_v38 = vld [vmem:[#allocation4 + $0x51] sm:$0xff] }
 0x686   : > { %15026 = vmatprep.mubr.msk.f32.mxu0 %vm4196_vm3, %v18806_v44  ;;  %v10511_v44 = vld [vmem:[#allocation4 + $0x61] sm:$0xff] }
 0x689   : > { %15027 = vmatmul.mubr.msk.f32.gmra.mrb[38].mxu0 %vm4196_vm3, %v18810_v46  ;;  %v10512_v46 = vld [vmem:[#allocation4 + $0x69] sm:$0xff] }
 0x68a   : > { %15029 = vmatprep.mubr.msk.f32.mxu0 %vm4196_vm3, %v18814_v60  ;;  %v10513_v60 = vld [vmem:[#allocation4 + $0x79] sm:$0xff] }
 0x68d   : > { %15030 = vmatmul.mubr.msk.f32.gmra.mrb[40].mxu0 %vm4196_vm3, %v18818_v22  ;;  %v10514_v22 = vld [vmem:[#allocation4 + $0x81] sm:$0xff] }
 0x68e   : > { %15032 = vmatprep.mubr.msk.f32.mxu0 %vm4196_vm3, %v18822_v45  ;;  %v10515_v45 = vld [vmem:[#allocation4 + $0x91] sm:$0xff] }
 0x691   : > { %15033 = vmatmul.mubr.msk.f32.gmra.mrb[42].mxu0 %vm4196_vm3, %v18826_v26  ;;  %v10516_v26 = vld [vmem:[#allocation4 + $0x99] sm:$0xff] }
 0x692   : > { %15035 = vmatprep.mubr.msk.f32.mxu0 %vm4196_vm3, %v18830_v49  ;;  %v20051_v49 = vld [vmem:[#allocation16_spill] sm:$0xff] }
 0x695   : > { %15036 = vmatmul.mubr.msk.f32.gmra.mrb[44].mxu0 %vm4196_vm3, %v18834_v24  ;;  %v20052_v24 = vld [vmem:[#allocation20_spill] sm:$0xff] }
 0x696   : > { %15038 = vmatprep.mubr.msk.f32.mxu0 %vm4196_vm3, %v18838_v29  ;;  %v20053_v29 = vld [vmem:[#allocation22_spill] sm:$0xff] }
 0x699   : > { %15039 = vmatmul.mubr.msk.f32.gmra.mrb[46].mxu0 %vm4196_vm3, %v18842_v33  ;;  %v20054_v33 = vld [vmem:[#allocation24_spill] sm:$0xff] }
 0x69a   : > { %15041 = vmatprep.mubr.msk.f32.mxu0 %vm4196_vm3, %v18846_v1  ;;  %v10924_v1 = vld [vmem:[#allocation4 + $0x19a] sm:$0xff] }
 0x69d   : > { %15042 = vmatmul.mubr.msk.f32.gmra.mrb[48].mxu0 %vm4196_vm3, %v18850_v40  ;;  %v19419_v40 = vld [vmem:[%s19670_s8] ss:$0 sm:$0xff] }
 0x69e   : > { %15044 = vmatprep.mubr.msk.f32.mxu0 %vm4196_vm3, %v18854_v13 }
 0x6a1   : > { %15045 = vmatmul.mubr.msk.f32.gmra.mrb[50].mxu0 %vm4196_vm3, %v18858_v7 }
 0x6a2   : > { %15047 = vmatprep.mubr.msk.f32.mxu0 %vm4196_vm3, %v18862_v57 }
 0x6a5   : > { %15048 = vmatmul.mubr.msk.f32.gmra.mrb[52].mxu0 %vm4196_vm3, %v18866_v61 }
 0x6a6   : > { %15050 = vmatprep.mubr.msk.f32.mxu0 %vm4196_vm3, %v18870_v54 }
 0x6a9   : > { %15051 = vmatmul.mubr.msk.f32.gmra.mrb[54].mxu0 %vm4196_vm3, %v18874_v16 }
 0x6aa   : > { %15053 = vmatprep.mubr.msk.f32.mxu0 %vm4196_vm3, %v18878_v36 }
 0x6ad   : > { %15054 = vmatmul.mubr.msk.f32.gmra.mrb[56].mxu0 %vm4196_vm3, %v18882_v5 }
 0x6ae   : > { %15056 = vmatprep.mubr.msk.f32.mxu0 %vm4196_vm3, %v18886_v18 }
 0x6b1   : > { %15057 = vmatmul.mubr.msk.f32.gmra.mrb[58].mxu0 %vm4196_vm3, %v18890_v42 }
 0x6b2   : > { %15059 = vmatprep.mubr.msk.f32.mxu0 %vm4196_vm3, %v19087_v62 }
 0x6b5   : > { %15060 = vmatmul.mubr.msk.f32.gmra.mrb[60].mxu0 %vm4196_vm3, %v19091_v9 }
 0x6b6   : > { %15062 = vmatprep.mubr.msk.f32.mxu0 %vm4196_vm3, %v10150_v4 }
 0x6b9   : > { %15063 = vmatmul.mubr.msk.f32.gmra.mrb[62].mxu0 %vm4196_vm3, %v10151_v32 }
 0x6ba   : > { %15067 = vmatprep.mubr.msk.f32.mxu0 %vm4196_vm3, %v10507_v31 }
 0x6bd   : > { %15068 = vmatmul.mubr.msk.f32.vlgmr.msra.gmra.mrb[32].mxu0 %vm4196_vm3, %v10508_v15 }
 0x6be   : > { %15116 = vmatpush3.msra.mxu0 %v12746_v43  ;;  %15070 = vmatprep.mubr.msk.f32.mxu0 %vm4196_vm3, %v10509_v19 }
 0x6c1   : > { %15071 = vmatmul.mubr.msk.f32.gmra.mrb[34].mxu0 %vm4196_vm3, %v10510_v38 }
 0x6c2   : > { %15073 = vmatprep.mubr.msk.f32.mxu0 %vm4196_vm3, %v10511_v44 }
 0x6c5   : > { %15074 = vmatmul.mubr.msk.f32.gmra.mrb[36].mxu0 %vm4196_vm3, %v10512_v46 }
 0x6c6   : > { %15076 = vmatprep.mubr.msk.f32.mxu0 %vm4196_vm3, %v10513_v60 }
 0x6c9   : > { %15077 = vmatmul.mubr.msk.f32.gmra.mrb[38].mxu0 %vm4196_vm3, %v10514_v22 }
 0x6ca   : > { %15079 = vmatprep.mubr.msk.f32.mxu0 %vm4196_vm3, %v10515_v45 }
 0x6cd   : > { %15080 = vmatmul.mubr.msk.f32.gmra.mrb[40].mxu0 %vm4196_vm3, %v10516_v26 }
 0x6ce   : > { %15082 = vmatprep.mubr.msk.f32.mxu0 %vm4196_vm3, %v18665_v50  ;;  %v10537_v50 = vld [vmem:[#allocation4 + $0x199] sm:$0xff] }
 0x6d1   : > { %15083 = vmatmul.mubr.msk.f32.gmra.mrb[42].mxu0 %vm4196_vm3, %v18671_v0  ;;  %v10538_v0 = vld [vmem:[#allocation4 + $0x1a1] sm:$0xff] }
 0x6d2   : > { %15085 = vmatprep.mubr.msk.f32.mxu0 %vm4196_vm3, %v18677_v55  ;;  %v20037_v55 = vld [vmem:[#allocation44_spill] sm:$0xff] }
 0x6d5   : > { %15086 = vmatmul.mubr.msk.f32.gmra.mrb[44].mxu0 %vm4196_vm3, %v18683_v25  ;;  %v20038_v25 = vld [vmem:[#allocation40_spill] sm:$0xff] }
 0x6d6   : > { %15088 = vmatprep.mubr.msk.f32.mxu0 %vm4196_vm3, %v18689_v8  ;;  %v20039_v8 = vld [vmem:[#allocation41_spill] sm:$0xff] }
 0x6d9   : > { %15089 = vmatmul.mubr.msk.f32.gmra.mrb[46].mxu0 %vm4196_vm3, %v18695_v12  ;;  %v20040_v12 = vld [vmem:[#allocation10_spill] sm:$0xff] }
 0x6da   : > { %15091 = vmatprep.mubr.msk.f32.mxu0 %vm4196_vm3, %v18701_v48  ;;  %v20041_v48 = vld [vmem:[#allocation11_spill] sm:$0xff] }
 0x6dd   : > { %15092 = vmatmul.mubr.msk.f32.gmra.mrb[48].mxu0 %vm4196_vm3, %v18707_v20  ;;  %v20042_v20 = vld [vmem:[#allocation12_spill] sm:$0xff] }
 0x6de   : > { %15094 = vmatprep.mubr.msk.f32.mxu0 %vm4196_vm3, %v18713_v39  ;;  %v20043_v39 = vld [vmem:[#allocation13_spill] sm:$0xff] }
 0x6e1   : > { %15095 = vmatmul.mubr.msk.f32.gmra.mrb[50].mxu0 %vm4196_vm3, %v18719_v23  ;;  %v20044_v23 = vld [vmem:[#allocation27_spill] sm:$0xff] }
 0x6e2   : > { %15097 = vmatprep.mubr.msk.f32.mxu0 %vm4196_vm3, %v18725_v2  ;;  %v20045_v2 = vld [vmem:[#allocation29_spill] sm:$0xff] }
 0x6e5   : > { %15098 = vmatmul.mubr.msk.f32.gmra.mrb[52].mxu0 %vm4196_vm3, %v18731_v63  ;;  %v20046_v63 = vld [vmem:[#allocation30_spill] sm:$0xff] }
 0x6e6   : > { %15100 = vmatprep.mubr.msk.f32.mxu0 %vm4196_vm3, %v18737_v59  ;;  %v20047_v59 = vld [vmem:[#allocation31_spill] sm:$0xff] }
 0x6e9   : > { %15101 = vmatmul.mubr.msk.f32.gmra.mrb[54].mxu0 %vm4196_vm3, %v18743_v53  ;;  %v20048_v53 = vld [vmem:[#allocation33_spill] sm:$0xff] }
 0x6ea   : > { %15103 = vmatprep.mubr.msk.f32.mxu0 %vm4196_vm3, %v18748_v34  ;;  %v20049_v34 = vld [vmem:[#allocation35_spill] sm:$0xff] }
 0x6ed   : > { %15104 = vmatmul.mubr.msk.f32.gmra.mrb[56].mxu0 %vm4196_vm3, %v18753_v56  ;;  %v20050_v56 = vld [vmem:[#allocation14_spill] sm:$0xff] }
 0x6ee   : > { %15106 = vmatprep.mubr.msk.f32.mxu0 %vm4196_vm3, %v20009_v51 }
 0x6f1   : > { %15107 = vmatmul.mubr.msk.f32.gmra.mrb[58].mxu0 %vm4196_vm3, %v20010_v52 }
 0x6f2   : > { %15109 = vmatprep.mubr.msk.f32.mxu0 %vm4196_vm3, %v19158_v28 }
 0x6f5   : > { %15110 = vmatmul.mubr.msk.f32.gmra.mrb[60].mxu0 %vm4196_vm3, %v19162_v30 }
 0x6f6   : > { %15112 = vmatprep.mubr.msk.f32.mxu0 %vm4196_vm3, %v10537_v50 }
 0x6f9   : > { %15113 = vmatmul.mubr.msk.f32.gmra.mrb[62].mxu0 %vm4196_vm3, %v10538_v0 }
 0x6fa   : > { %15117 = vmatprep.mubr.msk.f32.mxu0 %vm4196_vm3, %v20013_v21 }
 0x6fd   : > { %15118 = vmatmul.mubr.msk.f32.vlgmr.msra.gmra.mrb[32].mxu0 %vm4196_vm3, %v20037_v55 }
 0x6fe   : > { %15120 = vmatprep.mubr.msk.f32.mxu0 %vm4196_vm3, %v20038_v25 }
 0x701   : > { %15121 = vmatmul.mubr.msk.f32.gmra.mrb[34].mxu0 %vm4196_vm3, %v20039_v8 }
 0x702   : > { %15123 = vmatprep.mubr.msk.f32.mxu0 %vm4196_vm3, %v20040_v12 }
 0x705   : > { %15124 = vmatmul.mubr.msk.f32.gmra.mrb[36].mxu0 %vm4196_vm3, %v20041_v48 }
 0x706   : > { %15126 = vmatprep.mubr.msk.f32.mxu0 %vm4196_vm3, %v20042_v20 }
 0x709   : > { %15127 = vmatmul.mubr.msk.f32.gmra.mrb[38].mxu0 %vm4196_vm3, %v20043_v39 }
 0x70a   : > { %15129 = vmatprep.mubr.msk.f32.mxu0 %vm4196_vm3, %v20044_v23 }
 0x70d   : > { %15130 = vmatmul.mubr.msk.f32.gmra.mrb[40].mxu0 %vm4196_vm3, %v20045_v2 }
 0x70e   : > { %15132 = vmatprep.mubr.msk.f32.mxu0 %vm4196_vm3, %v20046_v63 }
 0x711   : > { %15133 = vmatmul.mubr.msk.f32.gmra.mrb[42].mxu0 %vm4196_vm3, %v20047_v59 }
 0x712   : > { %15135 = vmatprep.mubr.msk.f32.mxu0 %vm4196_vm3, %v20048_v53 }
 0x715   : > { %15136 = vmatmul.mubr.msk.f32.gmra.mrb[44].mxu0 %vm4196_vm3, %v20049_v34 }
 0x716   : > { %15138 = vmatprep.mubr.msk.f32.mxu0 %vm4196_vm3, %v20050_v56 }
 0x719   : > { %15139 = vmatmul.mubr.msk.f32.gmra.mrb[46].mxu0 %vm4196_vm3, %v20028_v17 }
 0x71a   : > { %15141 = vmatprep.mubr.msk.f32.mxu0 %vm4196_vm3, %v20051_v49 }
 0x71d   : > { %15142 = vmatmul.mubr.msk.f32.gmra.mrb[48].mxu0 %vm4196_vm3, %v20030_v27 }
 0x71e   : > { %15144 = vmatprep.mubr.msk.f32.mxu0 %vm4196_vm3, %v20031_v11 }
 0x721   : > { %15145 = vmatmul.mubr.msk.f32.gmra.mrb[50].mxu0 %vm4196_vm3, %v20032_v58 }
 0x722   : > { %15147 = vmatprep.mubr.msk.f32.mxu0 %vm4196_vm3, %v20052_v24 }
 0x725   : > { %15148 = vmatmul.mubr.msk.f32.gmra.mrb[52].mxu0 %vm4196_vm3, %v20034_v3 }
 0x726   : > { %15150 = vmatprep.mubr.msk.f32.mxu0 %vm4196_vm3, %v20053_v29 }
 0x729   : > { %15151 = vmatmul.mubr.msk.f32.gmra.mrb[54].mxu0 %vm4196_vm3, %v19003_v47  ;;  %v10925_v47 = vld [vmem:[#allocation4 + $0x1a2] sm:$0xff] }
 0x72a   : > { %15153 = vmatprep.mubr.msk.f32.mxu0 %vm4196_vm3, %v20036_v35 }
 0x72d   : > { %15154 = vmatmul.mubr.msk.f32.gmra.mrb[56].mxu0 %vm4196_vm3, %v19011_v10 }
 0x72e   : > { %15156 = vmatprep.mubr.msk.f32.mxu0 %vm4196_vm3, %v20054_v33 }
 0x731   : > { %15157 = vmatmul.mubr.msk.f32.gmra.mrb[58].mxu0 %vm4196_vm3, %v19019_v37 }
 0x732   : > { %15159 = vmatprep.mubr.msk.f32.mxu0 %vm4196_vm3, %v19229_v6 }
 0x735   : > { %15160 = vmatmul.mubr.msk.f32.gmra.mrb[60].mxu0 %vm4196_vm3, %v19233_v14 }
 0x736   : > { %15162 = vmatprep.mubr.msk.f32.mxu0 %vm4196_vm3, %v10924_v1 }
 0x739   : > { %15163 = vmatmul.mubr.msk.f32.gmra.mrb[62].mxu0 %vm4196_vm3, %v10925_v47 }
 0x7d0   : > { %v15119_v13 = vpop.f32.mrb[32].mxu0 }
 0x7d1   : > { %v11289_v7 = vadd.f32 %v15119_v13, %v19419_v40  ;;  %v11090_v57 = vpop.f32.mrb[33].mxu0 }
 0x7d2   : > { %v11288_v61 = vadd.f32 %v19419_v40, %v11090_v57  ;;  %v19469_v57 = vld [vmem:[%s19671_s9] sm:$0x7] }
 0x7d3   : > { %v11321_v54 = vmax.f32 %v11289_v7, 0.0  ;;  %13779 = vmatprep.mubr.msk.f32.mxu1 %vm11359_vm5, %v19469_v57 }
 0x7d4   : > { %v11320_v16 = vmax.f32 %v11288_v61, 0.0  ;;  %v15122_v36 = vpop.f32.mrb[34].mxu0 }
 0x7d5   : > { %v11291_v5 = vadd.f32 %v15122_v36, %v19419_v40  ;;  %v11100_v18 = vpop.f32.mrb[35].mxu0 }
 0x7d6   : > { %v19424_v42 = vpack.i.bf16 %v11321_v54, %v11320_v16  ;;  %v19426_v10 = vpack.c.bf16 %v11321_v54, %v11320_v16  ;;  %v11290_v43 = vadd.f32 %v19419_v40, %v11100_v18 }
 0x7d7   : > { %v11323_v37 = vmax.f32 %v11291_v5, 0.0 }
 0x7d8   : > { %v11322_v62 = vmax.f32 %v11290_v43, 0.0  ;;  %v15125_v9 = vpop.f32.mrb[36].mxu0 }
 0x7d9   : > { %v11293_v51 = vadd.f32 %v15125_v9, %v19419_v40  ;;  %v11110_v52 = vpop.f32.mrb[37].mxu0 }
 0x7da   : > { %v19430_v28 = vpack.i.bf16 %v11323_v37, %v11322_v62  ;;  %v19432_v30 = vpack.c.bf16 %v11323_v37, %v11322_v62  ;;  %v11292_v41 = vadd.f32 %v19419_v40, %v11110_v52 }
 0x7db   : > { %v11325_v21 = vmax.f32 %v11293_v51, 0.0 }
 0x7dc   : > { %v11324_v27 = vmax.f32 %v11292_v41, 0.0  ;;  %v15128_v11 = vpop.f32.mrb[38].mxu0 }
 0x7dd   : > { %v11295_v58 = vadd.f32 %v15128_v11, %v19419_v40  ;;  %v11120_v6 = vpop.f32.mrb[39].mxu0 }
 0x7de   : > { %v19436_v3 = vpack.i.bf16 %v11325_v21, %v11324_v27  ;;  %v19438_v14 = vpack.c.bf16 %v11325_v21, %v11324_v27  ;;  %v11294_v17 = vadd.f32 %v19419_v40, %v11120_v6 }
 0x7df   : > { %v11327_v35 = vmax.f32 %v11295_v58, 0.0 }
 0x7e0   : > { %v11326_v4 = vmax.f32 %v11294_v17, 0.0  ;;  %v15131_v32 = vpop.f32.mrb[40].mxu0 }
 0x7e1   : > { %v11297_v31 = vadd.f32 %v15131_v32, %v19419_v40  ;;  %v11130_v15 = vpop.f32.mrb[41].mxu0 }
 0x7e2   : > { %v19442_v19 = vpack.i.bf16 %v11327_v35, %v11326_v4  ;;  %v19444_v38 = vpack.c.bf16 %v11327_v35, %v11326_v4  ;;  %v11296_v44 = vadd.f32 %v19419_v40, %v11130_v15 }
 0x7e3   : > { %v11329_v46 = vmax.f32 %v11297_v31, 0.0 }
 0x7e4   : > { %v11328_v60 = vmax.f32 %v11296_v44, 0.0  ;;  %v15134_v22 = vpop.f32.mrb[42].mxu0 }
 0x7e5   : > { %v11299_v45 = vadd.f32 %v15134_v22, %v19419_v40  ;;  %v11140_v26 = vpop.f32.mrb[43].mxu0 }
 0x7e6   : > { %v19448_v50 = vpack.i.bf16 %v11329_v46, %v11328_v60  ;;  %v19450_v0 = vpack.c.bf16 %v11329_v46, %v11328_v60  ;;  %v11298_v55 = vadd.f32 %v19419_v40, %v11140_v26 }
 0x7e7   : > { %v11331_v25 = vmax.f32 %v11299_v45, 0.0 }
 0x7e8   : > { %v11330_v8 = vmax.f32 %v11298_v55, 0.0  ;;  %v15137_v12 = vpop.f32.mrb[44].mxu0 }
 0x7e9   : > { %v11301_v48 = vadd.f32 %v15137_v12, %v19419_v40  ;;  %v11150_v20 = vpop.f32.mrb[45].mxu0 }
 0x7ea   : > { %v19454_v39 = vpack.i.bf16 %v11331_v25, %v11330_v8  ;;  %v19456_v23 = vpack.c.bf16 %v11331_v25, %v11330_v8  ;;  %v11300_v2 = vadd.f32 %v19419_v40, %v11150_v20 }
 0x7eb   : > { %v11333_v63 = vmax.f32 %v11301_v48, 0.0 }
 0x7ec   : > { %v11332_v59 = vmax.f32 %v11300_v2, 0.0  ;;  %v15140_v53 = vpop.f32.mrb[46].mxu0 }
 0x7ed   : > { %v11303_v34 = vadd.f32 %v15140_v53, %v19419_v40  ;;  %v11160_v56 = vpop.f32.mrb[47].mxu0 }
 0x7ee   : > { %v19460_v49 = vpack.i.bf16 %v11333_v63, %v11332_v59  ;;  %v19462_v24 = vpack.c.bf16 %v11333_v63, %v11332_v59  ;;  %v11302_v29 = vadd.f32 %v19419_v40, %v11160_v56 }
 0x7ef   : > { %v11335_v33 = vmax.f32 %v11303_v34, 0.0 }
 0x7f0   : > { %v11334_v1 = vmax.f32 %v11302_v29, 0.0  ;;  %v15143_v47 = vpop.f32.mrb[48].mxu0 }
 0x7f1   : > { %v11305_v13 = vadd.f32 %v15143_v47, %v19419_v40  ;;  %v11170_v7 = vpop.f32.mrb[49].mxu0 }
 0x7f2   : > { %v19471_v61 = vpack.i.bf16 %v11335_v33, %v11334_v1  ;;  %v19473_v54 = vpack.c.bf16 %v11335_v33, %v11334_v1  ;;  %v11304_v16 = vadd.f32 %v19419_v40, %v11170_v7 }
 0x7f3   : > { %v11337_v36 = vmax.f32 %v11305_v13, 0.0 }
 0x7f4   : > { %v11336_v5 = vmax.f32 %v11304_v16, 0.0  ;;  %v15146_v18 = vpop.f32.mrb[50].mxu0 }
 0x7f5   : > { %v11307_v43 = vadd.f32 %v15146_v18, %v19419_v40  ;;  %v11180_v37 = vpop.f32.mrb[51].mxu0 }
 0x7f6   : > { %v15165_v9 = vpack.c.bf16 %v11337_v36, %v11336_v5  ;;  %v11306_v51 = vadd.f32 %v19419_v40, %v11180_v37  ;;  %v16071_v52 = vpack.i.bf16 %v11337_v36, %v11336_v5 }
 0x7f7   : > { %v11339_v41 = vmax.f32 %v11307_v43, 0.0 }
 0x7f8   : > { %v11338_v21 = vmax.f32 %v11306_v51, 0.0  ;;  %16072 = vrot.lane.b32.xlu0 %v16071_v52, %s16226_s21  ;;  %v15149_v27 = vpop.f32.mrb[52].mxu0  ;;  %15167 = vmatprep.subr.msk.bf16.mxu1 %vm19481_vm6, %v15165_v9 }
 0x7f9   : > { %v11309_v11 = vadd.f32 %v15149_v27, %v19419_v40  ;;  %v11190_v58 = vpop.f32.mrb[53].mxu0  ;;  %15170 = vmatpush3.bf16.xpose.msk.msra.mxu1 %vm19481_vm6, %v19426_v10 }
 0x7fa   : > { %v15171_v6 = vpack.c.bf16 %v11339_v41, %v11338_v21  ;;  %v11308_v17 = vadd.f32 %v19419_v40, %v11190_v58  ;;  %v16081_v35 = vpack.i.bf16 %v11339_v41, %v11338_v21 }
 0x7fb   : > { %v11341_v4 = vmax.f32 %v11309_v11, 0.0 }
 0x7fc   : > { %v11340_v32 = vmax.f32 %v11308_v17, 0.0  ;;  %16077 = vrot.lane.b32.xlu0 %v19424_v42, %s16226_s21  ;;  %16082 = vrot.lane.b32.xlu1 %v16081_v35, %s16226_s21  ;;  %v15152_v31 = vpop.f32.mrb[54].mxu0 }
 0x7fd   : > { %v11311_v15 = vadd.f32 %v15152_v31, %v19419_v40  ;;  %15173 = vmatprep.subr.msk.bf16.mxu1 %vm19481_vm6, %v15171_v6  ;;  %v11200_v44 = vpop.f32.mrb[55].mxu0 }
 0x7fe   : > { %v16091_v46 = vpack.i.bf16 %v11341_v4, %v11340_v32  ;;  %v15177_v10 = vpack.c.bf16 %v11341_v4, %v11340_v32  ;;  %v11310_v60 = vadd.f32 %v19419_v40, %v11200_v44 }
 0x7ff   : > { %v11343_v22 = vmax.f32 %v11311_v15, 0.0 }
 0x800   : > { %v11342_v45 = vmax.f32 %v11310_v60, 0.0  ;;  %16087 = vrot.lane.b32.xlu1 %v19430_v28, %s16226_s21  ;;  %16092 = vrot.lane.b32.xlu0 %v16091_v46, %s16226_s21  ;;  %v15155_v42 = vpop.f32.mrb[56].mxu0 }
 0x801   : > { %v11313_v26 = vadd.f32 %v15155_v42, %v19419_v40  ;;  %v11210_v55 = vpop.f32.mrb[57].mxu0  ;;  %15176 = vmatpush3.bf16.xpose.msk.msra.mxu1 %vm19481_vm6, %v19432_v30 }
 0x802   : > { %v16101_v25 = vpack.i.bf16 %v11343_v22, %v11342_v45  ;;  %v15183_v8 = vpack.c.bf16 %v11343_v22, %v11342_v45  ;;  %v11312_v12 = vadd.f32 %v19419_v40, %v11210_v55  ;;  %15179 = vmatprep.subr.msk.bf16.mxu1 %vm19481_vm6, %v15177_v10 }
 0x803   : > { %v11345_v48 = vmax.f32 %v11313_v26, 0.0 }
 0x804   : > { %v11344_v20 = vmax.f32 %v11312_v12, 0.0  ;;  %16097 = vrot.lane.b32.xlu1 %v19436_v3, %s16226_s21  ;;  %16102 = vrot.lane.b32.xlu0 %v16101_v25, %s16226_s21  ;;  %v15158_v28 = vpop.f32.mrb[58].mxu0 }
 0x805   : > { %v11315_v2 = vadd.f32 %v15158_v28, %v19419_v40  ;;  %v11220_v63 = vpop.f32.mrb[59].mxu0 }
 0x806   : > { %v16111_v59 = vpack.i.bf16 %v11345_v48, %v11344_v20  ;;  %v15189_v30 = vpack.c.bf16 %v11345_v48, %v11344_v20  ;;  %v11314_v53 = vadd.f32 %v19419_v40, %v11220_v63 }
 0x807   : > { %v11347_v34 = vmax.f32 %v11315_v2, 0.0 }
 0x808   : > { %v11346_v56 = vmax.f32 %v11314_v53, 0.0  ;;  %16107 = vrot.lane.b32.xlu1 %v19442_v19, %s16226_s21  ;;  %16112 = vrot.lane.b32.xlu0 %v16111_v59, %s16226_s21  ;;  %v15161_v29 = vpop.f32.mrb[60].mxu0 }
 0x809   : > { %v11317_v3 = vadd.f32 %v15161_v29, %v19419_v40  ;;  %v11230_v33 = vpop.f32.mrb[61].mxu0  ;;  %15182 = vmatpush3.bf16.xpose.msk.msra.mxu1 %vm19481_vm6, %v19438_v14 }
 0x80a   : > { %v16121_v1 = vpack.i.bf16 %v11347_v34, %v11346_v56  ;;  %v15195_v47 = vpack.c.bf16 %v11347_v34, %v11346_v56  ;;  %v11316_v13 = vadd.f32 %v19419_v40, %v11230_v33  ;;  %15185 = vmatprep.subr.msk.bf16.mxu1 %vm19481_vm6, %v15183_v8 }
 0x80b   : > { %v11349_v7 = vmax.f32 %v11317_v3, 0.0 }
 0x80c   : > { %v11348_v16 = vmax.f32 %v11316_v13, 0.0  ;;  %16117 = vrot.lane.b32.xlu1 %v19448_v50, %s16226_s21  ;;  %16122 = vrot.lane.b32.xlu0 %v16121_v1, %s16226_s21  ;;  %v15164_v19 = vpop.f32.mrb[62].mxu0 }
 0x80d   : > { %v11319_v36 = vadd.f32 %v15164_v19, %v19419_v40  ;;  %v11240_v5 = vpop.f32.mrb[63].mxu0 }
 0x80e   : > { %v16131_v18 = vpack.i.bf16 %v11349_v7, %v11348_v16  ;;  %v15201_v14 = vpack.c.bf16 %v11349_v7, %v11348_v16  ;;  %v11318_v43 = vadd.f32 %v19419_v40, %v11240_v5  ;;  %v11353_v40 = vld [vmem:[%s19672_s10] sm:$0x7] }
 0x80f   : > { %v11351_v37 = vmax.f32 %v11319_v36, 0.0 }
 0x810   : > { %v11350_v9 = vmax.f32 %v11318_v43, 0.0  ;;  %16127 = vrot.lane.b32.xlu1 %v19454_v39, %s16226_s21  ;;  %16132 = vrot.lane.b32.xlu0 %v16131_v18, %s16226_s21  ;;  %v19571_v39 = vld [vmem:[%s19673_s11] sm:$0xff] }
 0x811   : > { %15188 = vmatpush3.bf16.xpose.msk.msra.mxu1 %vm19481_vm6, %v19444_v38  ;;  %v11552_v38 = vld [vmem:[%s19674_s12] sm:$0xff] }
 0x812   : > { %v16141_v50 = vpack.i.bf16 %v11351_v37, %v11350_v9  ;;  %v15207_v51 = vpack.c.bf16 %v11351_v37, %v11350_v9  ;;  %15191 = vmatprep.subr.msk.bf16.mxu1 %vm19481_vm6, %v15189_v30 }
 0x814   : > { %16137 = vrot.lane.b32.xlu1 %v19460_v49, %s16226_s21  ;;  %16142 = vrot.lane.b32.xlu0 %v16141_v50, %s16226_s21 }
 0x818   : > { %16147 = vrot.lane.b32.xlu1 %v19471_v61, %s16226_s21  ;;  %s16228_s21 = smov [#allocation5]  }
 0x819   : > { %15194 = vmatpush3.bf16.xpose.msk.msra.mxu1 %vm19481_vm6, %v19450_v0  ;;  %v16227_v0 = vmov 0   ;;  %s16165_s25 = sshll.u32 %s16228_s21, 4  ;;  %s16166_s25 = int_to_ptr.vmem [resolvable:$false] %s16165_s25 }
 0x81a   : > { %15197 = vmatprep.subr.msk.bf16.mxu1 %vm19481_vm6, %v15195_v47  ;;  %16151 = vset.pattern.permute.xlu0 %v16227_v0  ;;  %p16168_p0 = scmp.lt.s32.totalorder %s19622_s0, %s16166_s25 }
 0x81b   : > { %16152 = vset.pattern.permute.xlu1 %v16227_v0  ;;  %11356 = vperm.xlu0 %16151, %v11353_v40  }
 0x81c   : > { %11555 = vperm.xlu1 %16152, %v11552_v38  }
 0x821   : > { %15200 = vmatpush3.bf16.xpose.msk.msra.mxu1 %vm19481_vm6, %v19456_v23 }
 0x822   : > { %15203 = vmatprep.subr.msk.bf16.mxu1 %vm19481_vm6, %v15201_v14 }
 0x829   : > { %15206 = vmatpush3.bf16.xpose.msk.msra.mxu1 %vm19481_vm6, %v19462_v24 }
 0x82a   : > { %15209 = vmatprep.subr.msk.bf16.mxu1 %vm19481_vm6, %v15207_v51 }
 0x831   : > { %15212 = vmatpush3.bf16.xpose.msk.msra.mxu1 %vm19481_vm6, %v19473_v54 }
 0x838   : > { %13780 = vmatmul.mubr.msk.f32.vlgmr.msra.gmra.mrb[64].mxu1 %vm11359_vm5, %v19469_v57 }
 0x839   : > { %13813 = vmatprep.mubr.msk.f32.mxu1 %vm11359_vm5, %v19571_v39 }
 0x86a   : > { %v16073_v23 = vpop.permute.xlu0 %16072 }
 0x86b   : > { %v16075_v49 = vunpack.i.h.bf16 %v16073_v23  ;;  %v16074_v24 = vunpack.i.l.bf16 %v16073_v23 }
 0x86d   : > { %v15213_v61 = vpack.c.bf16 %v16075_v49, %v16074_v24 }
 0x86e   : > { %v16078_v54 = vpop.permute.xlu0 %16077  ;;  %v16083_v52 = vpop.permute.xlu1 %16082 }
 0x86f   : > { %v16080_v41 = vunpack.i.h.bf16 %v16078_v54  ;;  %v16079_v21 = vunpack.i.l.bf16 %v16078_v54  ;;  %v16085_v27 = vunpack.i.h.bf16 %v16083_v52  ;;  %v16084_v11 = vunpack.i.l.bf16 %v16083_v52  ;;  %15215 = vmatprep.subr.msk.bf16.mxu1 %vm19481_vm6, %v15213_v61 }
 0x871   : > { %v15216_v58 = vpack.c.bf16 %v16080_v41, %v16079_v21  ;;  %v15219_v6 = vpack.c.bf16 %v16085_v27, %v16084_v11 }
 0x872   : > { %v16088_v17 = vpop.permute.xlu1 %16087  ;;  %v16093_v57 = vpop.permute.xlu0 %16092 }
 0x873   : > { %15218 = vmatpush3.bf16.xpose.msk.msra.mxu1 %vm19481_vm6, %v15216_v58  ;;  %v16090_v35 = vunpack.i.h.bf16 %v16088_v17  ;;  %v16089_v4 = vunpack.i.l.bf16 %v16088_v17  ;;  %v16095_v32 = vunpack.i.h.bf16 %v16093_v57  ;;  %v16094_v31 = vunpack.i.l.bf16 %v16093_v57 }
 0x874   : > { %15221 = vmatprep.subr.msk.bf16.mxu1 %vm19481_vm6, %v15219_v6 }
 0x875   : > { %v15222_v15 = vpack.c.bf16 %v16090_v35, %v16089_v4  ;;  %v15225_v44 = vpack.c.bf16 %v16095_v32, %v16094_v31 }
 0x876   : > { %v16098_v46 = vpop.permute.xlu1 %16097  ;;  %v16103_v10 = vpop.permute.xlu0 %16102 }
 0x877   : > { %v16100_v60 = vunpack.i.h.bf16 %v16098_v46  ;;  %v16099_v22 = vunpack.i.l.bf16 %v16098_v46  ;;  %v16105_v45 = vunpack.i.h.bf16 %v16103_v10  ;;  %v16104_v42 = vunpack.i.l.bf16 %v16103_v10 }
 0x879   : > { %v15228_v26 = vpack.c.bf16 %v16100_v60, %v16099_v22  ;;  %v15231_v55 = vpack.c.bf16 %v16105_v45, %v16104_v42 }
 0x87a   : > { %v16108_v25 = vpop.permute.xlu1 %16107  ;;  %v16113_v8 = vpop.permute.xlu0 %16112 }
 0x87b   : > { %15224 = vmatpush3.bf16.xpose.msk.msra.mxu1 %vm19481_vm6, %v15222_v15  ;;  %v16110_v12 = vunpack.i.h.bf16 %v16108_v25  ;;  %v16109_v48 = vunpack.i.l.bf16 %v16108_v25  ;;  %v16115_v20 = vunpack.i.h.bf16 %v16113_v8  ;;  %v16114_v28 = vunpack.i.l.bf16 %v16113_v8 }
 0x87c   : > { %15227 = vmatprep.subr.msk.bf16.mxu1 %vm19481_vm6, %v15225_v44 }
 0x87d   : > { %v15234_v2 = vpack.c.bf16 %v16110_v12, %v16109_v48  ;;  %v15237_v63 = vpack.c.bf16 %v16115_v20, %v16114_v28 }
 0x87e   : > { %v16118_v59 = vpop.permute.xlu1 %16117  ;;  %v16123_v30 = vpop.permute.xlu0 %16122 }
 0x87f   : > { %v16120_v53 = vunpack.i.h.bf16 %v16118_v59  ;;  %v16119_v34 = vunpack.i.l.bf16 %v16118_v59  ;;  %v16125_v56 = vunpack.i.h.bf16 %v16123_v30  ;;  %v16124_v29 = vunpack.i.l.bf16 %v16123_v30 }
 0x881   : > { %v15240_v3 = vpack.c.bf16 %v16120_v53, %v16119_v34  ;;  %v15243_v33 = vpack.c.bf16 %v16125_v56, %v16124_v29 }
 0x882   : > { %v16128_v1 = vpop.permute.xlu1 %16127  ;;  %v16133_v47 = vpop.permute.xlu0 %16132 }
 0x883   : > { %15230 = vmatpush3.bf16.xpose.msk.msra.mxu1 %vm19481_vm6, %v15228_v26  ;;  %v16130_v13 = vunpack.i.h.bf16 %v16128_v1  ;;  %v16129_v7 = vunpack.i.l.bf16 %v16128_v1  ;;  %v16135_v16 = vunpack.i.h.bf16 %v16133_v47  ;;  %v16134_v19 = vunpack.i.l.bf16 %v16133_v47 }
 0x884   : > { %15233 = vmatprep.subr.msk.bf16.mxu1 %vm19481_vm6, %v15231_v55 }
 0x885   : > { %v15246_v36 = vpack.c.bf16 %v16130_v13, %v16129_v7  ;;  %v15249_v5 = vpack.c.bf16 %v16135_v16, %v16134_v19 }
 0x886   : > { %v16138_v18 = vpop.permute.xlu1 %16137  ;;  %v16143_v14 = vpop.permute.xlu0 %16142 }
 0x887   : > { %v16140_v43 = vunpack.i.h.bf16 %v16138_v18  ;;  %v16139_v37 = vunpack.i.l.bf16 %v16138_v18  ;;  %v16145_v9 = vunpack.i.h.bf16 %v16143_v14  ;;  %v16144_v50 = vunpack.i.l.bf16 %v16143_v14 }
 0x889   : > { %v15252_v51 = vpack.c.bf16 %v16140_v43, %v16139_v37  ;;  %v15255_v40 = vpack.c.bf16 %v16145_v9, %v16144_v50 }
 0x88a   : > { %v16148_v38 = vpop.permute.xlu1 %16147 }
 0x88b   : > { %15236 = vmatpush3.bf16.xpose.msk.msra.mxu1 %vm19481_vm6, %v15234_v2  ;;  %v16150_v0 = vunpack.i.h.bf16 %v16148_v38  ;;  %v16149_v23 = vunpack.i.l.bf16 %v16148_v38 }
 0x88c   : > { %15239 = vmatprep.subr.msk.bf16.mxu1 %vm19481_vm6, %v15237_v63 }
 0x88d   : > { %v15258_v49 = vpack.c.bf16 %v16150_v0, %v16149_v23 }
 0x893   : > { %15242 = vmatpush3.bf16.xpose.msk.msra.mxu1 %vm19481_vm6, %v15240_v3 }
 0x894   : > { %15245 = vmatprep.subr.msk.bf16.mxu1 %vm19481_vm6, %v15243_v33 }
 0x89a   : > { %v11357_v24 = vpop.permute.xlu0 %11356 }
 0x89b   : > { %15248 = vmatpush3.bf16.xpose.msk.msra.mxu1 %vm19481_vm6, %v15246_v36  ;;  %v11556_v15 = vpop.permute.xlu1 %11555 }
 0x89c   : > { %15251 = vmatprep.subr.msk.bf16.mxu1 %vm19481_vm6, %v15249_v5 }
 0x8a3   : > { %15254 = vmatpush3.bf16.xpose.msk.msra.mxu1 %vm19481_vm6, %v15252_v51 }
 0x8a4   : > { %15257 = vmatprep.subr.msk.bf16.mxu1 %vm19481_vm6, %v15255_v40 }
 0x8ab   : > { %15260 = vmatpush3.bf16.xpose.msk.msra.mxu1 %vm19481_vm6, %v15258_v49 }
 0x8b2   : > { %13814 = vmatmul.mubr.msk.f32.vlgmr.msra.gmra.mrb[66].mxu1 %vm11359_vm5, %v19571_v39 }
 0x90b   : > { %v11525_v61 = vpop.f32.mrb[64].mxu1 }
 0x90c   : > { %v11526_v54 = vadd.f32 %v11525_v61, %v11357_v24  ;;  %v11527_v52 = vpop.f32.mrb[65].mxu1 }
 0x90d   : > { %v11528_v41 = vadd.f32 %v11527_v52, %v11357_v24 }
 0x90e   : > { %v12813_v21 = vmul.f32 -1.442695, %v11526_v54 }
 0x90f   : > { %v12814_v27 = vmul.f32 -1.442695, %v11528_v41 }
 0x910   : > { %16153 = vpow2.f32 %v12813_v21 }
 0x911   : > { %16155 = vpow2.f32 %v12814_v27 }
 0x91a   : > { %v16154_v11 = vpop.eup %16153 }
 0x91b   : > { %v16156_v58 = vpop.eup %16155  ;;  %v11536_v6 = vadd.f32 1.0, %v16154_v11 }
 0x91c   : > { %v11537_v17 = vadd.f32 1.0, %v16156_v58 }
 0x91d   : > { %16157 = vrcp.f32 %v11536_v6 }
 0x91e   : > { %16159 = vrcp.f32 %v11537_v17 }
 0x927   : > { %v16158_v62 = vpop.eup %16157 }
 0x928   : > { %v16160_v39 = vpop.eup %16159  ;;  %v11542_v57 = vmax.f32 %v16158_v62, 0.0001 }
 0x929   : > { %v11543_v35 = vmax.f32 %v16160_v39, 0.0001 }
 0x92a   : > { %v11544_v4 = vmin.f32 %v11542_v57, 0.9999 }
 0x92b   : > { %v11545_v32 = vmin.f32 %v11543_v35, 0.9999 }
 0x92d   : > { %v11548_v31 = vcombine.low %v11544_v4, %v11545_v32 }
 0x92f   : > { %11550 = vst [vmem:[%s478_s15] sm:$0x77] %v11548_v31  ;;  %s16167_s15 = scalar_lea.vmem %s16166_s25, 512 }
 0x930   : > { %p16169_p1 = scmp.lt.s32.totalorder %s16167_s15, %s16161_s17 }
 0x932   : > { %p16170_p2 = por %p16169_p1, %p16168_p0 }
 0x934   : > { %p16171_p3 = pnand %p16170_p2, %p16164_p13 }
 0x985   : > { %v11755_v44 = vpop.f32.mrb[66].mxu1 }
 0x986   : > { %v11756_v46 = vadd.f32 %v11755_v44, %v11556_v15  ;;  %v11757_v10 = vpop.f32.mrb[67].mxu1 }
 0x987   : > { %v11758_v60 = vadd.f32 %v11757_v10, %v11556_v15 }
 0x988   : > { %11760 = vst [vmem:[%s468_s18] sm:$0xff] %v11756_v46 }
 0x989   : > { %11761 = vst [vmem:[%s468_s18 + $0x8] sm:$0xff] %v11758_v60 }
 0x98a   : > { %16174 = shalt.err (!%p16171_p3)
}
 0x98b   : > { %s16175_s1 = scalar_lea.hbm %s19620_s2, 256  ;;  %s16179_s28 = scalar_lea.hbm %s19676_s14, 512 }
 0x98c   : > { %p16176_p4 = scmp.ne.s32.totalorder %s19620_s2, %s16175_s1  ;;  %p16180_p9 = scmp.lt.u32.totalorder %s19620_s2, %s19676_s14 }
 0x98d   : > { %p16181_p10 = scmp.lt.u32.totalorder %s16179_s28, %s16175_s1  ;;  %p16183_p12 = scmp.lt.u32.totalorder %s16175_s1, %s19620_s2 }
 0x98e   : > { %p16177_p7 = pnand %p16176_p4, %p16342_p5 }
 0x98f   : > { %p16182_p11 = por %p16181_p10, %p16180_p9 }
 0x990   : > { %p16178_p8 = pneg %p16177_p7 }
 0x991   : > { %p16184_p13 = por %p16183_p12, %p16182_p11 }
 0x993   : > { %p16185_p0 = pnand %p16184_p13, %p16178_p8 }
 0x995   : > { %16188 = shalt.err (!%p16185_p0)
}
 0x996   : > { %16029 = dma.vmem_to_hbm [thread:$0]  (%p16342_p5), %s19622_s0, 256, %s19620_s2, %s11768_s20  }
 0x997 PF: > { %p16035_p1 = scmp.ge.s32.totalorder %s16223_s16, 2  ;;  %s11805_s17 = sand.u32 1, %s16211_s29  }
 0x998   : > { %s11806_s21 = scalar_lea.sflag [#allocation6], %s11805_s17 }
 0x999   : > { %p16032_p2 = pnand %p16035_p1, %p16346_p6 }
 0x99b   : > { %16206 = dma.done.wait (!%p16032_p2), %s11806_s21, 256  }
 0x99c   : > { %16208 = vsyncadd (!%p16032_p2), %s11806_s21, 4294967040  ;;  %s20057_s25 = sld [smem:[#allocation8_spill]]  ;;  %s20058_s15 = sld [smem:[#allocation9_spill]] }
 0x99d   : > { %p25_p3 = scmp.ge.s32.totalorder %s16329_s19, 4   ;;  %s20059_s29 = smov %s16215_s30 }
 0x99e   : > { %s20061_s16 = smov %s16329_s19 }
 0x99f   :  { %27 = sbr.rel (!%p25_p3) target bundleno = 7 (0x7), region = 149 }
 0x9a2   : > { %s20060_s30 = smov %s20057_s25 }
 0x9a6   :  { %11811 = vsyncpa [#allocation6], 1 }
 0x9a7   :  { %11813 = vsyncpa [#allocation6 + $0x1], 1 }

</bundles_post_ra>
